<compile_context>
chip_gen: v7x
topology: tpu7x:2x2x1
jax: 0.10.0
libtpu: 0.0.40
codegen_flags: <defaults>
</compile_context>

<pallas_src>
import math
import functools

import jax
import jax.numpy as jnp
from jax import lax
from jax.experimental import pallas as pl
from jax.experimental.pallas import tpu as pltpu


# ----------------------------------------------------------------------------
# tiling helpers
# ----------------------------------------------------------------------------
def _round_up(x, m):
    return (x + m - 1) // m * m


def _largest_divisor(n, cap):
    for d in range(min(n, cap), 0, -1):
        if n % d == 0:
            return d
    return 1


def _row_tile(M, cap=256):
    """Sublane (row) tile: multiple of 8 (or full dim). Returns (tm, padded_M)."""
    if M <= cap:
        tm = _round_up(M, 8)
        return tm, tm
    for t in range(cap, 7, -8):
        if M % t == 0:
            return t, M
    return cap, _round_up(M, cap)


def _lane_tile(N, cap=512):
    """Lane (col) tile: a multiple of 128, or the full dim (always legal)."""
    if N <= cap or N % 128 != 0:
        return N
    t = (cap // 128) * 128
    while N % t != 0:
        t -= 128
    return t


def _seq_tile(S, cap=256):
    if S <= cap:
        return S
    for t in range(cap, 7, -1):
        if S % t == 0 and t % 8 == 0:
            return t
    return S


def _pad_rows(x, Mp):
    M = x.shape[0]
    if Mp == M:
        return x
    return jnp.pad(x, ((0, Mp - M), (0, 0)))


# ----------------------------------------------------------------------------
# Tiled linear: y = x @ w + b  (optional ReLU), f32 accumulation
# ----------------------------------------------------------------------------
def _linear_kernel(x_ref, w_ref, b_ref, o_ref, acc_ref, *, relu):
    @pl.when(pl.program_id(2) == 0)
    def _():
        acc_ref[...] = jnp.zeros_like(acc_ref)

    acc_ref[...] += jnp.dot(x_ref[...], w_ref[...],
                            preferred_element_type=jnp.float32)

    @pl.when(pl.program_id(2) == pl.num_programs(2) - 1)
    def _():
        y = acc_ref[...] + b_ref[...].astype(jnp.float32)
        if relu:
            y = jnp.maximum(y, 0.0)
        o_ref[...] = y.astype(o_ref.dtype)


def linear(x, w, b, relu=False, out_dtype=None):
    """x: (M, K) bf16, w: (K, N) bf16, b: (N,) f32 -> (M, N)."""
    M, K = x.shape
    N = w.shape[1]
    out_dtype = out_dtype or x.dtype
    tm, Mp = _row_tile(M, 256)
    tn = _lane_tile(N, 512)
    tk = _lane_tile(K, 512)
    xp = _pad_rows(x, Mp)
    grid = (Mp // tm, N // tn, K // tk)
    out = pl.pallas_call(
        functools.partial(_linear_kernel, relu=relu),
        grid=grid,
        out_shape=jax.ShapeDtypeStruct((Mp, N), out_dtype),
        in_specs=[
            pl.BlockSpec((tm, tk), lambda i, j, k: (i, k)),
            pl.BlockSpec((tk, tn), lambda i, j, k: (k, j)),
            pl.BlockSpec((1, tn), lambda i, j, k: (0, j)),
        ],
        out_specs=pl.BlockSpec((tm, tn), lambda i, j, k: (i, j)),
        scratch_shapes=[pltpu.VMEM((tm, tn), jnp.float32)],
        compiler_params=pltpu.CompilerParams(
            dimension_semantics=("parallel", "parallel", "arbitrary")),
    )(xp, w, b.reshape(1, N))
    return out[:M] if Mp != M else out


# ----------------------------------------------------------------------------
# Flash-style attention core: online softmax over KV blocks, G (batch,head)
# pairs batched per grid step, f32 VMEM scratch for (m, l, acc).
# ----------------------------------------------------------------------------
def _flash_attn_kernel(q_ref, k_ref, v_ref, o_ref, m_ref, l_ref, acc_ref, *, scale):
    ki = pl.program_id(2)

    @pl.when(ki == 0)
    def _():
        m_ref[...] = jnp.full(m_ref.shape, -1e30, jnp.float32)
        l_ref[...] = jnp.zeros(l_ref.shape, jnp.float32)
        acc_ref[...] = jnp.zeros(acc_ref.shape, jnp.float32)

    q = q_ref[...] * scale                               # fold scale into (G,tq,dk)
    s = jnp.einsum('gqd,gkd->gqk', q, k_ref[...],
                   preferred_element_type=jnp.float32)   # (G, tq, tk) f32

    m_prev = m_ref[...]
    m_new = jnp.maximum(m_prev, jnp.max(s, axis=-1, keepdims=True))
    alpha = jnp.exp(m_prev - m_new)                      # (G, tq, 1)
    p = jnp.exp(s - m_new)                               # (G, tq, tk)
    l_ref[...] = alpha * l_ref[...] + jnp.sum(p, axis=-1, keepdims=True)
    acc_ref[...] = alpha * acc_ref[...] + jnp.einsum(
        'gqk,gkd->gqd', p.astype(v_ref.dtype), v_ref[...],
        preferred_element_type=jnp.float32)
    m_ref[...] = m_new

    @pl.when(ki == pl.num_programs(2) - 1)
    def _():
        o_ref[...] = (acc_ref[...] / l_ref[...]).astype(o_ref.dtype)


def _choose_group(BH, tq, tk, dk, budget_bytes=6 * 1024 * 1024):
    per = 2 * 2 * (tq * dk + 2 * tk * dk)   # double-buffered bf16 q/k/v blocks
    per += 2 * 2 * tq * dk                  # double-buffered bf16 output block
    per += 4 * (tq * dk + 2 * tq)           # f32 scratch: acc + m + l
    per += 4 * tq * tk                      # live f32 score tile
    gmax = max(1, budget_bytes // max(per, 1))
    if BH >= 2:
        gmax = min(gmax, BH // 2)           # >= 2 steps on the parallel axis (v7x)
    return _largest_divisor(BH, max(1, gmax))


def attention_core(q, k, v):
    """q: (BH, Sq, dk), k/v: (BH, Sk, dk) -> (BH, Sq, dk)."""
    BH, Sq, dk = q.shape
    Sk = k.shape[1]
    scale = 1.0 / math.sqrt(dk)
    tq = _seq_tile(Sq, 256)
    tk = _seq_tile(Sk, 256)
    G = _choose_group(BH, tq, tk, dk)
    grid = (BH // G, Sq // tq, Sk // tk)
    return pl.pallas_call(
        functools.partial(_flash_attn_kernel, scale=scale),
        grid=grid,
        out_shape=jax.ShapeDtypeStruct((BH, Sq, dk), q.dtype),
        in_specs=[
            pl.BlockSpec((G, tq, dk), lambda g, qi, ki: (g, qi, 0)),
            pl.BlockSpec((G, tk, dk), lambda g, qi, ki: (g, ki, 0)),
            pl.BlockSpec((G, tk, dk), lambda g, qi, ki: (g, ki, 0)),
        ],
        out_specs=pl.BlockSpec((G, tq, dk), lambda g, qi, ki: (g, qi, 0)),
        scratch_shapes=[
            pltpu.VMEM((G, tq, 1), jnp.float32),   # m
            pltpu.VMEM((G, tq, 1), jnp.float32),   # l
            pltpu.VMEM((G, tq, dk), jnp.float32),  # acc
        ],
        compiler_params=pltpu.CompilerParams(
            dimension_semantics=("parallel", "parallel", "arbitrary")),
    )(q, k, v)


# ----------------------------------------------------------------------------
# Fused: out-projection + residual add + LayerNorm
# ----------------------------------------------------------------------------
def _proj_add_ln_kernel(x_ref, w_ref, b_ref, res_ref, g_ref, bb_ref, o_ref, *, eps):
    y = jnp.dot(x_ref[...], w_ref[...], preferred_element_type=jnp.float32)
    y = y + b_ref[...].astype(jnp.float32)
    z = y + res_ref[...].astype(jnp.float32)
    mean = jnp.mean(z, axis=-1, keepdims=True)
    zc = z - mean
    var = jnp.mean(zc * zc, axis=-1, keepdims=True)   # biased, like torch LayerNorm
    inv = lax.rsqrt(var + eps)
    o_ref[...] = (zc * inv * g_ref[...].astype(jnp.float32)
                  + bb_ref[...].astype(jnp.float32)).astype(o_ref.dtype)


def proj_add_layernorm(x, w, b, res, gamma, beta, eps=1e-5):
    """LayerNorm(res + x @ w + b). x: (M, K) bf16, w: (K, D), res: (M, D)."""
    M, K = x.shape
    D = w.shape[1]
    tm, Mp = _row_tile(M, 256)
    xp = _pad_rows(x, Mp)
    rp = _pad_rows(res, Mp)
    out = pl.pallas_call(
        functools.partial(_proj_add_ln_kernel, eps=eps),
        grid=(Mp // tm,),
        out_shape=jax.ShapeDtypeStruct((Mp, D), x.dtype),
        in_specs=[
            pl.BlockSpec((tm, K), lambda i: (i, 0)),
            pl.BlockSpec((K, D), lambda i: (0, 0)),
            pl.BlockSpec((1, D), lambda i: (0, 0)),
            pl.BlockSpec((tm, D), lambda i: (i, 0)),
            pl.BlockSpec((1, D), lambda i: (0, 0)),
            pl.BlockSpec((1, D), lambda i: (0, 0)),
        ],
        out_specs=pl.BlockSpec((tm, D), lambda i: (i, 0)),
        compiler_params=pltpu.CompilerParams(dimension_semantics=("parallel",)),
    )(xp, w, b.reshape(1, D), rp, gamma.reshape(1, D), beta.reshape(1, D))
    return out[:M] if Mp != M else out


# ----------------------------------------------------------------------------
# Fused: FFN (linear1 + ReLU + linear2) + residual add + LayerNorm,
# d_ff tiled over an inner reduction grid axis (bounds weight VMEM & vreg pressure)
# ----------------------------------------------------------------------------
def _ffn_add_ln_kernel(x_ref, w1_ref, b1_ref, w2_ref, b2_ref, g_ref, bb_ref, o_ref,
                       acc_ref, *, eps):
    fi = pl.program_id(1)

    @pl.when(fi == 0)
    def _():
        acc_ref[...] = jnp.zeros_like(acc_ref)

    x = x_ref[...]                                                   # (tm, D) bf16
    h = jnp.dot(x, w1_ref[...], preferred_element_type=jnp.float32)  # (tm, tf) f32
    h = jnp.maximum(h + b1_ref[...].astype(jnp.float32), 0.0)
    acc_ref[...] += jnp.dot(h.astype(w2_ref.dtype), w2_ref[...],
                            preferred_element_type=jnp.float32)      # (tm, D) f32

    @pl.when(fi == pl.num_programs(1) - 1)
    def _():
        z = acc_ref[...] + b2_ref[...].astype(jnp.float32) + x.astype(jnp.float32)
        mean = jnp.mean(z, axis=-1, keepdims=True)
        zc = z - mean
        var = jnp.mean(zc * zc, axis=-1, keepdims=True)
        inv = lax.rsqrt(var + eps)
        o_ref[...] = (zc * inv * g_ref[...].astype(jnp.float32)
                      + bb_ref[...].astype(jnp.float32)).astype(o_ref.dtype)


def ffn_add_layernorm(x, w1, b1, w2, b2, gamma, beta, eps=1e-5):
    """LayerNorm(x + linear2(relu(linear1(x)))), d_ff streamed in tf-chunks."""
    M, D = x.shape
    F = w1.shape[1]
    tm, Mp = _row_tile(M, 128)
    tf = _lane_tile(F, 512)
    xp = _pad_rows(x, Mp)
    out = pl.pallas_call(
        functools.partial(_ffn_add_ln_kernel, eps=eps),
        grid=(Mp // tm, F // tf),
        out_shape=jax.ShapeDtypeStruct((Mp, D), x.dtype),
        in_specs=[
            pl.BlockSpec((tm, D), lambda i, f: (i, 0)),
            pl.BlockSpec((D, tf), lambda i, f: (0, f)),
            pl.BlockSpec((1, tf), lambda i, f: (0, f)),
            pl.BlockSpec((tf, D), lambda i, f: (f, 0)),
            pl.BlockSpec((1, D), lambda i, f: (0, 0)),
            pl.BlockSpec((1, D), lambda i, f: (0, 0)),
            pl.BlockSpec((1, D), lambda i, f: (0, 0)),
        ],
        out_specs=pl.BlockSpec((tm, D), lambda i, f: (i, 0)),
        scratch_shapes=[pltpu.VMEM((tm, D), jnp.float32)],
        compiler_params=pltpu.CompilerParams(
            dimension_semantics=("parallel", "arbitrary")),
    )(xp, w1, b1.reshape(1, F), w2, b2.reshape(1, D),
      gamma.reshape(1, D), beta.reshape(1, D))
    return out[:M] if Mp != M else out


# ----------------------------------------------------------------------------
# Plain LayerNorm (final encoder/decoder norms)
# ----------------------------------------------------------------------------
def _ln_kernel(x_ref, g_ref, b_ref, o_ref, *, eps):
    z = x_ref[...].astype(jnp.float32)
    mean = jnp.mean(z, axis=-1, keepdims=True)
    zc = z - mean
    var = jnp.mean(zc * zc, axis=-1, keepdims=True)
    inv = lax.rsqrt(var + eps)
    o_ref[...] = (zc * inv * g_ref[...].astype(jnp.float32)
                  + b_ref[...].astype(jnp.float32)).astype(o_ref.dtype)


def layernorm(x, gamma, beta, eps=1e-5):
    M, D = x.shape
    tm, Mp = _row_tile(M, 256)
    xp = _pad_rows(x, Mp)
    out = pl.pallas_call(
        functools.partial(_ln_kernel, eps=eps),
        grid=(Mp // tm,),
        out_shape=jax.ShapeDtypeStruct((Mp, D), x.dtype),
        in_specs=[
            pl.BlockSpec((tm, D), lambda i: (i, 0)),
            pl.BlockSpec((1, D), lambda i: (0, 0)),
            pl.BlockSpec((1, D), lambda i: (0, 0)),
        ],
        out_specs=pl.BlockSpec((tm, D), lambda i: (i, 0)),
        compiler_params=pltpu.CompilerParams(dimension_semantics=("parallel",)),
    )(xp, gamma.reshape(1, D), beta.reshape(1, D))
    return out[:M] if Mp != M else out


# ----------------------------------------------------------------------------
# Model forward (glue in plain JAX, compute in Pallas kernels above)
# ----------------------------------------------------------------------------
def mha_self(x, p, n_heads):
    """Fused QKV projection + flash attention core. Returns (B*S, D) context."""
    B, S, D = x.shape
    dk = D // n_heads
    qkv = linear(x.reshape(B * S, D), p["wqkv"], p["bqkv"])           # (B*S, 3D)
    qkv = qkv.reshape(B, S, 3, n_heads, dk).transpose(2, 0, 3, 1, 4)  # (3,B,H,S,dk)
    q = qkv[0].reshape(B * n_heads, S, dk)
    k = qkv[1].reshape(B * n_heads, S, dk)
    v = qkv[2].reshape(B * n_heads, S, dk)
    ctx = attention_core(q, k, v)
    return ctx.reshape(B, n_heads, S, dk).transpose(0, 2, 1, 3).reshape(B * S, D)


def mha_cross(x, mem, p, n_heads):
    """Q projection of x, fused KV projection of mem, flash attention. -> (B*Sq, D)."""
    B, Sq, D = x.shape
    Sk = mem.shape[1]
    dk = D // n_heads
    q = linear(x.reshape(B * Sq, D), p["wq"], p["bq"])
    q = q.reshape(B, Sq, n_heads, dk).transpose(0, 2, 1, 3).reshape(B * n_heads, Sq, dk)
    kv = linear(mem.reshape(B * Sk, D), p["wkv"], p["bkv"])           # (B*Sk, 2D)
    kv = kv.reshape(B, Sk, 2, n_heads, dk).transpose(2, 0, 3, 1, 4)
    k = kv[0].reshape(B * n_heads, Sk, dk)
    v = kv[1].reshape(B * n_heads, Sk, dk)
    ctx = attention_core(q, k, v)
    return ctx.reshape(B, n_heads, Sq, dk).transpose(0, 2, 1, 3).reshape(B * Sq, D)


def encoder_layer_fwd(x, p, n_heads):
    B, S, D = x.shape
    res = x.reshape(B * S, D)
    ctx = mha_self(x, p["self_attn"], n_heads)
    h = proj_add_layernorm(ctx, p["self_attn"]["wo"], p["self_attn"]["bo"],
                           res, p["norm1_g"], p["norm1_b"])
    h = ffn_add_layernorm(h, p["ff"]["w1"], p["ff"]["b1"],
                          p["ff"]["w2"], p["ff"]["b2"],
                          p["norm2_g"], p["norm2_b"])
    return h.reshape(B, S, D)


def decoder_layer_fwd(x, enc_out, p, n_heads):
    B, S, D = x.shape
    res = x.reshape(B * S, D)
    ctx = mha_self(x, p["self_attn"], n_heads)
    h = proj_add_layernorm(ctx, p["self_attn"]["wo"], p["self_attn"]["bo"],
                           res, p["norm1_g"], p["norm1_b"])
    ctx2 = mha_cross(h.reshape(B, S, D), enc_out, p["enc_attn"], n_heads)
    h = proj_add_layernorm(ctx2, p["enc_attn"]["wo"], p["enc_attn"]["bo"],
                           h, p["norm2_g"], p["norm2_b"])
    h = ffn_add_layernorm(h, p["ff"]["w1"], p["ff"]["b1"],
                          p["ff"]["w2"], p["ff"]["b2"],
                          p["norm3_g"], p["norm3_b"])
    return h.reshape(B, S, D)


def positional_encoding(max_len, d_model):
    position = jnp.arange(max_len, dtype=jnp.float32)[:, None]
    div_term = jnp.exp(jnp.arange(0, d_model, 2, dtype=jnp.float32)
                       * (-math.log(10000.0) / d_model))
    pe = jnp.zeros((max_len, d_model), dtype=jnp.float32)
    pe = pe.at[:, 0::2].set(jnp.sin(position * div_term))
    pe = pe.at[:, 1::2].set(jnp.cos(position * div_term))
    return pe


def transformer_forward(params, src, tgt, n_heads, tgt_vocab):
    pe = params["pe"]
    # embedding + positional encoding in f32, then bf16 for the MXU-heavy body
    src_x = (params["src_embed"][src] + pe[: src.shape[1]][None]).astype(jnp.bfloat16)
    tgt_x = (params["tgt_embed"][tgt] + pe[: tgt.shape[1]][None]).astype(jnp.bfloat16)

    enc = src_x
    for lp in params["enc_layers"]:
        enc = encoder_layer_fwd(enc, lp, n_heads)
    B, Ss, D = enc.shape
    enc = layernorm(enc.reshape(-1, D),
                    params["enc_norm_g"], params["enc_norm_b"]).reshape(B, Ss, D)

    dec = tgt_x
    for lp in params["dec_layers"]:
        dec = decoder_layer_fwd(dec, enc, lp, n_heads)
    B, St, D = dec.shape
    dec2 = layernorm(dec.reshape(-1, D), params["dec_norm_g"], params["dec_norm_b"])

    # final vocab projection: weights pre-padded to a 128-multiple at init
    logits = linear(dec2, params["w_out"], params["b_out"], out_dtype=jnp.float32)
    logits = logits[:, :tgt_vocab]
    return logits.reshape(B, St, tgt_vocab)


# ----------------------------------------------------------------------------
# Deterministic parameter initialization (weights bf16, biases/LN f32)
# ----------------------------------------------------------------------------
_WDT = jnp.bfloat16


def _init_linear(key, din, dout, scale=0.02):
    kw, kb = jax.random.split(key)
    w = jax.random.normal(kw, (din, dout), jnp.float32) * scale
    b = jax.random.normal(kb, (dout,), jnp.float32) * scale
    return w, b


def _init_mha(key, d_model):
    ks = jax.random.split(key, 4)
    wq, bq = _init_linear(ks[0], d_model, d_model)
    wk, bk = _init_linear(ks[1], d_model, d_model)
    wv, bv = _init_linear(ks[2], d_model, d_model)
    wo, bo = _init_linear(ks[3], d_model, d_model)
    return dict(
        wq=wq.astype(_WDT), bq=bq,
        wkv=jnp.concatenate([wk, wv], axis=1).astype(_WDT),
        bkv=jnp.concatenate([bk, bv]),
        wqkv=jnp.concatenate([wq, wk, wv], axis=1).astype(_WDT),
        bqkv=jnp.concatenate([bq, bk, bv]),
        wo=wo.astype(_WDT), bo=bo)


def _init_ff(key, d_model, d_ff):
    k1, k2 = jax.random.split(key)
    w1, b1 = _init_linear(k1, d_model, d_ff)
    w2, b2 = _init_linear(k2, d_ff, d_model)
    return dict(w1=w1.astype(_WDT), b1=b1, w2=w2.astype(_WDT), b2=b2)


def _ln_params(d_model):
    return jnp.ones((d_model,), jnp.float32), jnp.zeros((d_model,), jnp.float32)


def init_params(key, src_vocab, tgt_vocab, d_model, n_heads, d_ff, n_layers, max_len=5000):
    keys = jax.random.split(key, 4 + 2 * n_layers)
    params = {}
    params["src_embed"] = jax.random.normal(keys[0], (src_vocab, d_model), jnp.float32) * 0.02
    params["tgt_embed"] = jax.random.normal(keys[1], (tgt_vocab, d_model), jnp.float32) * 0.02
    params["pe"] = positional_encoding(max_len, d_model)

    enc_layers = []
    for li in range(n_layers):
        ka, kf = jax.random.split(keys[2 + li])
        g1, b1 = _ln_params(d_model)
        g2, b2 = _ln_params(d_model)
        enc_layers.append(dict(self_attn=_init_mha(ka, d_model),
                               ff=_init_ff(kf, d_model, d_ff),
                               norm1_g=g1, norm1_b=b1, norm2_g=g2, norm2_b=b2))
    params["enc_layers"] = enc_layers
    params["enc_norm_g"], params["enc_norm_b"] = _ln_params(d_model)

    dec_layers = []
    for li in range(n_layers):
        ka, ke, kf = jax.random.split(keys[2 + n_layers + li], 3)
        g1, b1 = _ln_params(d_model)
        g2, b2 = _ln_params(d_model)
        g3, b3 = _ln_params(d_model)
        dec_layers.append(dict(self_attn=_init_mha(ka, d_model),
                               enc_attn=_init_mha(ke, d_model),
                               ff=_init_ff(kf, d_model, d_ff),
                               norm1_g=g1, norm1_b=b1, norm2_g=g2, norm2_b=b2,
                               norm3_g=g3, norm3_b=b3))
    params["dec_layers"] = dec_layers
    params["dec_norm_g"], params["dec_norm_b"] = _ln_params(d_model)

    # output projection padded once at init (lane-dense tiles, no per-call jnp.pad)
    wo, bo = _init_linear(keys[2 + 2 * n_layers], d_model, tgt_vocab)
    vp = _round_up(tgt_vocab, 128)
    if vp != tgt_vocab:
        wo = jnp.pad(wo, ((0, 0), (0, vp - tgt_vocab)))
        bo = jnp.pad(bo, (0, vp - tgt_vocab))
    params["w_out"], params["b_out"] = wo.astype(_WDT), bo
    return params


# ----------------------------------------------------------------------------
if __name__ == "__main__":
    # Small, consistent hyperparameters (Transformer.__init__ takes them as args).
    SRC_VOCAB, TGT_VOCAB = 32, 40
    D_MODEL, N_HEADS, D_FF, N_LAYERS = 128, 4, 256, 2
    BATCH, SRC_SEQ, TGT_SEQ = 2, 8, 8

    root = jax.random.PRNGKey(0)
    kp, ks, kt = jax.random.split(root, 3)
    params = init_params(kp, SRC_VOCAB, TGT_VOCAB, D_MODEL, N_HEADS, D_FF, N_LAYERS)

    src = jax.random.randint(ks, (BATCH, SRC_SEQ), 0, SRC_VOCAB, dtype=jnp.int32)
    tgt = jax.random.randint(kt, (BATCH, TGT_SEQ), 0, TGT_VOCAB, dtype=jnp.int32)

    fwd = jax.jit(functools.partial(transformer_forward,
                                    n_heads=N_HEADS, tgt_vocab=TGT_VOCAB))
    out = fwd(params, src, tgt)
    jax.block_until_ready(out)

    assert out.shape == (BATCH, TGT_SEQ, TGT_VOCAB), out.shape
    assert jnp.all(jnp.isfinite(out))
    print("KERNEL_OK")
</pallas_src>

<mosaic_0001>
module attributes {stable_mosaic.version = 11 : i64} {
  func.func @_linear_kernel(%arg0: i32, %arg1: i32, %arg2: i32, %arg3: memref<16x128xbf16, #tpu.memory_space<vmem>>, %arg4: memref<128x384xbf16, #tpu.memory_space<vmem>>, %arg5: memref<1x384xf32, #tpu.memory_space<vmem>>, %arg6: memref<16x384xbf16, #tpu.memory_space<vmem>>, %arg7: memref<16x384xf32, #tpu.memory_space<vmem>>) attributes {dimension_semantics = [#tpu.dimension_semantics<parallel>, #tpu.dimension_semantics<parallel>, #tpu.dimension_semantics<arbitrary>], iteration_bounds = array<i64: 1, 1, 1>, scalar_prefetch = 0 : i64, scratch_operands = 1 : i64, tpu.core_type = #tpu.core_type<tc>, window_params = [{transform_indices = @transform_0, window_bounds = array<i64: 16, 128>}, {transform_indices = @transform_1, window_bounds = array<i64: 128, 384>}, {transform_indices = @transform_2, window_bounds = array<i64: 1, 384>}, {transform_indices = @transform_3, window_bounds = array<i64: 16, 384>}]} {
    %c0_i32 = arith.constant 0 : i32
    %0 = arith.cmpi eq, %arg2, %c0_i32 : i32
    %1 = arith.extui %0 : i1 to i32
    %c0_i32_0 = arith.constant 0 : i32
    %2 = arith.cmpi ne, %1, %c0_i32_0 : i32
    scf.if %2 {
      %cst_10 = arith.constant 0.000000e+00 : f32
      %12 = vector.broadcast %cst_10 : f32 to vector<16x384xf32>
      %c0_11 = arith.constant 0 : index
      %c0_12 = arith.constant 0 : index
      %13 = vector.load %arg7[%c0_11, %c0_12] : memref<16x384xf32, #tpu.memory_space<vmem>>, vector<16x384xf32>
      tpu.vector_store %arg7[%c0_11, %c0_12], %12 {strides = array<i32>} : memref<16x384xf32, #tpu.memory_space<vmem>>, vector<16x384xf32>,
    } else {
    }
    %c0 = arith.constant 0 : index
    %c0_1 = arith.constant 0 : index
    %3 = vector.load %arg7[%c0, %c0_1] : memref<16x384xf32, #tpu.memory_space<vmem>>, vector<16x384xf32>
    %c0_2 = arith.constant 0 : index
    %c0_3 = arith.constant 0 : index
    %4 = vector.load %arg3[%c0_2, %c0_3] : memref<16x128xbf16, #tpu.memory_space<vmem>>, vector<16x128xbf16>
    %c0_4 = arith.constant 0 : index
    %c0_5 = arith.constant 0 : index
    %5 = vector.load %arg4[%c0_4, %c0_5] : memref<128x384xbf16, #tpu.memory_space<vmem>>, vector<128x384xbf16>
    %cst = arith.constant dense<0.000000e+00> : vector<16x384xf32>
    %6 = tpu.matmul %4, %5, %cst {dimension_numbers = #tpu.dot_dimension_numbers<[1], [0], [0], [1], [0, 0, 1, 1], [], []>} : vector<16x128xbf16>, vector<128x384xbf16>, vector<16x384xf32> -> vector<16x384xf32>
    %7 = arith.addf %3, %6 : vector<16x384xf32>
    %c0_6 = arith.constant 0 : index
    %c0_7 = arith.constant 0 : index
    %8 = vector.load %arg7[%c0_6, %c0_7] : memref<16x384xf32, #tpu.memory_space<vmem>>, vector<16x384xf32>
    tpu.vector_store %arg7[%c0_6, %c0_7], %7 {strides = array<i32>} : memref<16x384xf32, #tpu.memory_space<vmem>>, vector<16x384xf32>,
    %c0_i32_8 = arith.constant 0 : i32
    %9 = arith.cmpi eq, %arg2, %c0_i32_8 : i32
    %10 = arith.extui %9 : i1 to i32
    %c0_i32_9 = arith.constant 0 : i32
    %11 = arith.cmpi ne, %10, %c0_i32_9 : i32
    scf.if %11 {
      %c0_10 = arith.constant 0 : index
      %c0_11 = arith.constant 0 : index
      %12 = vector.load %arg7[%c0_10, %c0_11] : memref<16x384xf32, #tpu.memory_space<vmem>>, vector<16x384xf32>
      %c0_12 = arith.constant 0 : index
      %c0_13 = arith.constant 0 : index
      %13 = vector.load %arg5[%c0_12, %c0_13] : memref<1x384xf32, #tpu.memory_space<vmem>>, vector<1x384xf32>
      %14 = vector.broadcast %13 : vector<1x384xf32> to vector<16x384xf32>
      %15 = arith.addf %12, %14 : vector<16x384xf32>
      %16 = arith.truncf %15 : vector<16x384xf32> to vector<16x384xbf16>
      %c0_14 = arith.constant 0 : index
      %c0_15 = arith.constant 0 : index
      %17 = vector.load %arg6[%c0_14, %c0_15] : memref<16x384xbf16, #tpu.memory_space<vmem>>, vector<16x384xbf16>
      tpu.vector_store %arg6[%c0_14, %c0_15], %16 {strides = array<i32>} : memref<16x384xbf16, #tpu.memory_space<vmem>>, vector<16x384xbf16>,
    } else {
    }
    return
  }
  func.func @transform_0(%arg0: i32, %arg1: i32, %arg2: i32) -> (i32, i32) {
    %c0_i32 = arith.constant 0 : i32
    return %arg0, %arg2 : i32, i32
  }
  func.func @transform_1(%arg0: i32, %arg1: i32, %arg2: i32) -> (i32, i32) {
    %c0_i32 = arith.constant 0 : i32
    return %arg2, %arg1 : i32, i32
  }
  func.func @transform_2(%arg0: i32, %arg1: i32, %arg2: i32) -> (i32, i32) {
    %c0_i32 = arith.constant 0 : i32
    %c0_i32_0 = arith.constant 0 : i32
    return %c0_i32, %arg1 : i32, i32
  }
  func.func @transform_3(%arg0: i32, %arg1: i32, %arg2: i32) -> (i32, i32) {
    %c0_i32 = arith.constant 0 : i32
    return %arg0, %arg1 : i32, i32
  }
}

module attributes {stable_mosaic.version = 11 : i64} {
  func.func @_flash_attn_kernel(%arg0: i32, %arg1: i32, %arg2: i32, %arg3: memref<4x8x32xbf16, #tpu.memory_space<vmem>>, %arg4: memref<4x8x32xbf16, #tpu.memory_space<vmem>>, %arg5: memref<4x8x32xbf16, #tpu.memory_space<vmem>>, %arg6: memref<4x8x32xbf16, #tpu.memory_space<vmem>>, %arg7: memref<4x8x1xf32, #tpu.memory_space<vmem>>, %arg8: memref<4x8x1xf32, #tpu.memory_space<vmem>>, %arg9: memref<4x8x32xf32, #tpu.memory_space<vmem>>) attributes {dimension_semantics = [#tpu.dimension_semantics<parallel>, #tpu.dimension_semantics<parallel>, #tpu.dimension_semantics<arbitrary>], iteration_bounds = array<i64: 2, 1, 1>, scalar_prefetch = 0 : i64, scratch_operands = 3 : i64, tpu.core_type = #tpu.core_type<tc>, window_params = [{transform_indices = @transform_0, window_bounds = array<i64: 4, 8, 32>}, {transform_indices = @transform_1, window_bounds = array<i64: 4, 8, 32>}, {transform_indices = @transform_2, window_bounds = array<i64: 4, 8, 32>}, {transform_indices = @transform_3, window_bounds = array<i64: 4, 8, 32>}]} {
    %c0_i32 = arith.constant 0 : i32
    %0 = arith.cmpi eq, %arg2, %c0_i32 : i32
    %1 = arith.extui %0 : i1 to i32
    %c0_i32_0 = arith.constant 0 : i32
    %2 = arith.cmpi ne, %1, %c0_i32_0 : i32
    scf.if %2 {
      %cst_33 = arith.constant -1.000000e+30 : f32
      %35 = vector.broadcast %cst_33 : f32 to vector<4x8x1xf32>
      %c0_34 = arith.constant 0 : index
      %c0_35 = arith.constant 0 : index
      %c0_36 = arith.constant 0 : index
      %36 = vector.load %arg7[%c0_34, %c0_35, %c0_36] : memref<4x8x1xf32, #tpu.memory_space<vmem>>, vector<4x8x1xf32>
      tpu.vector_store %arg7[%c0_34, %c0_35, %c0_36], %35 {strides = array<i32>} : memref<4x8x1xf32, #tpu.memory_space<vmem>>, vector<4x8x1xf32>,
      %cst_37 = arith.constant 0.000000e+00 : f32
      %37 = vector.broadcast %cst_37 : f32 to vector<4x8x1xf32>
      %c0_38 = arith.constant 0 : index
      %c0_39 = arith.constant 0 : index
      %c0_40 = arith.constant 0 : index
      %38 = vector.load %arg8[%c0_38, %c0_39, %c0_40] : memref<4x8x1xf32, #tpu.memory_space<vmem>>, vector<4x8x1xf32>
      tpu.vector_store %arg8[%c0_38, %c0_39, %c0_40], %37 {strides = array<i32>} : memref<4x8x1xf32, #tpu.memory_space<vmem>>, vector<4x8x1xf32>,
      %cst_41 = arith.constant 0.000000e+00 : f32
      %39 = vector.broadcast %cst_41 : f32 to vector<4x8x32xf32>
      %c0_42 = arith.constant 0 : index
      %c0_43 = arith.constant 0 : index
      %c0_44 = arith.constant 0 : index
      %40 = vector.load %arg9[%c0_42, %c0_43, %c0_44] : memref<4x8x32xf32, #tpu.memory_space<vmem>>, vector<4x8x32xf32>
      tpu.vector_store %arg9[%c0_42, %c0_43, %c0_44], %39 {strides = array<i32>} : memref<4x8x32xf32, #tpu.memory_space<vmem>>, vector<4x8x32xf32>,
    } else {
    }
    %c0 = arith.constant 0 : index
    %c0_1 = arith.constant 0 : index
    %c0_2 = arith.constant 0 : index
    %3 = vector.load %arg3[%c0, %c0_1, %c0_2] : memref<4x8x32xbf16, #tpu.memory_space<vmem>>, vector<4x8x32xbf16>
    %cst = arith.constant 1.767580e-01 : bf16
    %4 = vector.broadcast %cst : bf16 to vector<4x8x32xbf16>
    %5 = arith.mulf %3, %4 : vector<4x8x32xbf16>
    %c0_3 = arith.constant 0 : index
    %c0_4 = arith.constant 0 : index
    %c0_5 = arith.constant 0 : index
    %6 = vector.load %arg4[%c0_3, %c0_4, %c0_5] : memref<4x8x32xbf16, #tpu.memory_space<vmem>>, vector<4x8x32xbf16>
    "tpu.trace_start"() <{level = 10 : i32, message = "gqd,gkd->gqk"}> : () -> ()
    %cst_6 = arith.constant dense<0.000000e+00> : vector<4x8x8xf32>
    %7 = tpu.matmul %5, %6, %cst_6 {dimension_numbers = #tpu.dot_dimension_numbers<[2], [2], [1], [1], [0, 0, 0, 1, 1, 1], [0], [0]>} : vector<4x8x32xbf16>, vector<4x8x32xbf16>, vector<4x8x8xf32> -> vector<4x8x8xf32>
    "tpu.trace_stop"() : () -> ()
    %c0_7 = arith.constant 0 : index
    %c0_8 = arith.constant 0 : index
    %c0_9 = arith.constant 0 : index
    %8 = vector.load %arg7[%c0_7, %c0_8, %c0_9] : memref<4x8x1xf32, #tpu.memory_space<vmem>>, vector<4x8x1xf32>
    %cst_10 = arith.constant dense<0xFF800000> : vector<4x8xf32>
    %9 = vector.multi_reduction <maximumf>, %7, %cst_10 [2] : vector<4x8x8xf32> to vector<4x8xf32>
    %10 = vector.shape_cast %9 : vector<4x8xf32> to vector<4x8x1xf32>
    %11 = arith.maximumf %8, %10 : vector<4x8x1xf32>
    %12 = arith.subf %8, %11 : vector<4x8x1xf32>
    %13 = math.exp %12 : vector<4x8x1xf32>
    %14 = vector.broadcast %11 : vector<4x8x1xf32> to vector<4x8x8xf32>
    %15 = arith.subf %7, %14 : vector<4x8x8xf32>
    %16 = math.exp %15 : vector<4x8x8xf32>
    %c0_11 = arith.constant 0 : index
    %c0_12 = arith.constant 0 : index
    %c0_13 = arith.constant 0 : index
    %17 = vector.load %arg8[%c0_11, %c0_12, %c0_13] : memref<4x8x1xf32, #tpu.memory_space<vmem>>, vector<4x8x1xf32>
    %18 = arith.mulf %13, %17 : vector<4x8x1xf32>
    %cst_14 = arith.constant dense<0.000000e+00> : vector<4x8xf32>
    %19 = vector.multi_reduction <add>, %16, %cst_14 [2] : vector<4x8x8xf32> to vector<4x8xf32>
    %20 = vector.shape_cast %19 : vector<4x8xf32> to vector<4x8x1xf32>
    %21 = arith.addf %18, %20 : vector<4x8x1xf32>
    %c0_15 = arith.constant 0 : index
    %c0_16 = arith.constant 0 : index
    %c0_17 = arith.constant 0 : index
    %22 = vector.load %arg8[%c0_15, %c0_16, %c0_17] : memref<4x8x1xf32, #tpu.memory_space<vmem>>, vector<4x8x1xf32>
    tpu.vector_store %arg8[%c0_15, %c0_16, %c0_17], %21 {strides = array<i32>} : memref<4x8x1xf32, #tpu.memory_space<vmem>>, vector<4x8x1xf32>,
    %c0_18 = arith.constant 0 : index
    %c0_19 = arith.constant 0 : index
    %c0_20 = arith.constant 0 : index
    %23 = vector.load %arg9[%c0_18, %c0_19, %c0_20] : memref<4x8x32xf32, #tpu.memory_space<vmem>>, vector<4x8x32xf32>
    %24 = vector.broadcast %13 : vector<4x8x1xf32> to vector<4x8x32xf32>
    %25 = arith.mulf %24, %23 : vector<4x8x32xf32>
    %26 = arith.truncf %16 : vector<4x8x8xf32> to vector<4x8x8xbf16>
    %c0_21 = arith.constant 0 : index
    %c0_22 = arith.constant 0 : index
    %c0_23 = arith.constant 0 : index
    %27 = vector.load %arg5[%c0_21, %c0_22, %c0_23] : memref<4x8x32xbf16, #tpu.memory_space<vmem>>, vector<4x8x32xbf16>
    "tpu.trace_start"() <{level = 10 : i32, message = "gqk,gkd->gqd"}> : () -> ()
    %cst_24 = arith.constant dense<0.000000e+00> : vector<4x8x32xf32>
    %28 = tpu.matmul %26, %27, %cst_24 {dimension_numbers = #tpu.dot_dimension_numbers<[2], [1], [1], [2], [0, 0, 0, 1, 1, 2], [0], [0]>} : vector<4x8x8xbf16>, vector<4x8x32xbf16>, vector<4x8x32xf32> -> vector<4x8x32xf32>
    "tpu.trace_stop"() : () -> ()
    %29 = arith.addf %25, %28 : vector<4x8x32xf32>
    %c0_25 = arith.constant 0 : index
    %c0_26 = arith.constant 0 : index
    %c0_27 = arith.constant 0 : index
    %30 = vector.load %arg9[%c0_25, %c0_26, %c0_27] : memref<4x8x32xf32, #tpu.memory_space<vmem>>, vector<4x8x32xf32>
    tpu.vector_store %arg9[%c0_25, %c0_26, %c0_27], %29 {strides = array<i32>} : memref<4x8x32xf32, #tpu.memory_space<vmem>>, vector<4x8x32xf32>,
    %c0_28 = arith.constant 0 : index
    %c0_29 = arith.constant 0 : index
    %c0_30 = arith.constant 0 : index
    %31 = vector.load %arg7[%c0_28, %c0_29, %c0_30] : memref<4x8x1xf32, #tpu.memory_space<vmem>>, vector<4x8x1xf32>
    tpu.vector_store %arg7[%c0_28, %c0_29, %c0_30], %11 {strides = array<i32>} : memref<4x8x1xf32, #tpu.memory_space<vmem>>, vector<4x8x1xf32>,
    %c0_i32_31 = arith.constant 0 : i32
    %32 = arith.cmpi eq, %arg2, %c0_i32_31 : i32
    %33 = arith.extui %32 : i1 to i32
    %c0_i32_32 = arith.constant 0 : i32
    %34 = arith.cmpi ne, %33, %c0_i32_32 : i32
    scf.if %34 {
      %c0_33 = arith.constant 0 : index
      %c0_34 = arith.constant 0 : index
      %c0_35 = arith.constant 0 : index
      %35 = vector.load %arg9[%c0_33, %c0_34, %c0_35] : memref<4x8x32xf32, #tpu.memory_space<vmem>>, vector<4x8x32xf32>
      %c0_36 = arith.constant 0 : index
      %c0_37 = arith.constant 0 : index
      %c0_38 = arith.constant 0 : index
      %36 = vector.load %arg8[%c0_36, %c0_37, %c0_38] : memref<4x8x1xf32, #tpu.memory_space<vmem>>, vector<4x8x1xf32>
      %37 = vector.broadcast %36 : vector<4x8x1xf32> to vector<4x8x32xf32>
      %38 = arith.divf %35, %37 : vector<4x8x32xf32>
      %39 = arith.truncf %38 : vector<4x8x32xf32> to vector<4x8x32xbf16>
      %c0_39 = arith.constant 0 : index
      %c0_40 = arith.constant 0 : index
      %c0_41 = arith.constant 0 : index
      %40 = vector.load %arg6[%c0_39, %c0_40, %c0_41] : memref<4x8x32xbf16, #tpu.memory_space<vmem>>, vector<4x8x32xbf16>
      tpu.vector_store %arg6[%c0_39, %c0_40, %c0_41], %39 {strides = array<i32>} : memref<4x8x32xbf16, #tpu.memory_space<vmem>>, vector<4x8x32xbf16>,
    } else {
    }
    return
  }
  func.func @transform_0(%arg0: i32, %arg1: i32, %arg2: i32) -> (i32, i32, i32) {
    %c0_i32 = arith.constant 0 : i32
    %c0_i32_0 = arith.constant 0 : i32
    return %arg0, %arg1, %c0_i32 : i32, i32, i32
  }
  func.func @transform_1(%arg0: i32, %arg1: i32, %arg2: i32) -> (i32, i32, i32) {
    %c0_i32 = arith.constant 0 : i32
    %c0_i32_0 = arith.constant 0 : i32
    return %arg0, %arg2, %c0_i32 : i32, i32, i32
  }
  func.func @transform_2(%arg0: i32, %arg1: i32, %arg2: i32) -> (i32, i32, i32) {
    %c0_i32 = arith.constant 0 : i32
    %c0_i32_0 = arith.constant 0 : i32
    return %arg0, %arg2, %c0_i32 : i32, i32, i32
  }
  func.func @transform_3(%arg0: i32, %arg1: i32, %arg2: i32) -> (i32, i32, i32) {
    %c0_i32 = arith.constant 0 : i32
    %c0_i32_0 = arith.constant 0 : i32
    return %arg0, %arg1, %c0_i32 : i32, i32, i32
  }
}

module attributes {stable_mosaic.version = 11 : i64} {
  func.func @_proj_add_ln_kernel(%arg0: i32, %arg1: memref<16x128xbf16, #tpu.memory_space<vmem>>, %arg2: memref<128x128xbf16, #tpu.memory_space<vmem>>, %arg3: memref<1x128xf32, #tpu.memory_space<vmem>>, %arg4: memref<16x128xbf16, #tpu.memory_space<vmem>>, %arg5: memref<1x128xf32, #tpu.memory_space<vmem>>, %arg6: memref<1x128xf32, #tpu.memory_space<vmem>>, %arg7: memref<16x128xbf16, #tpu.memory_space<vmem>>) attributes {dimension_semantics = [#tpu.dimension_semantics<parallel>], iteration_bounds = array<i64: 1>, scalar_prefetch = 0 : i64, scratch_operands = 0 : i64, tpu.core_type = #tpu.core_type<tc>, window_params = [{transform_indices = @transform_0, window_bounds = array<i64: 16, 128>}, {pipeline_mode = #tpu.pipeline_mode<synchronous>, transform_indices = @transform_1, window_bounds = array<i64: 128, 128>}, {pipeline_mode = #tpu.pipeline_mode<synchronous>, transform_indices = @transform_2, window_bounds = array<i64: 1, 128>}, {transform_indices = @transform_3, window_bounds = array<i64: 16, 128>}, {pipeline_mode = #tpu.pipeline_mode<synchronous>, transform_indices = @transform_4, window_bounds = array<i64: 1, 128>}, {pipeline_mode = #tpu.pipeline_mode<synchronous>, transform_indices = @transform_5, window_bounds = array<i64: 1, 128>}, {transform_indices = @transform_6, window_bounds = array<i64: 16, 128>}]} {
    %c0 = arith.constant 0 : index
    %c0_0 = arith.constant 0 : index
    %0 = vector.load %arg1[%c0, %c0_0] : memref<16x128xbf16, #tpu.memory_space<vmem>>, vector<16x128xbf16>
    %c0_1 = arith.constant 0 : index
    %c0_2 = arith.constant 0 : index
    %1 = vector.load %arg2[%c0_1, %c0_2] : memref<128x128xbf16, #tpu.memory_space<vmem>>, vector<128x128xbf16>
    %cst = arith.constant dense<0.000000e+00> : vector<16x128xf32>
    %2 = tpu.matmul %0, %1, %cst {dimension_numbers = #tpu.dot_dimension_numbers<[1], [0], [0], [1], [0, 0, 1, 1], [], []>} : vector<16x128xbf16>, vector<128x128xbf16>, vector<16x128xf32> -> vector<16x128xf32>
    %c0_3 = arith.constant 0 : index
    %c0_4 = arith.constant 0 : index
    %3 = vector.load %arg3[%c0_3, %c0_4] : memref<1x128xf32, #tpu.memory_space<vmem>>, vector<1x128xf32>
    %4 = vector.broadcast %3 : vector<1x128xf32> to vector<16x128xf32>
    %5 = arith.addf %2, %4 : vector<16x128xf32>
    %c0_5 = arith.constant 0 : index
    %c0_6 = arith.constant 0 : index
    %6 = vector.load %arg4[%c0_5, %c0_6] : memref<16x128xbf16, #tpu.memory_space<vmem>>, vector<16x128xbf16>
    %7 = arith.extf %6 : vector<16x128xbf16> to vector<16x128xf32>
    %8 = arith.addf %5, %7 : vector<16x128xf32>
    %cst_7 = arith.constant dense<0.000000e+00> : vector<16xf32>
    %9 = vector.multi_reduction <add>, %8, %cst_7 [1] : vector<16x128xf32> to vector<16xf32>
    %10 = vector.shape_cast %9 : vector<16xf32> to vector<16x1xf32>
    %cst_8 = arith.constant 1.280000e+02 : f32
    %11 = vector.broadcast %cst_8 : f32 to vector<16x1xf32>
    %12 = arith.divf %10, %11 : vector<16x1xf32>
    %13 = vector.broadcast %12 : vector<16x1xf32> to vector<16x128xf32>
    %14 = arith.subf %8, %13 : vector<16x128xf32>
    %15 = arith.mulf %14, %14 : vector<16x128xf32>
    %cst_9 = arith.constant dense<0.000000e+00> : vector<16xf32>
    %16 = vector.multi_reduction <add>, %15, %cst_9 [1] : vector<16x128xf32> to vector<16xf32>
    %17 = vector.shape_cast %16 : vector<16xf32> to vector<16x1xf32>
    %cst_10 = arith.constant 1.280000e+02 : f32
    %18 = vector.broadcast %cst_10 : f32 to vector<16x1xf32>
    %19 = arith.divf %17, %18 : vector<16x1xf32>
    %cst_11 = arith.constant 9.99999974E-6 : f32
    %20 = vector.broadcast %cst_11 : f32 to vector<16x1xf32>
    %21 = arith.addf %19, %20 : vector<16x1xf32>
    %22 = math.rsqrt %21 : vector<16x1xf32>
    %23 = vector.broadcast %22 : vector<16x1xf32> to vector<16x128xf32>
    %24 = arith.mulf %14, %23 : vector<16x128xf32>
    %c0_12 = arith.constant 0 : index
    %c0_13 = arith.constant 0 : index
    %25 = vector.load %arg5[%c0_12, %c0_13] : memref<1x128xf32, #tpu.memory_space<vmem>>, vector<1x128xf32>
    %26 = vector.broadcast %25 : vector<1x128xf32> to vector<16x128xf32>
    %27 = arith.mulf %24, %26 : vector<16x128xf32>
    %c0_14 = arith.constant 0 : index
    %c0_15 = arith.constant 0 : index
    %28 = vector.load %arg6[%c0_14, %c0_15] : memref<1x128xf32, #tpu.memory_space<vmem>>, vector<1x128xf32>
    %29 = vector.broadcast %28 : vector<1x128xf32> to vector<16x128xf32>
    %30 = arith.addf %27, %29 : vector<16x128xf32>
    %31 = arith.truncf %30 : vector<16x128xf32> to vector<16x128xbf16>
    %c0_16 = arith.constant 0 : index
    %c0_17 = arith.constant 0 : index
    %32 = vector.load %arg7[%c0_16, %c0_17] : memref<16x128xbf16, #tpu.memory_space<vmem>>, vector<16x128xbf16>
    tpu.vector_store %arg7[%c0_16, %c0_17], %31 {strides = array<i32>} : memref<16x128xbf16, #tpu.memory_space<vmem>>, vector<16x128xbf16>,
    return
  }
  func.func @transform_0(%arg0: i32) -> (i32, i32) {
    %c0_i32 = arith.constant 0 : i32
    %c0_i32_0 = arith.constant 0 : i32
    return %arg0, %c0_i32 : i32, i32
  }
  func.func @transform_1(%arg0: i32) -> (i32, i32) {
    %c0_i32 = arith.constant 0 : i32
    %c0_i32_0 = arith.constant 0 : i32
    %c0_i32_1 = arith.constant 0 : i32
    return %c0_i32, %c0_i32_0 : i32, i32
  }
  func.func @transform_2(%arg0: i32) -> (i32, i32) {
    %c0_i32 = arith.constant 0 : i32
    %c0_i32_0 = arith.constant 0 : i32
    %c0_i32_1 = arith.constant 0 : i32
    return %c0_i32, %c0_i32_0 : i32, i32
  }
  func.func @transform_3(%arg0: i32) -> (i32, i32) {
    %c0_i32 = arith.constant 0 : i32
    %c0_i32_0 = arith.constant 0 : i32
    return %arg0, %c0_i32 : i32, i32
  }
  func.func @transform_4(%arg0: i32) -> (i32, i32) {
    %c0_i32 = arith.constant 0 : i32
    %c0_i32_0 = arith.constant 0 : i32
    %c0_i32_1 = arith.constant 0 : i32
    return %c0_i32, %c0_i32_0 : i32, i32
  }
  func.func @transform_5(%arg0: i32) -> (i32, i32) {
    %c0_i32 = arith.constant 0 : i32
    %c0_i32_0 = arith.constant 0 : i32
    %c0_i32_1 = arith.constant 0 : i32
    return %c0_i32, %c0_i32_0 : i32, i32
  }
  func.func @transform_6(%arg0: i32) -> (i32, i32) {
    %c0_i32 = arith.constant 0 : i32
    %c0_i32_0 = arith.constant 0 : i32
    return %arg0, %c0_i32 : i32, i32
  }
}

module attributes {stable_mosaic.version = 11 : i64} {
  func.func @_linear_kernel(%arg0: i32, %arg1: i32, %arg2: i32, %arg3: memref<16x128xbf16, #tpu.memory_space<vmem>>, %arg4: memref<128x128xbf16, #tpu.memory_space<vmem>>, %arg5: memref<1x128xf32, #tpu.memory_space<vmem>>, %arg6: memref<16x128xbf16, #tpu.memory_space<vmem>>, %arg7: memref<16x128xf32, #tpu.memory_space<vmem>>) attributes {dimension_semantics = [#tpu.dimension_semantics<parallel>, #tpu.dimension_semantics<parallel>, #tpu.dimension_semantics<arbitrary>], iteration_bounds = array<i64: 1, 1, 1>, scalar_prefetch = 0 : i64, scratch_operands = 1 : i64, tpu.core_type = #tpu.core_type<tc>, window_params = [{transform_indices = @transform_0, window_bounds = array<i64: 16, 128>}, {transform_indices = @transform_1, window_bounds = array<i64: 128, 128>}, {transform_indices = @transform_2, window_bounds = array<i64: 1, 128>}, {transform_indices = @transform_3, window_bounds = array<i64: 16, 128>}]} {
    %c0_i32 = arith.constant 0 : i32
    %0 = arith.cmpi eq, %arg2, %c0_i32 : i32
    %1 = arith.extui %0 : i1 to i32
    %c0_i32_0 = arith.constant 0 : i32
    %2 = arith.cmpi ne, %1, %c0_i32_0 : i32
    scf.if %2 {
      %cst_10 = arith.constant 0.000000e+00 : f32
      %12 = vector.broadcast %cst_10 : f32 to vector<16x128xf32>
      %c0_11 = arith.constant 0 : index
      %c0_12 = arith.constant 0 : index
      %13 = vector.load %arg7[%c0_11, %c0_12] : memref<16x128xf32, #tpu.memory_space<vmem>>, vector<16x128xf32>
      tpu.vector_store %arg7[%c0_11, %c0_12], %12 {strides = array<i32>} : memref<16x128xf32, #tpu.memory_space<vmem>>, vector<16x128xf32>,
    } else {
    }
    %c0 = arith.constant 0 : index
    %c0_1 = arith.constant 0 : index
    %3 = vector.load %arg7[%c0, %c0_1] : memref<16x128xf32, #tpu.memory_space<vmem>>, vector<16x128xf32>
    %c0_2 = arith.constant 0 : index
    %c0_3 = arith.constant 0 : index
    %4 = vector.load %arg3[%c0_2, %c0_3] : memref<16x128xbf16, #tpu.memory_space<vmem>>, vector<16x128xbf16>
    %c0_4 = arith.constant 0 : index
    %c0_5 = arith.constant 0 : index
    %5 = vector.load %arg4[%c0_4, %c0_5] : memref<128x128xbf16, #tpu.memory_space<vmem>>, vector<128x128xbf16>
    %cst = arith.constant dense<0.000000e+00> : vector<16x128xf32>
    %6 = tpu.matmul %4, %5, %cst {dimension_numbers = #tpu.dot_dimension_numbers<[1], [0], [0], [1], [0, 0, 1, 1], [], []>} : vector<16x128xbf16>, vector<128x128xbf16>, vector<16x128xf32> -> vector<16x128xf32>
    %7 = arith.addf %3, %6 : vector<16x128xf32>
    %c0_6 = arith.constant 0 : index
    %c0_7 = arith.constant 0 : index
    %8 = vector.load %arg7[%c0_6, %c0_7] : memref<16x128xf32, #tpu.memory_space<vmem>>, vector<16x128xf32>
    tpu.vector_store %arg7[%c0_6, %c0_7], %7 {strides = array<i32>} : memref<16x128xf32, #tpu.memory_space<vmem>>, vector<16x128xf32>,
    %c0_i32_8 = arith.constant 0 : i32
    %9 = arith.cmpi eq, %arg2, %c0_i32_8 : i32
    %10 = arith.extui %9 : i1 to i32
    %c0_i32_9 = arith.constant 0 : i32
    %11 = arith.cmpi ne, %10, %c0_i32_9 : i32
    scf.if %11 {
      %c0_10 = arith.constant 0 : index
      %c0_11 = arith.constant 0 : index
      %12 = vector.load %arg7[%c0_10, %c0_11] : memref<16x128xf32, #tpu.memory_space<vmem>>, vector<16x128xf32>
      %c0_12 = arith.constant 0 : index
      %c0_13 = arith.constant 0 : index
      %13 = vector.load %arg5[%c0_12, %c0_13] : memref<1x128xf32, #tpu.memory_space<vmem>>, vector<1x128xf32>
      %14 = vector.broadcast %13 : vector<1x128xf32> to vector<16x128xf32>
      %15 = arith.addf %12, %14 : vector<16x128xf32>
      %16 = arith.truncf %15 : vector<16x128xf32> to vector<16x128xbf16>
      %c0_14 = arith.constant 0 : index
      %c0_15 = arith.constant 0 : index
      %17 = vector.load %arg6[%c0_14, %c0_15] : memref<16x128xbf16, #tpu.memory_space<vmem>>, vector<16x128xbf16>
      tpu.vector_store %arg6[%c0_14, %c0_15], %16 {strides = array<i32>} : memref<16x128xbf16, #tpu.memory_space<vmem>>, vector<16x128xbf16>,
    } else {
    }
    return
  }
  func.func @transform_0(%arg0: i32, %arg1: i32, %arg2: i32) -> (i32, i32) {
    %c0_i32 = arith.constant 0 : i32
    return %arg0, %arg2 : i32, i32
  }
  func.func @transform_1(%arg0: i32, %arg1: i32, %arg2: i32) -> (i32, i32) {
    %c0_i32 = arith.constant 0 : i32
    return %arg2, %arg1 : i32, i32
  }
  func.func @transform_2(%arg0: i32, %arg1: i32, %arg2: i32) -> (i32, i32) {
    %c0_i32 = arith.constant 0 : i32
    %c0_i32_0 = arith.constant 0 : i32
    return %c0_i32, %arg1 : i32, i32
  }
  func.func @transform_3(%arg0: i32, %arg1: i32, %arg2: i32) -> (i32, i32) {
    %c0_i32 = arith.constant 0 : i32
    return %arg0, %arg1 : i32, i32
  }
}

module attributes {stable_mosaic.version = 11 : i64} {
  func.func @_ffn_add_ln_kernel(%arg0: i32, %arg1: i32, %arg2: memref<16x128xbf16, #tpu.memory_space<vmem>>, %arg3: memref<128x256xbf16, #tpu.memory_space<vmem>>, %arg4: memref<1x256xf32, #tpu.memory_space<vmem>>, %arg5: memref<256x128xbf16, #tpu.memory_space<vmem>>, %arg6: memref<1x128xf32, #tpu.memory_space<vmem>>, %arg7: memref<1x128xf32, #tpu.memory_space<vmem>>, %arg8: memref<1x128xf32, #tpu.memory_space<vmem>>, %arg9: memref<16x128xbf16, #tpu.memory_space<vmem>>, %arg10: memref<16x128xf32, #tpu.memory_space<vmem>>) attributes {dimension_semantics = [#tpu.dimension_semantics<parallel>, #tpu.dimension_semantics<arbitrary>], iteration_bounds = array<i64: 1, 1>, scalar_prefetch = 0 : i64, scratch_operands = 1 : i64, tpu.core_type = #tpu.core_type<tc>, window_params = [{transform_indices = @transform_0, window_bounds = array<i64: 16, 128>}, {transform_indices = @transform_1, window_bounds = array<i64: 128, 256>}, {transform_indices = @transform_2, window_bounds = array<i64: 1, 256>}, {transform_indices = @transform_3, window_bounds = array<i64: 256, 128>}, {pipeline_mode = #tpu.pipeline_mode<synchronous>, transform_indices = @transform_4, window_bounds = array<i64: 1, 128>}, {pipeline_mode = #tpu.pipeline_mode<synchronous>, transform_indices = @transform_5, window_bounds = array<i64: 1, 128>}, {pipeline_mode = #tpu.pipeline_mode<synchronous>, transform_indices = @transform_6, window_bounds = array<i64: 1, 128>}, {transform_indices = @transform_7, window_bounds = array<i64: 16, 128>}]} {
    %c0_i32 = arith.constant 0 : i32
    %0 = arith.cmpi eq, %arg1, %c0_i32 : i32
    %1 = arith.extui %0 : i1 to i32
    %c0_i32_0 = arith.constant 0 : i32
    %2 = arith.cmpi ne, %1, %c0_i32_0 : i32
    scf.if %2 {
      %cst_16 = arith.constant 0.000000e+00 : f32
      %20 = vector.broadcast %cst_16 : f32 to vector<16x128xf32>
      %c0_17 = arith.constant 0 : index
      %c0_18 = arith.constant 0 : index
      %21 = vector.load %arg10[%c0_17, %c0_18] : memref<16x128xf32, #tpu.memory_space<vmem>>, vector<16x128xf32>
      tpu.vector_store %arg10[%c0_17, %c0_18], %20 {strides = array<i32>} : memref<16x128xf32, #tpu.memory_space<vmem>>, vector<16x128xf32>,
    } else {
    }
    %c0 = arith.constant 0 : index
    %c0_1 = arith.constant 0 : index
    %3 = vector.load %arg2[%c0, %c0_1] : memref<16x128xbf16, #tpu.memory_space<vmem>>, vector<16x128xbf16>
    %c0_2 = arith.constant 0 : index
    %c0_3 = arith.constant 0 : index
    %4 = vector.load %arg3[%c0_2, %c0_3] : memref<128x256xbf16, #tpu.memory_space<vmem>>, vector<128x256xbf16>
    %cst = arith.constant dense<0.000000e+00> : vector<16x256xf32>
    %5 = tpu.matmul %3, %4, %cst {dimension_numbers = #tpu.dot_dimension_numbers<[1], [0], [0], [1], [0, 0, 1, 1], [], []>} : vector<16x128xbf16>, vector<128x256xbf16>, vector<16x256xf32> -> vector<16x256xf32>
    %c0_4 = arith.constant 0 : index
    %c0_5 = arith.constant 0 : index
    %6 = vector.load %arg4[%c0_4, %c0_5] : memref<1x256xf32, #tpu.memory_space<vmem>>, vector<1x256xf32>
    %7 = vector.broadcast %6 : vector<1x256xf32> to vector<16x256xf32>
    %8 = arith.addf %5, %7 : vector<16x256xf32>
    %cst_6 = arith.constant 0.000000e+00 : f32
    %9 = vector.broadcast %cst_6 : f32 to vector<16x256xf32>
    %10 = arith.maximumf %8, %9 : vector<16x256xf32>
    %c0_7 = arith.constant 0 : index
    %c0_8 = arith.constant 0 : index
    %11 = vector.load %arg10[%c0_7, %c0_8] : memref<16x128xf32, #tpu.memory_space<vmem>>, vector<16x128xf32>
    %12 = arith.truncf %10 : vector<16x256xf32> to vector<16x256xbf16>
    %c0_9 = arith.constant 0 : index
    %c0_10 = arith.constant 0 : index
    %13 = vector.load %arg5[%c0_9, %c0_10] : memref<256x128xbf16, #tpu.memory_space<vmem>>, vector<256x128xbf16>
    %cst_11 = arith.constant dense<0.000000e+00> : vector<16x128xf32>
    %14 = tpu.matmul %12, %13, %cst_11 {dimension_numbers = #tpu.dot_dimension_numbers<[1], [0], [0], [1], [0, 0, 1, 1], [], []>} : vector<16x256xbf16>, vector<256x128xbf16>, vector<16x128xf32> -> vector<16x128xf32>
    %15 = arith.addf %11, %14 : vector<16x128xf32>
    %c0_12 = arith.constant 0 : index
    %c0_13 = arith.constant 0 : index
    %16 = vector.load %arg10[%c0_12, %c0_13] : memref<16x128xf32, #tpu.memory_space<vmem>>, vector<16x128xf32>
    tpu.vector_store %arg10[%c0_12, %c0_13], %15 {strides = array<i32>} : memref<16x128xf32, #tpu.memory_space<vmem>>, vector<16x128xf32>,
    %c0_i32_14 = arith.constant 0 : i32
    %17 = arith.cmpi eq, %arg1, %c0_i32_14 : i32
    %18 = arith.extui %17 : i1 to i32
    %c0_i32_15 = arith.constant 0 : i32
    %19 = arith.cmpi ne, %18, %c0_i32_15 : i32
    scf.if %19 {
      %c0_16 = arith.constant 0 : index
      %c0_17 = arith.constant 0 : index
      %20 = vector.load %arg10[%c0_16, %c0_17] : memref<16x128xf32, #tpu.memory_space<vmem>>, vector<16x128xf32>
      %c0_18 = arith.constant 0 : index
      %c0_19 = arith.constant 0 : index
      %21 = vector.load %arg6[%c0_18, %c0_19] : memref<1x128xf32, #tpu.memory_space<vmem>>, vector<1x128xf32>
      %22 = vector.broadcast %21 : vector<1x128xf32> to vector<16x128xf32>
      %23 = arith.addf %20, %22 : vector<16x128xf32>
      %24 = arith.extf %3 : vector<16x128xbf16> to vector<16x128xf32>
      %25 = arith.addf %23, %24 : vector<16x128xf32>
      %cst_20 = arith.constant dense<0.000000e+00> : vector<16xf32>
      %26 = vector.multi_reduction <add>, %25, %cst_20 [1] : vector<16x128xf32> to vector<16xf32>
      %27 = vector.shape_cast %26 : vector<16xf32> to vector<16x1xf32>
      %cst_21 = arith.constant 1.280000e+02 : f32
      %28 = vector.broadcast %cst_21 : f32 to vector<16x1xf32>
      %29 = arith.divf %27, %28 : vector<16x1xf32>
      %30 = vector.broadcast %29 : vector<16x1xf32> to vector<16x128xf32>
      %31 = arith.subf %25, %30 : vector<16x128xf32>
      %32 = arith.mulf %31, %31 : vector<16x128xf32>
      %cst_22 = arith.constant dense<0.000000e+00> : vector<16xf32>
      %33 = vector.multi_reduction <add>, %32, %cst_22 [1] : vector<16x128xf32> to vector<16xf32>
      %34 = vector.shape_cast %33 : vector<16xf32> to vector<16x1xf32>
      %cst_23 = arith.constant 1.280000e+02 : f32
      %35 = vector.broadcast %cst_23 : f32 to vector<16x1xf32>
      %36 = arith.divf %34, %35 : vector<16x1xf32>
      %cst_24 = arith.constant 9.99999974E-6 : f32
      %37 = vector.broadcast %cst_24 : f32 to vector<16x1xf32>
      %38 = arith.addf %36, %37 : vector<16x1xf32>
      %39 = math.rsqrt %38 : vector<16x1xf32>
      %40 = vector.broadcast %39 : vector<16x1xf32> to vector<16x128xf32>
      %41 = arith.mulf %31, %40 : vector<16x128xf32>
      %c0_25 = arith.constant 0 : index
      %c0_26 = arith.constant 0 : index
      %42 = vector.load %arg7[%c0_25, %c0_26] : memref<1x128xf32, #tpu.memory_space<vmem>>, vector<1x128xf32>
      %43 = vector.broadcast %42 : vector<1x128xf32> to vector<16x128xf32>
      %44 = arith.mulf %41, %43 : vector<16x128xf32>
      %c0_27 = arith.constant 0 : index
      %c0_28 = arith.constant 0 : index
      %45 = vector.load %arg8[%c0_27, %c0_28] : memref<1x128xf32, #tpu.memory_space<vmem>>, vector<1x128xf32>
      %46 = vector.broadcast %45 : vector<1x128xf32> to vector<16x128xf32>
      %47 = arith.addf %44, %46 : vector<16x128xf32>
      %48 = arith.truncf %47 : vector<16x128xf32> to vector<16x128xbf16>
      %c0_29 = arith.constant 0 : index
      %c0_30 = arith.constant 0 : index
      %49 = vector.load %arg9[%c0_29, %c0_30] : memref<16x128xbf16, #tpu.memory_space<vmem>>, vector<16x128xbf16>
      tpu.vector_store %arg9[%c0_29, %c0_30], %48 {strides = array<i32>} : memref<16x128xbf16, #tpu.memory_space<vmem>>, vector<16x128xbf16>,
    } else {
    }
    return
  }
  func.func @transform_0(%arg0: i32, %arg1: i32) -> (i32, i32) {
    %c0_i32 = arith.constant 0 : i32
    %c0_i32_0 = arith.constant 0 : i32
    return %arg0, %c0_i32 : i32, i32
  }
  func.func @transform_1(%arg0: i32, %arg1: i32) -> (i32, i32) {
    %c0_i32 = arith.constant 0 : i32
    %c0_i32_0 = arith.constant 0 : i32
    return %c0_i32, %arg1 : i32, i32
  }
  func.func @transform_2(%arg0: i32, %arg1: i32) -> (i32, i32) {
    %c0_i32 = arith.constant 0 : i32
    %c0_i32_0 = arith.constant 0 : i32
    return %c0_i32, %arg1 : i32, i32
  }
  func.func @transform_3(%arg0: i32, %arg1: i32) -> (i32, i32) {
    %c0_i32 = arith.constant 0 : i32
    %c0_i32_0 = arith.constant 0 : i32
    return %arg1, %c0_i32 : i32, i32
  }
  func.func @transform_4(%arg0: i32, %arg1: i32) -> (i32, i32) {
    %c0_i32 = arith.constant 0 : i32
    %c0_i32_0 = arith.constant 0 : i32
    %c0_i32_1 = arith.constant 0 : i32
    return %c0_i32, %c0_i32_0 : i32, i32
  }
  func.func @transform_5(%arg0: i32, %arg1: i32) -> (i32, i32) {
    %c0_i32 = arith.constant 0 : i32
    %c0_i32_0 = arith.constant 0 : i32
    %c0_i32_1 = arith.constant 0 : i32
    return %c0_i32, %c0_i32_0 : i32, i32
  }
  func.func @transform_6(%arg0: i32, %arg1: i32) -> (i32, i32) {
    %c0_i32 = arith.constant 0 : i32
    %c0_i32_0 = arith.constant 0 : i32
    %c0_i32_1 = arith.constant 0 : i32
    return %c0_i32, %c0_i32_0 : i32, i32
  }
  func.func @transform_7(%arg0: i32, %arg1: i32) -> (i32, i32) {
    %c0_i32 = arith.constant 0 : i32
    %c0_i32_0 = arith.constant 0 : i32
    return %arg0, %c0_i32 : i32, i32
  }
}

module attributes {stable_mosaic.version = 11 : i64} {
  func.func @_linear_kernel(%arg0: i32, %arg1: i32, %arg2: i32, %arg3: memref<16x128xbf16, #tpu.memory_space<vmem>>, %arg4: memref<128x256xbf16, #tpu.memory_space<vmem>>, %arg5: memref<1x256xf32, #tpu.memory_space<vmem>>, %arg6: memref<16x256xbf16, #tpu.memory_space<vmem>>, %arg7: memref<16x256xf32, #tpu.memory_space<vmem>>) attributes {dimension_semantics = [#tpu.dimension_semantics<parallel>, #tpu.dimension_semantics<parallel>, #tpu.dimension_semantics<arbitrary>], iteration_bounds = array<i64: 1, 1, 1>, scalar_prefetch = 0 : i64, scratch_operands = 1 : i64, tpu.core_type = #tpu.core_type<tc>, window_params = [{transform_indices = @transform_0, window_bounds = array<i64: 16, 128>}, {transform_indices = @transform_1, window_bounds = array<i64: 128, 256>}, {transform_indices = @transform_2, window_bounds = array<i64: 1, 256>}, {transform_indices = @transform_3, window_bounds = array<i64: 16, 256>}]} {
    %c0_i32 = arith.constant 0 : i32
    %0 = arith.cmpi eq, %arg2, %c0_i32 : i32
    %1 = arith.extui %0 : i1 to i32
    %c0_i32_0 = arith.constant 0 : i32
    %2 = arith.cmpi ne, %1, %c0_i32_0 : i32
    scf.if %2 {
      %cst_10 = arith.constant 0.000000e+00 : f32
      %12 = vector.broadcast %cst_10 : f32 to vector<16x256xf32>
      %c0_11 = arith.constant 0 : index
      %c0_12 = arith.constant 0 : index
      %13 = vector.load %arg7[%c0_11, %c0_12] : memref<16x256xf32, #tpu.memory_space<vmem>>, vector<16x256xf32>
      tpu.vector_store %arg7[%c0_11, %c0_12], %12 {strides = array<i32>} : memref<16x256xf32, #tpu.memory_space<vmem>>, vector<16x256xf32>,
    } else {
    }
    %c0 = arith.constant 0 : index
    %c0_1 = arith.constant 0 : index
    %3 = vector.load %arg7[%c0, %c0_1] : memref<16x256xf32, #tpu.memory_space<vmem>>, vector<16x256xf32>
    %c0_2 = arith.constant 0 : index
    %c0_3 = arith.constant 0 : index
    %4 = vector.load %arg3[%c0_2, %c0_3] : memref<16x128xbf16, #tpu.memory_space<vmem>>, vector<16x128xbf16>
    %c0_4 = arith.constant 0 : index
    %c0_5 = arith.constant 0 : index
    %5 = vector.load %arg4[%c0_4, %c0_5] : memref<128x256xbf16, #tpu.memory_space<vmem>>, vector<128x256xbf16>
    %cst = arith.constant dense<0.000000e+00> : vector<16x256xf32>
    %6 = tpu.matmul %4, %5, %cst {dimension_numbers = #tpu.dot_dimension_numbers<[1], [0], [0], [1], [0, 0, 1, 1], [], []>} : vector<16x128xbf16>, vector<128x256xbf16>, vector<16x256xf32> -> vector<16x256xf32>
    %7 = arith.addf %3, %6 : vector<16x256xf32>
    %c0_6 = arith.constant 0 : index
    %c0_7 = arith.constant 0 : index
    %8 = vector.load %arg7[%c0_6, %c0_7] : memref<16x256xf32, #tpu.memory_space<vmem>>, vector<16x256xf32>
    tpu.vector_store %arg7[%c0_6, %c0_7], %7 {strides = array<i32>} : memref<16x256xf32, #tpu.memory_space<vmem>>, vector<16x256xf32>,
    %c0_i32_8 = arith.constant 0 : i32
    %9 = arith.cmpi eq, %arg2, %c0_i32_8 : i32
    %10 = arith.extui %9 : i1 to i32
    %c0_i32_9 = arith.constant 0 : i32
    %11 = arith.cmpi ne, %10, %c0_i32_9 : i32
    scf.if %11 {
      %c0_10 = arith.constant 0 : index
      %c0_11 = arith.constant 0 : index
      %12 = vector.load %arg7[%c0_10, %c0_11] : memref<16x256xf32, #tpu.memory_space<vmem>>, vector<16x256xf32>
      %c0_12 = arith.constant 0 : index
      %c0_13 = arith.constant 0 : index
      %13 = vector.load %arg5[%c0_12, %c0_13] : memref<1x256xf32, #tpu.memory_space<vmem>>, vector<1x256xf32>
      %14 = vector.broadcast %13 : vector<1x256xf32> to vector<16x256xf32>
      %15 = arith.addf %12, %14 : vector<16x256xf32>
      %16 = arith.truncf %15 : vector<16x256xf32> to vector<16x256xbf16>
      %c0_14 = arith.constant 0 : index
      %c0_15 = arith.constant 0 : index
      %17 = vector.load %arg6[%c0_14, %c0_15] : memref<16x256xbf16, #tpu.memory_space<vmem>>, vector<16x256xbf16>
      tpu.vector_store %arg6[%c0_14, %c0_15], %16 {strides = array<i32>} : memref<16x256xbf16, #tpu.memory_space<vmem>>, vector<16x256xbf16>,
    } else {
    }
    return
  }
  func.func @transform_0(%arg0: i32, %arg1: i32, %arg2: i32) -> (i32, i32) {
    %c0_i32 = arith.constant 0 : i32
    return %arg0, %arg2 : i32, i32
  }
  func.func @transform_1(%arg0: i32, %arg1: i32, %arg2: i32) -> (i32, i32) {
    %c0_i32 = arith.constant 0 : i32
    return %arg2, %arg1 : i32, i32
  }
  func.func @transform_2(%arg0: i32, %arg1: i32, %arg2: i32) -> (i32, i32) {
    %c0_i32 = arith.constant 0 : i32
    %c0_i32_0 = arith.constant 0 : i32
    return %c0_i32, %arg1 : i32, i32
  }
  func.func @transform_3(%arg0: i32, %arg1: i32, %arg2: i32) -> (i32, i32) {
    %c0_i32 = arith.constant 0 : i32
    return %arg0, %arg1 : i32, i32
  }
}

module attributes {stable_mosaic.version = 11 : i64} {
  func.func @_ln_kernel(%arg0: i32, %arg1: memref<16x128xbf16, #tpu.memory_space<vmem>>, %arg2: memref<1x128xf32, #tpu.memory_space<vmem>>, %arg3: memref<1x128xf32, #tpu.memory_space<vmem>>, %arg4: memref<16x128xbf16, #tpu.memory_space<vmem>>) attributes {dimension_semantics = [#tpu.dimension_semantics<parallel>], iteration_bounds = array<i64: 1>, scalar_prefetch = 0 : i64, scratch_operands = 0 : i64, tpu.core_type = #tpu.core_type<tc>, window_params = [{transform_indices = @transform_0, window_bounds = array<i64: 16, 128>}, {pipeline_mode = #tpu.pipeline_mode<synchronous>, transform_indices = @transform_1, window_bounds = array<i64: 1, 128>}, {pipeline_mode = #tpu.pipeline_mode<synchronous>, transform_indices = @transform_2, window_bounds = array<i64: 1, 128>}, {transform_indices = @transform_3, window_bounds = array<i64: 16, 128>}]} {
    %c0 = arith.constant 0 : index
    %c0_0 = arith.constant 0 : index
    %0 = vector.load %arg1[%c0, %c0_0] : memref<16x128xbf16, #tpu.memory_space<vmem>>, vector<16x128xbf16>
    %1 = arith.extf %0 : vector<16x128xbf16> to vector<16x128xf32>
    %cst = arith.constant dense<0.000000e+00> : vector<16xf32>
    %2 = vector.multi_reduction <add>, %1, %cst [1] : vector<16x128xf32> to vector<16xf32>
    %3 = vector.shape_cast %2 : vector<16xf32> to vector<16x1xf32>
    %cst_1 = arith.constant 1.280000e+02 : f32
    %4 = vector.broadcast %cst_1 : f32 to vector<16x1xf32>
    %5 = arith.divf %3, %4 : vector<16x1xf32>
    %6 = vector.broadcast %5 : vector<16x1xf32> to vector<16x128xf32>
    %7 = arith.subf %1, %6 : vector<16x128xf32>
    %8 = arith.mulf %7, %7 : vector<16x128xf32>
    %cst_2 = arith.constant dense<0.000000e+00> : vector<16xf32>
    %9 = vector.multi_reduction <add>, %8, %cst_2 [1] : vector<16x128xf32> to vector<16xf32>
    %10 = vector.shape_cast %9 : vector<16xf32> to vector<16x1xf32>
    %cst_3 = arith.constant 1.280000e+02 : f32
    %11 = vector.broadcast %cst_3 : f32 to vector<16x1xf32>
    %12 = arith.divf %10, %11 : vector<16x1xf32>
    %cst_4 = arith.constant 9.99999974E-6 : f32
    %13 = vector.broadcast %cst_4 : f32 to vector<16x1xf32>
    %14 = arith.addf %12, %13 : vector<16x1xf32>
    %15 = math.rsqrt %14 : vector<16x1xf32>
    %16 = vector.broadcast %15 : vector<16x1xf32> to vector<16x128xf32>
    %17 = arith.mulf %7, %16 : vector<16x128xf32>
    %c0_5 = arith.constant 0 : index
    %c0_6 = arith.constant 0 : index
    %18 = vector.load %arg2[%c0_5, %c0_6] : memref<1x128xf32, #tpu.memory_space<vmem>>, vector<1x128xf32>
    %19 = vector.broadcast %18 : vector<1x128xf32> to vector<16x128xf32>
    %20 = arith.mulf %17, %19 : vector<16x128xf32>
    %c0_7 = arith.constant 0 : index
    %c0_8 = arith.constant 0 : index
    %21 = vector.load %arg3[%c0_7, %c0_8] : memref<1x128xf32, #tpu.memory_space<vmem>>, vector<1x128xf32>
    %22 = vector.broadcast %21 : vector<1x128xf32> to vector<16x128xf32>
    %23 = arith.addf %20, %22 : vector<16x128xf32>
    %24 = arith.truncf %23 : vector<16x128xf32> to vector<16x128xbf16>
    %c0_9 = arith.constant 0 : index
    %c0_10 = arith.constant 0 : index
    %25 = vector.load %arg4[%c0_9, %c0_10] : memref<16x128xbf16, #tpu.memory_space<vmem>>, vector<16x128xbf16>
    tpu.vector_store %arg4[%c0_9, %c0_10], %24 {strides = array<i32>} : memref<16x128xbf16, #tpu.memory_space<vmem>>, vector<16x128xbf16>,
    return
  }
  func.func @transform_0(%arg0: i32) -> (i32, i32) {
    %c0_i32 = arith.constant 0 : i32
    %c0_i32_0 = arith.constant 0 : i32
    return %arg0, %c0_i32 : i32, i32
  }
  func.func @transform_1(%arg0: i32) -> (i32, i32) {
    %c0_i32 = arith.constant 0 : i32
    %c0_i32_0 = arith.constant 0 : i32
    %c0_i32_1 = arith.constant 0 : i32
    return %c0_i32, %c0_i32_0 : i32, i32
  }
  func.func @transform_2(%arg0: i32) -> (i32, i32) {
    %c0_i32 = arith.constant 0 : i32
    %c0_i32_0 = arith.constant 0 : i32
    %c0_i32_1 = arith.constant 0 : i32
    return %c0_i32, %c0_i32_0 : i32, i32
  }
  func.func @transform_3(%arg0: i32) -> (i32, i32) {
    %c0_i32 = arith.constant 0 : i32
    %c0_i32_0 = arith.constant 0 : i32
    return %arg0, %c0_i32 : i32, i32
  }
}

module attributes {stable_mosaic.version = 11 : i64} {
  func.func @_proj_add_ln_kernel(%arg0: i32, %arg1: memref<16x128xbf16, #tpu.memory_space<vmem>>, %arg2: memref<128x128xbf16, #tpu.memory_space<vmem>>, %arg3: memref<1x128xf32, #tpu.memory_space<vmem>>, %arg4: memref<16x128xbf16, #tpu.memory_space<vmem>>, %arg5: memref<1x128xf32, #tpu.memory_space<vmem>>, %arg6: memref<1x128xf32, #tpu.memory_space<vmem>>, %arg7: memref<16x128xbf16, #tpu.memory_space<vmem>>) attributes {dimension_semantics = [#tpu.dimension_semantics<parallel>], iteration_bounds = array<i64: 1>, scalar_prefetch = 0 : i64, scratch_operands = 0 : i64, tpu.core_type = #tpu.core_type<tc>, window_params = [{transform_indices = @transform_0, window_bounds = array<i64: 16, 128>}, {pipeline_mode = #tpu.pipeline_mode<synchronous>, transform_indices = @transform_1, window_bounds = array<i64: 128, 128>}, {pipeline_mode = #tpu.pipeline_mode<synchronous>, transform_indices = @transform_2, window_bounds = array<i64: 1, 128>}, {transform_indices = @transform_3, window_bounds = array<i64: 16, 128>}, {pipeline_mode = #tpu.pipeline_mode<synchronous>, transform_indices = @transform_4, window_bounds = array<i64: 1, 128>}, {pipeline_mode = #tpu.pipeline_mode<synchronous>, transform_indices = @transform_5, window_bounds = array<i64: 1, 128>}, {transform_indices = @transform_6, window_bounds = array<i64: 16, 128>}]} {
    %c0 = arith.constant 0 : index
    %c0_0 = arith.constant 0 : index
    %0 = vector.load %arg1[%c0, %c0_0] : memref<16x128xbf16, #tpu.memory_space<vmem>>, vector<16x128xbf16>
    %c0_1 = arith.constant 0 : index
    %c0_2 = arith.constant 0 : index
    %1 = vector.load %arg2[%c0_1, %c0_2] : memref<128x128xbf16, #tpu.memory_space<vmem>>, vector<128x128xbf16>
    %cst = arith.constant dense<0.000000e+00> : vector<16x128xf32>
    %2 = tpu.matmul %0, %1, %cst {dimension_numbers = #tpu.dot_dimension_numbers<[1], [0], [0], [1], [0, 0, 1, 1], [], []>} : vector<16x128xbf16>, vector<128x128xbf16>, vector<16x128xf32> -> vector<16x128xf32>
    %c0_3 = arith.constant 0 : index
    %c0_4 = arith.constant 0 : index
    %3 = vector.load %arg3[%c0_3, %c0_4] : memref<1x128xf32, #tpu.memory_space<vmem>>, vector<1x128xf32>
    %4 = vector.broadcast %3 : vector<1x128xf32> to vector<16x128xf32>
    %5 = arith.addf %2, %4 : vector<16x128xf32>
    %c0_5 = arith.constant 0 : index
    %c0_6 = arith.constant 0 : index
    %6 = vector.load %arg4[%c0_5, %c0_6] : memref<16x128xbf16, #tpu.memory_space<vmem>>, vector<16x128xbf16>
    %7 = arith.extf %6 : vector<16x128xbf16> to vector<16x128xf32>
    %8 = arith.addf %5, %7 : vector<16x128xf32>
    %cst_7 = arith.constant dense<0.000000e+00> : vector<16xf32>
    %9 = vector.multi_reduction <add>, %8, %cst_7 [1] : vector<16x128xf32> to vector<16xf32>
    %10 = vector.shape_cast %9 : vector<16xf32> to vector<16x1xf32>
    %cst_8 = arith.constant 1.280000e+02 : f32
    %11 = vector.broadcast %cst_8 : f32 to vector<16x1xf32>
    %12 = arith.divf %10, %11 : vector<16x1xf32>
    %13 = vector.broadcast %12 : vector<16x1xf32> to vector<16x128xf32>
    %14 = arith.subf %8, %13 : vector<16x128xf32>
    %15 = arith.mulf %14, %14 : vector<16x128xf32>
    %cst_9 = arith.constant dense<0.000000e+00> : vector<16xf32>
    %16 = vector.multi_reduction <add>, %15, %cst_9 [1] : vector<16x128xf32> to vector<16xf32>
    %17 = vector.shape_cast %16 : vector<16xf32> to vector<16x1xf32>
    %cst_10 = arith.constant 1.280000e+02 : f32
    %18 = vector.broadcast %cst_10 : f32 to vector<16x1xf32>
    %19 = arith.divf %17, %18 : vector<16x1xf32>
    %cst_11 = arith.constant 9.99999974E-6 : f32
    %20 = vector.broadcast %cst_11 : f32 to vector<16x1xf32>
    %21 = arith.addf %19, %20 : vector<16x1xf32>
    %22 = math.rsqrt %21 : vector<16x1xf32>
    %23 = vector.broadcast %22 : vector<16x1xf32> to vector<16x128xf32>
    %24 = arith.mulf %14, %23 : vector<16x128xf32>
    %c0_12 = arith.constant 0 : index
    %c0_13 = arith.constant 0 : index
    %25 = vector.load %arg5[%c0_12, %c0_13] : memref<1x128xf32, #tpu.memory_space<vmem>>, vector<1x128xf32>
    %26 = vector.broadcast %25 : vector<1x128xf32> to vector<16x128xf32>
    %27 = arith.mulf %24, %26 : vector<16x128xf32>
    %c0_14 = arith.constant 0 : index
    %c0_15 = arith.constant 0 : index
    %28 = vector.load %arg6[%c0_14, %c0_15] : memref<1x128xf32, #tpu.memory_space<vmem>>, vector<1x128xf32>
    %29 = vector.broadcast %28 : vector<1x128xf32> to vector<16x128xf32>
    %30 = arith.addf %27, %29 : vector<16x128xf32>
    %31 = arith.truncf %30 : vector<16x128xf32> to vector<16x128xbf16>
    %c0_16 = arith.constant 0 : index
    %c0_17 = arith.constant 0 : index
    %32 = vector.load %arg7[%c0_16, %c0_17] : memref<16x128xbf16, #tpu.memory_space<vmem>>, vector<16x128xbf16>
    tpu.vector_store %arg7[%c0_16, %c0_17], %31 {strides = array<i32>} : memref<16x128xbf16, #tpu.memory_space<vmem>>, vector<16x128xbf16>,
    return
  }
  func.func @transform_0(%arg0: i32) -> (i32, i32) {
    %c0_i32 = arith.constant 0 : i32
    %c0_i32_0 = arith.constant 0 : i32
    return %arg0, %c0_i32 : i32, i32
  }
  func.func @transform_1(%arg0: i32) -> (i32, i32) {
    %c0_i32 = arith.constant 0 : i32
    %c0_i32_0 = arith.constant 0 : i32
    %c0_i32_1 = arith.constant 0 : i32
    return %c0_i32, %c0_i32_0 : i32, i32
  }
  func.func @transform_2(%arg0: i32) -> (i32, i32) {
    %c0_i32 = arith.constant 0 : i32
    %c0_i32_0 = arith.constant 0 : i32
    %c0_i32_1 = arith.constant 0 : i32
    return %c0_i32, %c0_i32_0 : i32, i32
  }
  func.func @transform_3(%arg0: i32) -> (i32, i32) {
    %c0_i32 = arith.constant 0 : i32
    %c0_i32_0 = arith.constant 0 : i32
    return %arg0, %c0_i32 : i32, i32
  }
  func.func @transform_4(%arg0: i32) -> (i32, i32) {
    %c0_i32 = arith.constant 0 : i32
    %c0_i32_0 = arith.constant 0 : i32
    %c0_i32_1 = arith.constant 0 : i32
    return %c0_i32, %c0_i32_0 : i32, i32
  }
  func.func @transform_5(%arg0: i32) -> (i32, i32) {
    %c0_i32 = arith.constant 0 : i32
    %c0_i32_0 = arith.constant 0 : i32
    %c0_i32_1 = arith.constant 0 : i32
    return %c0_i32, %c0_i32_0 : i32, i32
  }
  func.func @transform_6(%arg0: i32) -> (i32, i32) {
    %c0_i32 = arith.constant 0 : i32
    %c0_i32_0 = arith.constant 0 : i32
    return %arg0, %c0_i32 : i32, i32
  }
}

module attributes {stable_mosaic.version = 11 : i64} {
  func.func @_ffn_add_ln_kernel(%arg0: i32, %arg1: i32, %arg2: memref<16x128xbf16, #tpu.memory_space<vmem>>, %arg3: memref<128x256xbf16, #tpu.memory_space<vmem>>, %arg4: memref<1x256xf32, #tpu.memory_space<vmem>>, %arg5: memref<256x128xbf16, #tpu.memory_space<vmem>>, %arg6: memref<1x128xf32, #tpu.memory_space<vmem>>, %arg7: memref<1x128xf32, #tpu.memory_space<vmem>>, %arg8: memref<1x128xf32, #tpu.memory_space<vmem>>, %arg9: memref<16x128xbf16, #tpu.memory_space<vmem>>, %arg10: memref<16x128xf32, #tpu.memory_space<vmem>>) attributes {dimension_semantics = [#tpu.dimension_semantics<parallel>, #tpu.dimension_semantics<arbitrary>], iteration_bounds = array<i64: 1, 1>, scalar_prefetch = 0 : i64, scratch_operands = 1 : i64, tpu.core_type = #tpu.core_type<tc>, window_params = [{transform_indices = @transform_0, window_bounds = array<i64: 16, 128>}, {transform_indices = @transform_1, window_bounds = array<i64: 128, 256>}, {transform_indices = @transform_2, window_bounds = array<i64: 1, 256>}, {transform_indices = @transform_3, window_bounds = array<i64: 256, 128>}, {pipeline_mode = #tpu.pipeline_mode<synchronous>, transform_indices = @transform_4, window_bounds = array<i64: 1, 128>}, {pipeline_mode = #tpu.pipeline_mode<synchronous>, transform_indices = @transform_5, window_bounds = array<i64: 1, 128>}, {pipeline_mode = #tpu.pipeline_mode<synchronous>, transform_indices = @transform_6, window_bounds = array<i64: 1, 128>}, {transform_indices = @transform_7, window_bounds = array<i64: 16, 128>}]} {
    %c0_i32 = arith.constant 0 : i32
    %0 = arith.cmpi eq, %arg1, %c0_i32 : i32
    %1 = arith.extui %0 : i1 to i32
    %c0_i32_0 = arith.constant 0 : i32
    %2 = arith.cmpi ne, %1, %c0_i32_0 : i32
    scf.if %2 {
      %cst_16 = arith.constant 0.000000e+00 : f32
      %20 = vector.broadcast %cst_16 : f32 to vector<16x128xf32>
      %c0_17 = arith.constant 0 : index
      %c0_18 = arith.constant 0 : index
      %21 = vector.load %arg10[%c0_17, %c0_18] : memref<16x128xf32, #tpu.memory_space<vmem>>, vector<16x128xf32>
      tpu.vector_store %arg10[%c0_17, %c0_18], %20 {strides = array<i32>} : memref<16x128xf32, #tpu.memory_space<vmem>>, vector<16x128xf32>,
    } else {
    }
    %c0 = arith.constant 0 : index
    %c0_1 = arith.constant 0 : index
    %3 = vector.load %arg2[%c0, %c0_1] : memref<16x128xbf16, #tpu.memory_space<vmem>>, vector<16x128xbf16>
    %c0_2 = arith.constant 0 : index
    %c0_3 = arith.constant 0 : index
    %4 = vector.load %arg3[%c0_2, %c0_3] : memref<128x256xbf16, #tpu.memory_space<vmem>>, vector<128x256xbf16>
    %cst = arith.constant dense<0.000000e+00> : vector<16x256xf32>
    %5 = tpu.matmul %3, %4, %cst {dimension_numbers = #tpu.dot_dimension_numbers<[1], [0], [0], [1], [0, 0, 1, 1], [], []>} : vector<16x128xbf16>, vector<128x256xbf16>, vector<16x256xf32> -> vector<16x256xf32>
    %c0_4 = arith.constant 0 : index
    %c0_5 = arith.constant 0 : index
    %6 = vector.load %arg4[%c0_4, %c0_5] : memref<1x256xf32, #tpu.memory_space<vmem>>, vector<1x256xf32>
    %7 = vector.broadcast %6 : vector<1x256xf32> to vector<16x256xf32>
    %8 = arith.addf %5, %7 : vector<16x256xf32>
    %cst_6 = arith.constant 0.000000e+00 : f32
    %9 = vector.broadcast %cst_6 : f32 to vector<16x256xf32>
    %10 = arith.maximumf %8, %9 : vector<16x256xf32>
    %c0_7 = arith.constant 0 : index
    %c0_8 = arith.constant 0 : index
    %11 = vector.load %arg10[%c0_7, %c0_8] : memref<16x128xf32, #tpu.memory_space<vmem>>, vector<16x128xf32>
    %12 = arith.truncf %10 : vector<16x256xf32> to vector<16x256xbf16>
    %c0_9 = arith.constant 0 : index
    %c0_10 = arith.constant 0 : index
    %13 = vector.load %arg5[%c0_9, %c0_10] : memref<256x128xbf16, #tpu.memory_space<vmem>>, vector<256x128xbf16>
    %cst_11 = arith.constant dense<0.000000e+00> : vector<16x128xf32>
    %14 = tpu.matmul %12, %13, %cst_11 {dimension_numbers = #tpu.dot_dimension_numbers<[1], [0], [0], [1], [0, 0, 1, 1], [], []>} : vector<16x256xbf16>, vector<256x128xbf16>, vector<16x128xf32> -> vector<16x128xf32>
    %15 = arith.addf %11, %14 : vector<16x128xf32>
    %c0_12 = arith.constant 0 : index
    %c0_13 = arith.constant 0 : index
    %16 = vector.load %arg10[%c0_12, %c0_13] : memref<16x128xf32, #tpu.memory_space<vmem>>, vector<16x128xf32>
    tpu.vector_store %arg10[%c0_12, %c0_13], %15 {strides = array<i32>} : memref<16x128xf32, #tpu.memory_space<vmem>>, vector<16x128xf32>,
    %c0_i32_14 = arith.constant 0 : i32
    %17 = arith.cmpi eq, %arg1, %c0_i32_14 : i32
    %18 = arith.extui %17 : i1 to i32
    %c0_i32_15 = arith.constant 0 : i32
    %19 = arith.cmpi ne, %18, %c0_i32_15 : i32
    scf.if %19 {
      %c0_16 = arith.constant 0 : index
      %c0_17 = arith.constant 0 : index
      %20 = vector.load %arg10[%c0_16, %c0_17] : memref<16x128xf32, #tpu.memory_space<vmem>>, vector<16x128xf32>
      %c0_18 = arith.constant 0 : index
      %c0_19 = arith.constant 0 : index
      %21 = vector.load %arg6[%c0_18, %c0_19] : memref<1x128xf32, #tpu.memory_space<vmem>>, vector<1x128xf32>
      %22 = vector.broadcast %21 : vector<1x128xf32> to vector<16x128xf32>
      %23 = arith.addf %20, %22 : vector<16x128xf32>
      %24 = arith.extf %3 : vector<16x128xbf16> to vector<16x128xf32>
      %25 = arith.addf %23, %24 : vector<16x128xf32>
      %cst_20 = arith.constant dense<0.000000e+00> : vector<16xf32>
      %26 = vector.multi_reduction <add>, %25, %cst_20 [1] : vector<16x128xf32> to vector<16xf32>
      %27 = vector.shape_cast %26 : vector<16xf32> to vector<16x1xf32>
      %cst_21 = arith.constant 1.280000e+02 : f32
      %28 = vector.broadcast %cst_21 : f32 to vector<16x1xf32>
      %29 = arith.divf %27, %28 : vector<16x1xf32>
      %30 = vector.broadcast %29 : vector<16x1xf32> to vector<16x128xf32>
      %31 = arith.subf %25, %30 : vector<16x128xf32>
      %32 = arith.mulf %31, %31 : vector<16x128xf32>
      %cst_22 = arith.constant dense<0.000000e+00> : vector<16xf32>
      %33 = vector.multi_reduction <add>, %32, %cst_22 [1] : vector<16x128xf32> to vector<16xf32>
      %34 = vector.shape_cast %33 : vector<16xf32> to vector<16x1xf32>
      %cst_23 = arith.constant 1.280000e+02 : f32
      %35 = vector.broadcast %cst_23 : f32 to vector<16x1xf32>
      %36 = arith.divf %34, %35 : vector<16x1xf32>
      %cst_24 = arith.constant 9.99999974E-6 : f32
      %37 = vector.broadcast %cst_24 : f32 to vector<16x1xf32>
      %38 = arith.addf %36, %37 : vector<16x1xf32>
      %39 = math.rsqrt %38 : vector<16x1xf32>
      %40 = vector.broadcast %39 : vector<16x1xf32> to vector<16x128xf32>
      %41 = arith.mulf %31, %40 : vector<16x128xf32>
      %c0_25 = arith.constant 0 : index
      %c0_26 = arith.constant 0 : index
      %42 = vector.load %arg7[%c0_25, %c0_26] : memref<1x128xf32, #tpu.memory_space<vmem>>, vector<1x128xf32>
      %43 = vector.broadcast %42 : vector<1x128xf32> to vector<16x128xf32>
      %44 = arith.mulf %41, %43 : vector<16x128xf32>
      %c0_27 = arith.constant 0 : index
      %c0_28 = arith.constant 0 : index
      %45 = vector.load %arg8[%c0_27, %c0_28] : memref<1x128xf32, #tpu.memory_space<vmem>>, vector<1x128xf32>
      %46 = vector.broadcast %45 : vector<1x128xf32> to vector<16x128xf32>
      %47 = arith.addf %44, %46 : vector<16x128xf32>
      %48 = arith.truncf %47 : vector<16x128xf32> to vector<16x128xbf16>
      %c0_29 = arith.constant 0 : index
      %c0_30 = arith.constant 0 : index
      %49 = vector.load %arg9[%c0_29, %c0_30] : memref<16x128xbf16, #tpu.memory_space<vmem>>, vector<16x128xbf16>
      tpu.vector_store %arg9[%c0_29, %c0_30], %48 {strides = array<i32>} : memref<16x128xbf16, #tpu.memory_space<vmem>>, vector<16x128xbf16>,
    } else {
    }
    return
  }
  func.func @transform_0(%arg0: i32, %arg1: i32) -> (i32, i32) {
    %c0_i32 = arith.constant 0 : i32
    %c0_i32_0 = arith.constant 0 : i32
    return %arg0, %c0_i32 : i32, i32
  }
  func.func @transform_1(%arg0: i32, %arg1: i32) -> (i32, i32) {
    %c0_i32 = arith.constant 0 : i32
    %c0_i32_0 = arith.constant 0 : i32
    return %c0_i32, %arg1 : i32, i32
  }
  func.func @transform_2(%arg0: i32, %arg1: i32) -> (i32, i32) {
    %c0_i32 = arith.constant 0 : i32
    %c0_i32_0 = arith.constant 0 : i32
    return %c0_i32, %arg1 : i32, i32
  }
  func.func @transform_3(%arg0: i32, %arg1: i32) -> (i32, i32) {
    %c0_i32 = arith.constant 0 : i32
    %c0_i32_0 = arith.constant 0 : i32
    return %arg1, %c0_i32 : i32, i32
  }
  func.func @transform_4(%arg0: i32, %arg1: i32) -> (i32, i32) {
    %c0_i32 = arith.constant 0 : i32
    %c0_i32_0 = arith.constant 0 : i32
    %c0_i32_1 = arith.constant 0 : i32
    return %c0_i32, %c0_i32_0 : i32, i32
  }
  func.func @transform_5(%arg0: i32, %arg1: i32) -> (i32, i32) {
    %c0_i32 = arith.constant 0 : i32
    %c0_i32_0 = arith.constant 0 : i32
    %c0_i32_1 = arith.constant 0 : i32
    return %c0_i32, %c0_i32_0 : i32, i32
  }
  func.func @transform_6(%arg0: i32, %arg1: i32) -> (i32, i32) {
    %c0_i32 = arith.constant 0 : i32
    %c0_i32_0 = arith.constant 0 : i32
    %c0_i32_1 = arith.constant 0 : i32
    return %c0_i32, %c0_i32_0 : i32, i32
  }
  func.func @transform_7(%arg0: i32, %arg1: i32) -> (i32, i32) {
    %c0_i32 = arith.constant 0 : i32
    %c0_i32_0 = arith.constant 0 : i32
    return %arg0, %c0_i32 : i32, i32
  }
}

module attributes {stable_mosaic.version = 11 : i64} {
  func.func @_linear_kernel(%arg0: i32, %arg1: i32, %arg2: i32, %arg3: memref<16x128xbf16, #tpu.memory_space<vmem>>, %arg4: memref<128x384xbf16, #tpu.memory_space<vmem>>, %arg5: memref<1x384xf32, #tpu.memory_space<vmem>>, %arg6: memref<16x384xbf16, #tpu.memory_space<vmem>>, %arg7: memref<16x384xf32, #tpu.memory_space<vmem>>) attributes {dimension_semantics = [#tpu.dimension_semantics<parallel>, #tpu.dimension_semantics<parallel>, #tpu.dimension_semantics<arbitrary>], iteration_bounds = array<i64: 1, 1, 1>, scalar_prefetch = 0 : i64, scratch_operands = 1 : i64, tpu.core_type = #tpu.core_type<tc>, window_params = [{transform_indices = @transform_0, window_bounds = array<i64: 16, 128>}, {transform_indices = @transform_1, window_bounds = array<i64: 128, 384>}, {transform_indices = @transform_2, window_bounds = array<i64: 1, 384>}, {transform_indices = @transform_3, window_bounds = array<i64: 16, 384>}]} {
    %c0_i32 = arith.constant 0 : i32
    %0 = arith.cmpi eq, %arg2, %c0_i32 : i32
    %1 = arith.extui %0 : i1 to i32
    %c0_i32_0 = arith.constant 0 : i32
    %2 = arith.cmpi ne, %1, %c0_i32_0 : i32
    scf.if %2 {
      %cst_10 = arith.constant 0.000000e+00 : f32
      %12 = vector.broadcast %cst_10 : f32 to vector<16x384xf32>
      %c0_11 = arith.constant 0 : index
      %c0_12 = arith.constant 0 : index
      %13 = vector.load %arg7[%c0_11, %c0_12] : memref<16x384xf32, #tpu.memory_space<vmem>>, vector<16x384xf32>
      tpu.vector_store %arg7[%c0_11, %c0_12], %12 {strides = array<i32>} : memref<16x384xf32, #tpu.memory_space<vmem>>, vector<16x384xf32>,
    } else {
    }
    %c0 = arith.constant 0 : index
    %c0_1 = arith.constant 0 : index
    %3 = vector.load %arg7[%c0, %c0_1] : memref<16x384xf32, #tpu.memory_space<vmem>>, vector<16x384xf32>
    %c0_2 = arith.constant 0 : index
    %c0_3 = arith.constant 0 : index
    %4 = vector.load %arg3[%c0_2, %c0_3] : memref<16x128xbf16, #tpu.memory_space<vmem>>, vector<16x128xbf16>
    %c0_4 = arith.constant 0 : index
    %c0_5 = arith.constant 0 : index
    %5 = vector.load %arg4[%c0_4, %c0_5] : memref<128x384xbf16, #tpu.memory_space<vmem>>, vector<128x384xbf16>
    %cst = arith.constant dense<0.000000e+00> : vector<16x384xf32>
    %6 = tpu.matmul %4, %5, %cst {dimension_numbers = #tpu.dot_dimension_numbers<[1], [0], [0], [1], [0, 0, 1, 1], [], []>} : vector<16x128xbf16>, vector<128x384xbf16>, vector<16x384xf32> -> vector<16x384xf32>
    %7 = arith.addf %3, %6 : vector<16x384xf32>
    %c0_6 = arith.constant 0 : index
    %c0_7 = arith.constant 0 : index
    %8 = vector.load %arg7[%c0_6, %c0_7] : memref<16x384xf32, #tpu.memory_space<vmem>>, vector<16x384xf32>
    tpu.vector_store %arg7[%c0_6, %c0_7], %7 {strides = array<i32>} : memref<16x384xf32, #tpu.memory_space<vmem>>, vector<16x384xf32>,
    %c0_i32_8 = arith.constant 0 : i32
    %9 = arith.cmpi eq, %arg2, %c0_i32_8 : i32
    %10 = arith.extui %9 : i1 to i32
    %c0_i32_9 = arith.constant 0 : i32
    %11 = arith.cmpi ne, %10, %c0_i32_9 : i32
    scf.if %11 {
      %c0_10 = arith.constant 0 : index
      %c0_11 = arith.constant 0 : index
      %12 = vector.load %arg7[%c0_10, %c0_11] : memref<16x384xf32, #tpu.memory_space<vmem>>, vector<16x384xf32>
      %c0_12 = arith.constant 0 : index
      %c0_13 = arith.constant 0 : index
      %13 = vector.load %arg5[%c0_12, %c0_13] : memref<1x384xf32, #tpu.memory_space<vmem>>, vector<1x384xf32>
      %14 = vector.broadcast %13 : vector<1x384xf32> to vector<16x384xf32>
      %15 = arith.addf %12, %14 : vector<16x384xf32>
      %16 = arith.truncf %15 : vector<16x384xf32> to vector<16x384xbf16>
      %c0_14 = arith.constant 0 : index
      %c0_15 = arith.constant 0 : index
      %17 = vector.load %arg6[%c0_14, %c0_15] : memref<16x384xbf16, #tpu.memory_space<vmem>>, vector<16x384xbf16>
      tpu.vector_store %arg6[%c0_14, %c0_15], %16 {strides = array<i32>} : memref<16x384xbf16, #tpu.memory_space<vmem>>, vector<16x384xbf16>,
    } else {
    }
    return
  }
  func.func @transform_0(%arg0: i32, %arg1: i32, %arg2: i32) -> (i32, i32) {
    %c0_i32 = arith.constant 0 : i32
    return %arg0, %arg2 : i32, i32
  }
  func.func @transform_1(%arg0: i32, %arg1: i32, %arg2: i32) -> (i32, i32) {
    %c0_i32 = arith.constant 0 : i32
    return %arg2, %arg1 : i32, i32
  }
  func.func @transform_2(%arg0: i32, %arg1: i32, %arg2: i32) -> (i32, i32) {
    %c0_i32 = arith.constant 0 : i32
    %c0_i32_0 = arith.constant 0 : i32
    return %c0_i32, %arg1 : i32, i32
  }
  func.func @transform_3(%arg0: i32, %arg1: i32, %arg2: i32) -> (i32, i32) {
    %c0_i32 = arith.constant 0 : i32
    return %arg0, %arg1 : i32, i32
  }
}

module attributes {stable_mosaic.version = 11 : i64} {
  func.func @_linear_kernel(%arg0: i32, %arg1: i32, %arg2: i32, %arg3: memref<16x128xbf16, #tpu.memory_space<vmem>>, %arg4: memref<128x128xbf16, #tpu.memory_space<vmem>>, %arg5: memref<1x128xf32, #tpu.memory_space<vmem>>, %arg6: memref<16x128xbf16, #tpu.memory_space<vmem>>, %arg7: memref<16x128xf32, #tpu.memory_space<vmem>>) attributes {dimension_semantics = [#tpu.dimension_semantics<parallel>, #tpu.dimension_semantics<parallel>, #tpu.dimension_semantics<arbitrary>], iteration_bounds = array<i64: 1, 1, 1>, scalar_prefetch = 0 : i64, scratch_operands = 1 : i64, tpu.core_type = #tpu.core_type<tc>, window_params = [{transform_indices = @transform_0, window_bounds = array<i64: 16, 128>}, {transform_indices = @transform_1, window_bounds = array<i64: 128, 128>}, {transform_indices = @transform_2, window_bounds = array<i64: 1, 128>}, {transform_indices = @transform_3, window_bounds = array<i64: 16, 128>}]} {
    %c0_i32 = arith.constant 0 : i32
    %0 = arith.cmpi eq, %arg2, %c0_i32 : i32
    %1 = arith.extui %0 : i1 to i32
    %c0_i32_0 = arith.constant 0 : i32
    %2 = arith.cmpi ne, %1, %c0_i32_0 : i32
    scf.if %2 {
      %cst_10 = arith.constant 0.000000e+00 : f32
      %12 = vector.broadcast %cst_10 : f32 to vector<16x128xf32>
      %c0_11 = arith.constant 0 : index
      %c0_12 = arith.constant 0 : index
      %13 = vector.load %arg7[%c0_11, %c0_12] : memref<16x128xf32, #tpu.memory_space<vmem>>, vector<16x128xf32>
      tpu.vector_store %arg7[%c0_11, %c0_12], %12 {strides = array<i32>} : memref<16x128xf32, #tpu.memory_space<vmem>>, vector<16x128xf32>,
    } else {
    }
    %c0 = arith.constant 0 : index
    %c0_1 = arith.constant 0 : index
    %3 = vector.load %arg7[%c0, %c0_1] : memref<16x128xf32, #tpu.memory_space<vmem>>, vector<16x128xf32>
    %c0_2 = arith.constant 0 : index
    %c0_3 = arith.constant 0 : index
    %4 = vector.load %arg3[%c0_2, %c0_3] : memref<16x128xbf16, #tpu.memory_space<vmem>>, vector<16x128xbf16>
    %c0_4 = arith.constant 0 : index
    %c0_5 = arith.constant 0 : index
    %5 = vector.load %arg4[%c0_4, %c0_5] : memref<128x128xbf16, #tpu.memory_space<vmem>>, vector<128x128xbf16>
    %cst = arith.constant dense<0.000000e+00> : vector<16x128xf32>
    %6 = tpu.matmul %4, %5, %cst {dimension_numbers = #tpu.dot_dimension_numbers<[1], [0], [0], [1], [0, 0, 1, 1], [], []>} : vector<16x128xbf16>, vector<128x128xbf16>, vector<16x128xf32> -> vector<16x128xf32>
    %7 = arith.addf %3, %6 : vector<16x128xf32>
    %c0_6 = arith.constant 0 : index
    %c0_7 = arith.constant 0 : index
    %8 = vector.load %arg7[%c0_6, %c0_7] : memref<16x128xf32, #tpu.memory_space<vmem>>, vector<16x128xf32>
    tpu.vector_store %arg7[%c0_6, %c0_7], %7 {strides = array<i32>} : memref<16x128xf32, #tpu.memory_space<vmem>>, vector<16x128xf32>,
    %c0_i32_8 = arith.constant 0 : i32
    %9 = arith.cmpi eq, %arg2, %c0_i32_8 : i32
    %10 = arith.extui %9 : i1 to i32
    %c0_i32_9 = arith.constant 0 : i32
    %11 = arith.cmpi ne, %10, %c0_i32_9 : i32
    scf.if %11 {
      %c0_10 = arith.constant 0 : index
      %c0_11 = arith.constant 0 : index
      %12 = vector.load %arg7[%c0_10, %c0_11] : memref<16x128xf32, #tpu.memory_space<vmem>>, vector<16x128xf32>
      %c0_12 = arith.constant 0 : index
      %c0_13 = arith.constant 0 : index
      %13 = vector.load %arg5[%c0_12, %c0_13] : memref<1x128xf32, #tpu.memory_space<vmem>>, vector<1x128xf32>
      %14 = vector.broadcast %13 : vector<1x128xf32> to vector<16x128xf32>
      %15 = arith.addf %12, %14 : vector<16x128xf32>
      %16 = arith.truncf %15 : vector<16x128xf32> to vector<16x128xbf16>
      %c0_14 = arith.constant 0 : index
      %c0_15 = arith.constant 0 : index
      %17 = vector.load %arg6[%c0_14, %c0_15] : memref<16x128xbf16, #tpu.memory_space<vmem>>, vector<16x128xbf16>
      tpu.vector_store %arg6[%c0_14, %c0_15], %16 {strides = array<i32>} : memref<16x128xbf16, #tpu.memory_space<vmem>>, vector<16x128xbf16>,
    } else {
    }
    return
  }
  func.func @transform_0(%arg0: i32, %arg1: i32, %arg2: i32) -> (i32, i32) {
    %c0_i32 = arith.constant 0 : i32
    return %arg0, %arg2 : i32, i32
  }
  func.func @transform_1(%arg0: i32, %arg1: i32, %arg2: i32) -> (i32, i32) {
    %c0_i32 = arith.constant 0 : i32
    return %arg2, %arg1 : i32, i32
  }
  func.func @transform_2(%arg0: i32, %arg1: i32, %arg2: i32) -> (i32, i32) {
    %c0_i32 = arith.constant 0 : i32
    %c0_i32_0 = arith.constant 0 : i32
    return %c0_i32, %arg1 : i32, i32
  }
  func.func @transform_3(%arg0: i32, %arg1: i32, %arg2: i32) -> (i32, i32) {
    %c0_i32 = arith.constant 0 : i32
    return %arg0, %arg1 : i32, i32
  }
}

module attributes {stable_mosaic.version = 11 : i64} {
  func.func @_linear_kernel(%arg0: i32, %arg1: i32, %arg2: i32, %arg3: memref<16x128xbf16, #tpu.memory_space<vmem>>, %arg4: memref<128x256xbf16, #tpu.memory_space<vmem>>, %arg5: memref<1x256xf32, #tpu.memory_space<vmem>>, %arg6: memref<16x256xbf16, #tpu.memory_space<vmem>>, %arg7: memref<16x256xf32, #tpu.memory_space<vmem>>) attributes {dimension_semantics = [#tpu.dimension_semantics<parallel>, #tpu.dimension_semantics<parallel>, #tpu.dimension_semantics<arbitrary>], iteration_bounds = array<i64: 1, 1, 1>, scalar_prefetch = 0 : i64, scratch_operands = 1 : i64, tpu.core_type = #tpu.core_type<tc>, window_params = [{transform_indices = @transform_0, window_bounds = array<i64: 16, 128>}, {transform_indices = @transform_1, window_bounds = array<i64: 128, 256>}, {transform_indices = @transform_2, window_bounds = array<i64: 1, 256>}, {transform_indices = @transform_3, window_bounds = array<i64: 16, 256>}]} {
    %c0_i32 = arith.constant 0 : i32
    %0 = arith.cmpi eq, %arg2, %c0_i32 : i32
    %1 = arith.extui %0 : i1 to i32
    %c0_i32_0 = arith.constant 0 : i32
    %2 = arith.cmpi ne, %1, %c0_i32_0 : i32
    scf.if %2 {
      %cst_10 = arith.constant 0.000000e+00 : f32
      %12 = vector.broadcast %cst_10 : f32 to vector<16x256xf32>
      %c0_11 = arith.constant 0 : index
      %c0_12 = arith.constant 0 : index
      %13 = vector.load %arg7[%c0_11, %c0_12] : memref<16x256xf32, #tpu.memory_space<vmem>>, vector<16x256xf32>
      tpu.vector_store %arg7[%c0_11, %c0_12], %12 {strides = array<i32>} : memref<16x256xf32, #tpu.memory_space<vmem>>, vector<16x256xf32>,
    } else {
    }
    %c0 = arith.constant 0 : index
    %c0_1 = arith.constant 0 : index
    %3 = vector.load %arg7[%c0, %c0_1] : memref<16x256xf32, #tpu.memory_space<vmem>>, vector<16x256xf32>
    %c0_2 = arith.constant 0 : index
    %c0_3 = arith.constant 0 : index
    %4 = vector.load %arg3[%c0_2, %c0_3] : memref<16x128xbf16, #tpu.memory_space<vmem>>, vector<16x128xbf16>
    %c0_4 = arith.constant 0 : index
    %c0_5 = arith.constant 0 : index
    %5 = vector.load %arg4[%c0_4, %c0_5] : memref<128x256xbf16, #tpu.memory_space<vmem>>, vector<128x256xbf16>
    %cst = arith.constant dense<0.000000e+00> : vector<16x256xf32>
    %6 = tpu.matmul %4, %5, %cst {dimension_numbers = #tpu.dot_dimension_numbers<[1], [0], [0], [1], [0, 0, 1, 1], [], []>} : vector<16x128xbf16>, vector<128x256xbf16>, vector<16x256xf32> -> vector<16x256xf32>
    %7 = arith.addf %3, %6 : vector<16x256xf32>
    %c0_6 = arith.constant 0 : index
    %c0_7 = arith.constant 0 : index
    %8 = vector.load %arg7[%c0_6, %c0_7] : memref<16x256xf32, #tpu.memory_space<vmem>>, vector<16x256xf32>
    tpu.vector_store %arg7[%c0_6, %c0_7], %7 {strides = array<i32>} : memref<16x256xf32, #tpu.memory_space<vmem>>, vector<16x256xf32>,
    %c0_i32_8 = arith.constant 0 : i32
    %9 = arith.cmpi eq, %arg2, %c0_i32_8 : i32
    %10 = arith.extui %9 : i1 to i32
    %c0_i32_9 = arith.constant 0 : i32
    %11 = arith.cmpi ne, %10, %c0_i32_9 : i32
    scf.if %11 {
      %c0_10 = arith.constant 0 : index
      %c0_11 = arith.constant 0 : index
      %12 = vector.load %arg7[%c0_10, %c0_11] : memref<16x256xf32, #tpu.memory_space<vmem>>, vector<16x256xf32>
      %c0_12 = arith.constant 0 : index
      %c0_13 = arith.constant 0 : index
      %13 = vector.load %arg5[%c0_12, %c0_13] : memref<1x256xf32, #tpu.memory_space<vmem>>, vector<1x256xf32>
      %14 = vector.broadcast %13 : vector<1x256xf32> to vector<16x256xf32>
      %15 = arith.addf %12, %14 : vector<16x256xf32>
      %16 = arith.truncf %15 : vector<16x256xf32> to vector<16x256xbf16>
      %c0_14 = arith.constant 0 : index
      %c0_15 = arith.constant 0 : index
      %17 = vector.load %arg6[%c0_14, %c0_15] : memref<16x256xbf16, #tpu.memory_space<vmem>>, vector<16x256xbf16>
      tpu.vector_store %arg6[%c0_14, %c0_15], %16 {strides = array<i32>} : memref<16x256xbf16, #tpu.memory_space<vmem>>, vector<16x256xbf16>,
    } else {
    }
    return
  }
  func.func @transform_0(%arg0: i32, %arg1: i32, %arg2: i32) -> (i32, i32) {
    %c0_i32 = arith.constant 0 : i32
    return %arg0, %arg2 : i32, i32
  }
  func.func @transform_1(%arg0: i32, %arg1: i32, %arg2: i32) -> (i32, i32) {
    %c0_i32 = arith.constant 0 : i32
    return %arg2, %arg1 : i32, i32
  }
  func.func @transform_2(%arg0: i32, %arg1: i32, %arg2: i32) -> (i32, i32) {
    %c0_i32 = arith.constant 0 : i32
    %c0_i32_0 = arith.constant 0 : i32
    return %c0_i32, %arg1 : i32, i32
  }
  func.func @transform_3(%arg0: i32, %arg1: i32, %arg2: i32) -> (i32, i32) {
    %c0_i32 = arith.constant 0 : i32
    return %arg0, %arg1 : i32, i32
  }
}

module attributes {stable_mosaic.version = 11 : i64} {
  func.func @_linear_kernel(%arg0: i32, %arg1: i32, %arg2: i32, %arg3: memref<16x128xbf16, #tpu.memory_space<vmem>>, %arg4: memref<128x128xbf16, #tpu.memory_space<vmem>>, %arg5: memref<1x128xf32, #tpu.memory_space<vmem>>, %arg6: memref<16x128xf32, #tpu.memory_space<vmem>>, %arg7: memref<16x128xf32, #tpu.memory_space<vmem>>) attributes {dimension_semantics = [#tpu.dimension_semantics<parallel>, #tpu.dimension_semantics<parallel>, #tpu.dimension_semantics<arbitrary>], iteration_bounds = array<i64: 1, 1, 1>, scalar_prefetch = 0 : i64, scratch_operands = 1 : i64, tpu.core_type = #tpu.core_type<tc>, window_params = [{transform_indices = @transform_0, window_bounds = array<i64: 16, 128>}, {transform_indices = @transform_1, window_bounds = array<i64: 128, 128>}, {transform_indices = @transform_2, window_bounds = array<i64: 1, 128>}, {transform_indices = @transform_3, window_bounds = array<i64: 16, 128>}]} {
    %c0_i32 = arith.constant 0 : i32
    %0 = arith.cmpi eq, %arg2, %c0_i32 : i32
    %1 = arith.extui %0 : i1 to i32
    %c0_i32_0 = arith.constant 0 : i32
    %2 = arith.cmpi ne, %1, %c0_i32_0 : i32
    scf.if %2 {
      %cst_10 = arith.constant 0.000000e+00 : f32
      %12 = vector.broadcast %cst_10 : f32 to vector<16x128xf32>
      %c0_11 = arith.constant 0 : index
      %c0_12 = arith.constant 0 : index
      %13 = vector.load %arg7[%c0_11, %c0_12] : memref<16x128xf32, #tpu.memory_space<vmem>>, vector<16x128xf32>
      tpu.vector_store %arg7[%c0_11, %c0_12], %12 {strides = array<i32>} : memref<16x128xf32, #tpu.memory_space<vmem>>, vector<16x128xf32>,
    } else {
    }
    %c0 = arith.constant 0 : index
    %c0_1 = arith.constant 0 : index
    %3 = vector.load %arg7[%c0, %c0_1] : memref<16x128xf32, #tpu.memory_space<vmem>>, vector<16x128xf32>
    %c0_2 = arith.constant 0 : index
    %c0_3 = arith.constant 0 : index
    %4 = vector.load %arg3[%c0_2, %c0_3] : memref<16x128xbf16, #tpu.memory_space<vmem>>, vector<16x128xbf16>
    %c0_4 = arith.constant 0 : index
    %c0_5 = arith.constant 0 : index
    %5 = vector.load %arg4[%c0_4, %c0_5] : memref<128x128xbf16, #tpu.memory_space<vmem>>, vector<128x128xbf16>
    %cst = arith.constant dense<0.000000e+00> : vector<16x128xf32>
    %6 = tpu.matmul %4, %5, %cst {dimension_numbers = #tpu.dot_dimension_numbers<[1], [0], [0], [1], [0, 0, 1, 1], [], []>} : vector<16x128xbf16>, vector<128x128xbf16>, vector<16x128xf32> -> vector<16x128xf32>
    %7 = arith.addf %3, %6 : vector<16x128xf32>
    %c0_6 = arith.constant 0 : index
    %c0_7 = arith.constant 0 : index
    %8 = vector.load %arg7[%c0_6, %c0_7] : memref<16x128xf32, #tpu.memory_space<vmem>>, vector<16x128xf32>
    tpu.vector_store %arg7[%c0_6, %c0_7], %7 {strides = array<i32>} : memref<16x128xf32, #tpu.memory_space<vmem>>, vector<16x128xf32>,
    %c0_i32_8 = arith.constant 0 : i32
    %9 = arith.cmpi eq, %arg2, %c0_i32_8 : i32
    %10 = arith.extui %9 : i1 to i32
    %c0_i32_9 = arith.constant 0 : i32
    %11 = arith.cmpi ne, %10, %c0_i32_9 : i32
    scf.if %11 {
      %c0_10 = arith.constant 0 : index
      %c0_11 = arith.constant 0 : index
      %12 = vector.load %arg7[%c0_10, %c0_11] : memref<16x128xf32, #tpu.memory_space<vmem>>, vector<16x128xf32>
      %c0_12 = arith.constant 0 : index
      %c0_13 = arith.constant 0 : index
      %13 = vector.load %arg5[%c0_12, %c0_13] : memref<1x128xf32, #tpu.memory_space<vmem>>, vector<1x128xf32>
      %14 = vector.broadcast %13 : vector<1x128xf32> to vector<16x128xf32>
      %15 = arith.addf %12, %14 : vector<16x128xf32>
      %c0_14 = arith.constant 0 : index
      %c0_15 = arith.constant 0 : index
      %16 = vector.load %arg6[%c0_14, %c0_15] : memref<16x128xf32, #tpu.memory_space<vmem>>, vector<16x128xf32>
      tpu.vector_store %arg6[%c0_14, %c0_15], %15 {strides = array<i32>} : memref<16x128xf32, #tpu.memory_space<vmem>>, vector<16x128xf32>,
    } else {
    }
    return
  }
  func.func @transform_0(%arg0: i32, %arg1: i32, %arg2: i32) -> (i32, i32) {
    %c0_i32 = arith.constant 0 : i32
    return %arg0, %arg2 : i32, i32
  }
  func.func @transform_1(%arg0: i32, %arg1: i32, %arg2: i32) -> (i32, i32) {
    %c0_i32 = arith.constant 0 : i32
    return %arg2, %arg1 : i32, i32
  }
  func.func @transform_2(%arg0: i32, %arg1: i32, %arg2: i32) -> (i32, i32) {
    %c0_i32 = arith.constant 0 : i32
    %c0_i32_0 = arith.constant 0 : i32
    return %c0_i32, %arg1 : i32, i32
  }
  func.func @transform_3(%arg0: i32, %arg1: i32, %arg2: i32) -> (i32, i32) {
    %c0_i32 = arith.constant 0 : i32
    return %arg0, %arg1 : i32, i32
  }
}

module attributes {stable_mosaic.version = 11 : i64} {
  func.func @_ln_kernel(%arg0: i32, %arg1: memref<16x128xbf16, #tpu.memory_space<vmem>>, %arg2: memref<1x128xf32, #tpu.memory_space<vmem>>, %arg3: memref<1x128xf32, #tpu.memory_space<vmem>>, %arg4: memref<16x128xbf16, #tpu.memory_space<vmem>>) attributes {dimension_semantics = [#tpu.dimension_semantics<parallel>], iteration_bounds = array<i64: 1>, scalar_prefetch = 0 : i64, scratch_operands = 0 : i64, tpu.core_type = #tpu.core_type<tc>, window_params = [{transform_indices = @transform_0, window_bounds = array<i64: 16, 128>}, {pipeline_mode = #tpu.pipeline_mode<synchronous>, transform_indices = @transform_1, window_bounds = array<i64: 1, 128>}, {pipeline_mode = #tpu.pipeline_mode<synchronous>, transform_indices = @transform_2, window_bounds = array<i64: 1, 128>}, {transform_indices = @transform_3, window_bounds = array<i64: 16, 128>}]} {
    %c0 = arith.constant 0 : index
    %c0_0 = arith.constant 0 : index
    %0 = vector.load %arg1[%c0, %c0_0] : memref<16x128xbf16, #tpu.memory_space<vmem>>, vector<16x128xbf16>
    %1 = arith.extf %0 : vector<16x128xbf16> to vector<16x128xf32>
    %cst = arith.constant dense<0.000000e+00> : vector<16xf32>
    %2 = vector.multi_reduction <add>, %1, %cst [1] : vector<16x128xf32> to vector<16xf32>
    %3 = vector.shape_cast %2 : vector<16xf32> to vector<16x1xf32>
    %cst_1 = arith.constant 1.280000e+02 : f32
    %4 = vector.broadcast %cst_1 : f32 to vector<16x1xf32>
    %5 = arith.divf %3, %4 : vector<16x1xf32>
    %6 = vector.broadcast %5 : vector<16x1xf32> to vector<16x128xf32>
    %7 = arith.subf %1, %6 : vector<16x128xf32>
    %8 = arith.mulf %7, %7 : vector<16x128xf32>
    %cst_2 = arith.constant dense<0.000000e+00> : vector<16xf32>
    %9 = vector.multi_reduction <add>, %8, %cst_2 [1] : vector<16x128xf32> to vector<16xf32>
    %10 = vector.shape_cast %9 : vector<16xf32> to vector<16x1xf32>
    %cst_3 = arith.constant 1.280000e+02 : f32
    %11 = vector.broadcast %cst_3 : f32 to vector<16x1xf32>
    %12 = arith.divf %10, %11 : vector<16x1xf32>
    %cst_4 = arith.constant 9.99999974E-6 : f32
    %13 = vector.broadcast %cst_4 : f32 to vector<16x1xf32>
    %14 = arith.addf %12, %13 : vector<16x1xf32>
    %15 = math.rsqrt %14 : vector<16x1xf32>
    %16 = vector.broadcast %15 : vector<16x1xf32> to vector<16x128xf32>
    %17 = arith.mulf %7, %16 : vector<16x128xf32>
    %c0_5 = arith.constant 0 : index
    %c0_6 = arith.constant 0 : index
    %18 = vector.load %arg2[%c0_5, %c0_6] : memref<1x128xf32, #tpu.memory_space<vmem>>, vector<1x128xf32>
    %19 = vector.broadcast %18 : vector<1x128xf32> to vector<16x128xf32>
    %20 = arith.mulf %17, %19 : vector<16x128xf32>
    %c0_7 = arith.constant 0 : index
    %c0_8 = arith.constant 0 : index
    %21 = vector.load %arg3[%c0_7, %c0_8] : memref<1x128xf32, #tpu.memory_space<vmem>>, vector<1x128xf32>
    %22 = vector.broadcast %21 : vector<1x128xf32> to vector<16x128xf32>
    %23 = arith.addf %20, %22 : vector<16x128xf32>
    %24 = arith.truncf %23 : vector<16x128xf32> to vector<16x128xbf16>
    %c0_9 = arith.constant 0 : index
    %c0_10 = arith.constant 0 : index
    %25 = vector.load %arg4[%c0_9, %c0_10] : memref<16x128xbf16, #tpu.memory_space<vmem>>, vector<16x128xbf16>
    tpu.vector_store %arg4[%c0_9, %c0_10], %24 {strides = array<i32>} : memref<16x128xbf16, #tpu.memory_space<vmem>>, vector<16x128xbf16>,
    return
  }
  func.func @transform_0(%arg0: i32) -> (i32, i32) {
    %c0_i32 = arith.constant 0 : i32
    %c0_i32_0 = arith.constant 0 : i32
    return %arg0, %c0_i32 : i32, i32
  }
  func.func @transform_1(%arg0: i32) -> (i32, i32) {
    %c0_i32 = arith.constant 0 : i32
    %c0_i32_0 = arith.constant 0 : i32
    %c0_i32_1 = arith.constant 0 : i32
    return %c0_i32, %c0_i32_0 : i32, i32
  }
  func.func @transform_2(%arg0: i32) -> (i32, i32) {
    %c0_i32 = arith.constant 0 : i32
    %c0_i32_0 = arith.constant 0 : i32
    %c0_i32_1 = arith.constant 0 : i32
    return %c0_i32, %c0_i32_0 : i32, i32
  }
  func.func @transform_3(%arg0: i32) -> (i32, i32) {
    %c0_i32 = arith.constant 0 : i32
    %c0_i32_0 = arith.constant 0 : i32
    return %arg0, %c0_i32 : i32, i32
  }
}

</mosaic_0001>

<bundles_post_ra>
// kernel: transformer_forward.39
= control target key start
LH: loop header
LB: loop body
LE: loop exit
PB: predicated region body
PF: predicated region fallthrough
CT: control target
= control target key end

     0   :  { %8 = vsyncpa [#allocation4], 0  ;;  %s363_s0 = inlined_call_operand.vmem [shape: bf16[16,128], index: 0, kind: input, shape index: {}]   ;;  %s364_s1 = inlined_call_operand.hbm [shape: bf16[128,128], index: 1, kind: input, shape index: {}]   ;;  %s365_s2 = inlined_call_operand.hbm [shape: f32[1,128], index: 2, kind: input, shape index: {}]   ;;  %s366_s3 = inlined_call_operand.vmem [shape: bf16[16,128], index: 3, kind: output, shape index: {}]  }
   0x1   :  { %9 = vsyncpa [#allocation6], 0  ;;  %s307_s12 = smov [#allocation3]   ;;  %s259_s16 = scalar_lea.hbm %s364_s1, 1024 }
   0x2   :  { %s17_s13 = sshll.u32 %s307_s12, 4  ;;  %p260_p0 = scmp.ne.s32.totalorder %s364_s1, %s259_s16  ;;  %s18_s13 = int_to_ptr.vmem [resolvable:$true] %s17_s13 }
   0x3   :  { %p263_p1 = scmp.lt.u32.totalorder %s259_s16, %s364_s1 }
   0x5   :  { %p265_p2 = pnand %p263_p1, %p260_p0 }
   0x7   :  { %268 = shalt.err (!%p265_p2)
}
   0x8   :  { %s269_s21 = scalar_lea.vmem %s18_s13, 1024  ;;  %p274_p4 = scmp.lt.s32.totalorder %s18_s13, %s18_s13 }
   0x9   :  { %p270_p3 = scmp.ne.s32.totalorder %s18_s13, %s269_s21  ;;  %p275_p5 = scmp.lt.s32.totalorder %s269_s21, %s269_s21 }
   0xb   :  { %p276_p6 = por %p275_p5, %p274_p4 }
   0xd   :  { %p277_p7 = pnand %p276_p6, %p270_p3 }
   0xf   :  { %280 = shalt.err (!%p277_p7)
}
  0x10   :  { %s308_s22 = smov 64   ;;  %s309_s23 = smov 4  }
  0x11   :  { %23 = dma.hbm_to_vmem [thread:$0]  %s364_s1, 1024, %s18_s13, [#allocation4], %s308_s22, %s308_s22, %s309_s23  }
  0x12   :  { %s310_s26 = smov [#allocation5]   ;;  %s281_s30 = scalar_lea.hbm %s365_s2, 16 }
  0x13   :  { %s30_s27 = sshll.u32 %s310_s26, 4  ;;  %p282_p8 = scmp.ne.s32.totalorder %s365_s2, %s281_s30  ;;  %s31_s27 = int_to_ptr.vmem [resolvable:$true] %s30_s27 }
  0x14   :  { %p285_p9 = scmp.lt.u32.totalorder %s281_s30, %s365_s2 }
  0x16   :  { %p287_p10 = pnand %p285_p9, %p282_p8 }
  0x18   :  { %290 = shalt.err (!%p287_p10)
}
  0x19   :  { %s291_s8 = scalar_lea.vmem %s31_s27, 16  ;;  %s295_s1 = scalar_lea.vmem %s31_s27, 32 }
  0x1a   :  { %p292_p11 = scmp.ne.s32.totalorder %s31_s27, %s291_s8  ;;  %p296_p12 = scmp.lt.s32.totalorder %s31_s27, %s31_s27 }
  0x1b   :  { %p297_p13 = scmp.lt.s32.totalorder %s295_s1, %s291_s8 }
  0x1d   :  { %p298_p0 = por %p297_p13, %p296_p12 }
  0x1f   :  { %p299_p1 = pnand %p298_p0, %p292_p11 }
  0x21   :  { %302 = shalt.err (!%p299_p1)
}
  0x22   :  { %33 = dma.hbm_to_vmem [thread:$0]  %s365_s2, 16, %s31_s27, [#allocation6]  }
  0x23   :  { %303 = dma.done.wait [#allocation4], 1024  }
  0x24   :  { %304 = vsyncadd [#allocation4], 4294966272 }
  0x25   :  { %305 = dma.done.wait [#allocation6], 16  }
  0x26   :  { %306 = vsyncadd [#allocation6], 4294967280  ;;  %v311_v0 = vmov 0.0   ;;  %vm312_vm0 = vmmov 0   ;;  %v250_v1 = vld [vmem:[#allocation3] sm:$0xff]   ;;  %v251_v2 = vld [vmem:[#allocation3 + $0x8] sm:$0xff]  }
  0x27   :  { %224 = vmatprep.subr.bf16.mxu0 %v311_v0  ;;  %240 = vmatprep.mubr.msk.bf16.mxu0 %vm312_vm0, %v311_v0  ;;  %v252_v3 = vld [vmem:[#allocation3 + $0x10] sm:$0xff]   ;;  %v253_v4 = vld [vmem:[#allocation3 + $0x18] sm:$0xff]   ;;  %v254_v5 = vld [vmem:[#allocation3 + $0x20] sm:$0xff]  }
  0x28   :  { %225 = vmatpush3.bf16.msra.mxu0 %v250_v1  ;;  %v255_v6 = vld [vmem:[#allocation3 + $0x28] sm:$0xff]   ;;  %v256_v7 = vld [vmem:[#allocation3 + $0x30] sm:$0xff]   ;;  %v257_v8 = vld [vmem:[#allocation3 + $0x38] sm:$0xff]  }
  0x29   :  { %226 = vmatprep.subr.bf16.mxu0 %v311_v0  ;;  %v258_v9 = vld [vmem:[%s363_s0] sm:$0xff]  }
  0x2a   :  { %v205_v11 = vld [vmem:[#allocation5] ss:$0 sm:$0xff] }
  0x2c   :  { %227 = vmatpush3.bf16.msra.mxu0 %v251_v2 }
  0x2d   :  { %228 = vmatprep.subr.bf16.mxu0 %v311_v0 }
  0x30   :  { %229 = vmatpush3.bf16.msra.mxu0 %v252_v3 }
  0x31   :  { %230 = vmatprep.subr.bf16.mxu0 %v311_v0 }
  0x34   :  { %231 = vmatpush3.bf16.msra.mxu0 %v253_v4 }
  0x35   :  { %232 = vmatprep.subr.bf16.mxu0 %v311_v0 }
  0x38   :  { %233 = vmatpush3.bf16.msra.mxu0 %v254_v5 }
  0x39   :  { %234 = vmatprep.subr.bf16.mxu0 %v311_v0 }
  0x3c   :  { %235 = vmatpush3.bf16.msra.mxu0 %v255_v6 }
  0x3d   :  { %236 = vmatprep.subr.bf16.mxu0 %v311_v0 }
  0x40   :  { %237 = vmatpush3.bf16.msra.mxu0 %v256_v7 }
  0x41   :  { %238 = vmatprep.subr.bf16.mxu0 %v311_v0 }
  0x44   :  { %239 = vmatpush3.bf16.msra.mxu0 %v257_v8 }
  0x47   :  { %241 = vmatmul.mubr.bf16.vlgmr.msra.gmra.mrb[0].mxu0 %v258_v9 }
 0x11a   :  { %v155_v10 = vpop.f32.mrb[0].mxu0 }
 0x11b   :  { %v242_v12 = vpop.f32.mrb[1].mxu0  ;;  %v178_v14 = vadd.f32 %v205_v11, %v155_v10 }
 0x11c   :  { %v158_v13 = vpop.f32.mrb[2].mxu0 }
 0x11d   :  { %v179_v15 = vadd.f32 %v205_v11, %v158_v13  ;;  %v243_v16 = vpop.f32.mrb[3].mxu0 }
 0x11f   :  { %v213_v17 = vpack.c.bf16 %v179_v15, %v178_v14 }
 0x121   :  { %214 = vst [vmem:[%s366_s3] sm:$0xff] %v213_v17  }
 0x122   :  { %194 = vsyncpa [#allocation4], 1 }
 0x123   :  { %195 = vsyncpa [#allocation6], 1 }

// kernel: transformer_forward.38
= control target key start
LH: loop header
LB: loop body
LE: loop exit
PB: predicated region body
PF: predicated region fallthrough
CT: control target
= control target key end

     0   :  { %11 = vsyncpa [#allocation3], 0  ;;  %s533_s0 = inlined_call_operand.vmem [shape: bf16[16,128], index: 0, kind: input, shape index: {}]   ;;  %s534_s1 = inlined_call_operand.hbm [shape: bf16[128,128], index: 1, kind: input, shape index: {}]   ;;  %s535_s2 = inlined_call_operand.hbm [shape: f32[1,128], index: 2, kind: input, shape index: {}]   ;;  %s536_s3 = inlined_call_operand.vmem [shape: bf16[16,128], index: 3, kind: input, shape index: {}]   ;;  %s537_s4 = inlined_call_operand.hbm [shape: f32[1,128], index: 4, kind: input, shape index: {}]   ;;  %s538_s5 = inlined_call_operand.hbm [shape: f32[1,128], index: 5, kind: input, shape index: {}]   ;;  %s539_s6 = inlined_call_operand.vmem [shape: bf16[16,128], index: 6, kind: output, shape index: {}]  }
   0x1   :  { %12 = vsyncpa [#allocation5], 0 }
   0x2   :  { %13 = vsyncpa [#allocation8], 0  ;;  %s426_s21 = smov [#allocation4]   ;;  %s427_s23 = smov [#allocation2]  }
   0x3   :  { %s34_s22 = sshll.u32 %s426_s21, 4  ;;  %s21_s24 = sshll.u32 %s427_s23, 4  ;;  %s35_s22 = int_to_ptr.vmem [resolvable:$true] %s34_s22  ;;  %s469_s24 = int_to_ptr.vmem [resolvable:$true] %s21_s24 }
   0x4   :  { %s332_s27 = scalar_lea.hbm %s535_s2, 16 }
   0x5   :  { %p333_p0 = scmp.ne.s32.totalorder %s535_s2, %s332_s27  ;;  %p336_p1 = scmp.lt.u32.totalorder %s332_s27, %s535_s2 }
   0x7   :  { %p338_p2 = pnand %p336_p1, %p333_p0 }
   0x9   :  { %341 = shalt.err (!%p338_p2)
}
   0xa   :  { %s342_s8 = scalar_lea.vmem %s35_s22, 16  ;;  %s346_s9 = scalar_lea.vmem %s35_s22, 32 }
   0xb   :  { %p343_p3 = scmp.ne.s32.totalorder %s35_s22, %s342_s8  ;;  %p347_p4 = scmp.lt.s32.totalorder %s35_s22, %s35_s22 }
   0xc   :  { %p348_p5 = scmp.lt.s32.totalorder %s346_s9, %s342_s8 }
   0xe   :  { %p349_p6 = por %p348_p5, %p347_p4 }
  0x10   :  { %p350_p7 = pnand %p349_p6, %p343_p3 }
  0x12   :  { %353 = shalt.err (!%p350_p7)
}
  0x13   :  { %37 = dma.hbm_to_vmem [thread:$0]  %s535_s2, 16, %s35_s22, [#allocation5]  }
  0x14   :  { %s354_s14 = scalar_lea.hbm %s534_s1, 1024 }
  0x15   :  { %p355_p8 = scmp.ne.s32.totalorder %s534_s1, %s354_s14  ;;  %p358_p9 = scmp.lt.u32.totalorder %s354_s14, %s534_s1 }
  0x17   :  { %p360_p10 = pnand %p358_p9, %p355_p8 }
  0x19   :  { %363 = shalt.err (!%p360_p10)
}
  0x1a   :  { %s364_s19 = scalar_lea.vmem %s469_s24, 1024  ;;  %p369_p12 = scmp.lt.s32.totalorder %s469_s24, %s469_s24 }
  0x1b   :  { %p365_p11 = scmp.ne.s32.totalorder %s469_s24, %s364_s19  ;;  %p370_p13 = scmp.lt.s32.totalorder %s364_s19, %s364_s19 }
  0x1d   :  { %p371_p0 = por %p370_p13, %p369_p12 }
  0x1f   :  { %p372_p1 = pnand %p371_p0, %p365_p11 }
  0x21   :  { %375 = shalt.err (!%p372_p1)
}
  0x22   :  { %s428_s2 = smov 64   ;;  %s429_s20 = smov 4  }
  0x23   :  { %27 = dma.hbm_to_vmem [thread:$0]  %s534_s1, 1024, %s469_s24, [#allocation3], %s428_s2, %s428_s2, %s429_s20  }
  0x24   :  { %s430_s23 = smov [#allocation6]   ;;  %s431_s26 = smov [#allocation7]  }
  0x25   :  { %s46_s25 = sshll.u32 %s430_s23, 4  ;;  %s56_s27 = sshll.u32 %s431_s26, 4  ;;  %s47_s25 = int_to_ptr.vmem [resolvable:$true] %s46_s25  ;;  %s57_s27 = int_to_ptr.vmem [resolvable:$true] %s56_s27 }
  0x26   :  { %s376_s30 = scalar_lea.hbm %s537_s4, 16 }
  0x27   :  { %p377_p2 = scmp.ne.s32.totalorder %s537_s4, %s376_s30  ;;  %p380_p3 = scmp.lt.u32.totalorder %s376_s30, %s537_s4 }
  0x29   :  { %p382_p4 = pnand %p380_p3, %p377_p2 }
  0x2b   :  { %385 = shalt.err (!%p382_p4)
}
  0x2c   :  { %s386_s1 = scalar_lea.vmem %s47_s25, 16  ;;  %s390_s24 = scalar_lea.vmem %s47_s25, 32 }
  0x2d   :  { %p387_p5 = scmp.ne.s32.totalorder %s47_s25, %s386_s1  ;;  %p391_p6 = scmp.lt.s32.totalorder %s47_s25, %s47_s25 }
  0x2e   :  { %p392_p7 = scmp.lt.s32.totalorder %s390_s24, %s386_s1 }
  0x30   :  { %p393_p8 = por %p392_p7, %p391_p6 }
  0x32   :  { %p394_p9 = pnand %p393_p8, %p387_p5 }
  0x34   :  { %397 = shalt.err (!%p394_p9)
}
  0x35   :  { %49 = dma.hbm_to_vmem [thread:$0]  %s537_s4, 16, %s47_s25, [#allocation5]  }
  0x36   :  { %s398_s15 = scalar_lea.hbm %s538_s5, 16 }
  0x37   :  { %p399_p10 = scmp.ne.s32.totalorder %s538_s5, %s398_s15  ;;  %p402_p11 = scmp.lt.u32.totalorder %s398_s15, %s538_s5 }
  0x39   :  { %p404_p12 = pnand %p402_p11, %p399_p10 }
  0x3b   :  { %407 = shalt.err (!%p404_p12)
}
  0x3c   :  { %s408_s2 = scalar_lea.vmem %s57_s27, 16  ;;  %s412_s20 = scalar_lea.vmem %s57_s27, 32 }
  0x3d   :  { %p409_p13 = scmp.ne.s32.totalorder %s57_s27, %s408_s2  ;;  %p413_p0 = scmp.lt.s32.totalorder %s57_s27, %s57_s27 }
  0x3e   :  { %p414_p1 = scmp.lt.s32.totalorder %s412_s20, %s408_s2 }
  0x40   :  { %p415_p2 = por %p414_p1, %p413_p0 }
  0x42   :  { %p416_p3 = pnand %p415_p2, %p409_p13 }
  0x44   :  { %419 = shalt.err (!%p416_p3)
}
  0x45   :  { %59 = dma.hbm_to_vmem [thread:$0]  %s538_s5, 16, %s57_s27, [#allocation8]  }
  0x46   :  { %420 = dma.done.wait [#allocation3], 1024  }
  0x47   :  { %421 = vsyncadd [#allocation3], 4294966272 }
  0x48   :  { %422 = dma.done.wait [#allocation5], 32  }
  0x49   :  { %423 = vsyncadd [#allocation5], 4294967264 }
  0x4a   :  { %424 = dma.done.wait [#allocation8], 16  }
  0x4b   :  { %425 = vsyncadd [#allocation8], 4294967280  ;;  %v432_v0 = vmov 0.0   ;;  %vm433_vm0 = vmmov 0   ;;  %v319_v1 = vld [vmem:[#allocation2] sm:$0xff]   ;;  %v320_v2 = vld [vmem:[#allocation2 + $0x8] sm:$0xff]  }
  0x4c   :  { %291 = vmatprep.subr.bf16.mxu0 %v432_v0  ;;  %307 = vmatprep.mubr.msk.bf16.mxu0 %vm433_vm0, %v432_v0  ;;  %v321_v3 = vld [vmem:[#allocation2 + $0x10] sm:$0xff]   ;;  %v322_v4 = vld [vmem:[#allocation2 + $0x18] sm:$0xff]   ;;  %v323_v5 = vld [vmem:[#allocation2 + $0x20] sm:$0xff]  }
  0x4d   :  { %292 = vmatpush3.bf16.msra.mxu0 %v319_v1  ;;  %v324_v6 = vld [vmem:[#allocation2 + $0x28] sm:$0xff]   ;;  %v325_v7 = vld [vmem:[#allocation2 + $0x30] sm:$0xff]   ;;  %v326_v8 = vld [vmem:[#allocation2 + $0x38] sm:$0xff]  }
  0x4e   :  { %293 = vmatprep.subr.bf16.mxu0 %v432_v0  ;;  %v327_v9 = vld [vmem:[%s533_s0] sm:$0xff]  }
  0x4f   :  { %v274_v10 = vld [vmem:[%s536_s3] sm:$0xff]  }
  0x50   :  { %v257_v11 = vld [vmem:[#allocation4] ss:$0 sm:$0xff]  ;;  %v275_v12 = vunpack.c.l.bf16 %v274_v10  ;;  %v276_v20 = vunpack.c.h.bf16 %v274_v10  ;;  %v267_v38 = vld [vmem:[#allocation6] ss:$0 sm:$0xff]  ;;  %v268_v42 = vld [vmem:[#allocation7] ss:$0 sm:$0xff] }
  0x51   :  { %294 = vmatpush3.bf16.msra.mxu0 %v320_v2 }
  0x52   :  { %295 = vmatprep.subr.bf16.mxu0 %v432_v0 }
  0x55   :  { %296 = vmatpush3.bf16.msra.mxu0 %v321_v3 }
  0x56   :  { %297 = vmatprep.subr.bf16.mxu0 %v432_v0 }
  0x59   :  { %298 = vmatpush3.bf16.msra.mxu0 %v322_v4 }
  0x5a   :  { %299 = vmatprep.subr.bf16.mxu0 %v432_v0 }
  0x5d   :  { %300 = vmatpush3.bf16.msra.mxu0 %v323_v5 }
  0x5e   :  { %301 = vmatprep.subr.bf16.mxu0 %v432_v0 }
  0x61   :  { %302 = vmatpush3.bf16.msra.mxu0 %v324_v6 }
  0x62   :  { %303 = vmatprep.subr.bf16.mxu0 %v432_v0 }
  0x65   :  { %304 = vmatpush3.bf16.msra.mxu0 %v325_v7 }
  0x66   :  { %305 = vmatprep.subr.bf16.mxu0 %v432_v0 }
  0x69   :  { %306 = vmatpush3.bf16.msra.mxu0 %v326_v8 }
  0x6c   :  { %308 = vmatmul.mubr.bf16.vlgmr.msra.gmra.mrb[0].mxu0 %v327_v9 }
 0x13f   :  { %v186_v13 = vpop.f32.mrb[0].mxu0 }
 0x140   :  { %v187_v14 = vadd.f32 %v257_v11, %v186_v13  ;;  %v309_v15 = vpop.f32.mrb[1].mxu0 }
 0x141   :  { %v189_v16 = vpop.f32.mrb[2].mxu0 }
 0x142   :  { %v190_v17 = vadd.f32 %v257_v11, %v189_v16  ;;  %v310_v18 = vpop.f32.mrb[3].mxu0  ;;  %v197_v19 = vadd.f32 %v275_v12, %v187_v14 }
 0x144   :  { %199 = vadd.xlane.f32.xlu0 %v197_v19  ;;  %v198_v21 = vadd.f32 %v276_v20, %v190_v17 }
 0x148   :  { %201 = vadd.xlane.f32.xlu0 %v198_v21 }
 0x1d1   :  { %v200_v22 = vpop.xlane.xlu0 %199 }
 0x1d2   :  { %v204_v23 = vmul.f32 0.0078125, %v200_v22 }
 0x1d4   :  { %v206_v24 = vsub.f32 %v197_v19, %v204_v23 }
 0x1d5   :  { %v202_v25 = vpop.xlane.xlu0 %201 }
 0x1d6   :  { %v205_v26 = vmul.f32 0.0078125, %v202_v25  ;;  %v208_v27 = vmul.f32 %v206_v24, %v206_v24 }
 0x1d8   :  { %v207_v28 = vsub.f32 %v198_v21, %v205_v26  ;;  %210 = vadd.xlane.f32.xlu1 %v208_v27 }
 0x1da   :  { %v209_v29 = vmul.f32 %v207_v28, %v207_v28 }
 0x1dc   :  { %212 = vadd.xlane.f32.xlu1 %v209_v29 }
 0x265   :  { %v211_v30 = vpop.xlane.xlu1 %210 }
 0x266   :  { %v214_v31 = vmul.f32 0.0078125, %v211_v30 }
 0x268   :  { %v216_v32 = vadd.f32 1e-05, %v214_v31 }
 0x269   :  { %v213_v33 = vpop.xlane.xlu1 %212 }
 0x26a   :  { %328 = vrsqrt.f32 %v216_v32  ;;  %v215_v34 = vmul.f32 0.0078125, %v213_v33 }
 0x26c   :  { %v217_v35 = vadd.f32 1e-05, %v215_v34 }
 0x26e   :  { %330 = vrsqrt.f32 %v217_v35 }
 0x274   :  { %v329_v36 = vpop.eup %328 }
 0x275   :  { %v220_v37 = vmul.f32 %v329_v36, %v206_v24 }
 0x277   :  { %v229_v40 = vmul.f32 %v267_v38, %v220_v37 }
 0x278   :  { %v331_v39 = vpop.eup %330 }
 0x279   :  { %v221_v41 = vmul.f32 %v331_v39, %v207_v28  ;;  %v238_v44 = vadd.f32 %v268_v42, %v229_v40 }
 0x27b   :  { %v230_v43 = vmul.f32 %v267_v38, %v221_v41 }
 0x27d   :  { %v239_v45 = vadd.f32 %v268_v42, %v230_v43 }
 0x27f   :  { %v280_v46 = vpack.c.bf16 %v239_v45, %v238_v44 }
 0x281   :  { %281 = vst [vmem:[%s539_s6] sm:$0xff] %v280_v46  }
 0x282   :  { %254 = vsyncpa [#allocation3], 1 }
 0x283   :  { %255 = vsyncpa [#allocation5], 1 }
 0x284   :  { %256 = vsyncpa [#allocation8], 1 }

// kernel: transformer_forward.36
= control target key start
LH: loop header
LB: loop body
LE: loop exit
PB: predicated region body
PF: predicated region fallthrough
CT: control target
= control target key end

     0   :  { %8 = vsyncpa [#allocation4], 0  ;;  %s495_s12 = smov [#allocation3]   ;;  %s551_s0 = inlined_call_operand.vmem [shape: bf16[16,128], index: 0, kind: input, shape index: {}]   ;;  %s552_s1 = inlined_call_operand.hbm [shape: bf16[128,384], index: 1, kind: input, shape index: {}]   ;;  %s553_s2 = inlined_call_operand.vmem [shape: f32[1,384], index: 2, kind: input, shape index: {}]   ;;  %s554_s3 = inlined_call_operand.vmem [shape: bf16[16,384], index: 3, kind: output, shape index: {}]  }
   0x1   :  { %s16_s13 = sshll.u32 %s495_s12, 4  ;;  %s471_s16 = scalar_lea.hbm %s552_s1, 3072  ;;  %s17_s13 = int_to_ptr.vmem [resolvable:$true] %s16_s13 }
   0x2   :  { %p472_p0 = scmp.ne.s32.totalorder %s552_s1, %s471_s16  ;;  %p475_p1 = scmp.lt.u32.totalorder %s471_s16, %s552_s1 }
   0x4   :  { %p477_p2 = pnand %p475_p1, %p472_p0 }
   0x6   :  { %480 = shalt.err (!%p477_p2)
}
   0x7   :  { %s481_s21 = scalar_lea.vmem %s17_s13, 3072  ;;  %p486_p4 = scmp.lt.s32.totalorder %s17_s13, %s17_s13 }
   0x8   :  { %p482_p3 = scmp.ne.s32.totalorder %s17_s13, %s481_s21  ;;  %p487_p5 = scmp.lt.s32.totalorder %s481_s21, %s481_s21 }
   0xa   :  { %p488_p6 = por %p487_p5, %p486_p4 }
   0xc   :  { %p489_p7 = pnand %p488_p6, %p482_p3 }
   0xe   :  { %492 = shalt.err (!%p489_p7)
}
   0xf   :  { %s496_s22 = smov 192   ;;  %s497_s23 = smov 12  }
  0x10   :  { %22 = dma.hbm_to_vmem [thread:$0]  %s552_s1, 3072, %s17_s13, [#allocation4], %s496_s22, %s496_s22, %s497_s23  }
  0x11   :  { %493 = dma.done.wait [#allocation4], 3072  }
  0x12   :  { %494 = vsyncadd [#allocation4], 4294964224  ;;  %v498_v0 = vmov 0.0   ;;  %vm499_vm0 = vmmov 0   ;;  %v500_v1 = vmov 0   ;;  %v470_v26 = vld [vmem:[%s551_s0] sm:$0xff]   ;;  %v320_v27 = vlaneseq }
  0x13   :  { %412 = vmatprep.subr.bf16.mxu1 %v498_v0  ;;  %428 = vmatprep.mubr.msk.bf16.mxu1 %vm499_vm0, %v498_v0  ;;  %v438_v2 = vld [vmem:[#allocation3 + $0x4] ss:$12 sps:$4 sm:$0xff]   ;;  %v440_v3 = vld [vmem:[#allocation3 + $0x8] ss:$12 sps:$4 sm:$0xff]   ;;  %v441_v4 = vld [vmem:[#allocation3] ss:$12 sps:$4 sm:$0xff]  }
  0x14   :  { %245 = vmatprep.mubr.bf16.mxu0 %v500_v1  ;;  %213 = vmatprep.subr.bf16.mxu0 %v438_v2  ;;  %v442_v5 = vld [vmem:[#allocation3 + $0x1c] ss:$12 sps:$4 sm:$0xff]   ;;  %v444_v6 = vld [vmem:[#allocation3 + $0x20] ss:$12 sps:$4 sm:$0xff]   ;;  %v445_v7 = vld [vmem:[#allocation3 + $0x18] ss:$12 sps:$4 sm:$0xff]  }
  0x15   :  { %413 = vmatpush3.bf16.msra.mxu1 %v440_v3  ;;  %214 = vmatpush1.bf16.msra.mxu0 %v441_v4  ;;  %v446_v8 = vld [vmem:[#allocation3 + $0x34] ss:$12 sps:$4 sm:$0xff]   ;;  %v448_v9 = vld [vmem:[#allocation3 + $0x38] ss:$12 sps:$4 sm:$0xff]   ;;  %v449_v10 = vld [vmem:[#allocation3 + $0x30] ss:$12 sps:$4 sm:$0xff]  }
  0x16   :  { %414 = vmatprep.subr.bf16.mxu1 %v498_v0  ;;  %215 = vmatprep.subr.bf16.mxu0 %v442_v5  ;;  %v450_v11 = vld [vmem:[#allocation3 + $0x4c] ss:$12 sps:$4 sm:$0xff]   ;;  %v452_v12 = vld [vmem:[#allocation3 + $0x50] ss:$12 sps:$4 sm:$0xff]   ;;  %v453_v13 = vld [vmem:[#allocation3 + $0x48] ss:$12 sps:$4 sm:$0xff]  }
  0x17   :  { %v454_v14 = vld [vmem:[#allocation3 + $0x64] ss:$12 sps:$4 sm:$0xff]   ;;  %v456_v15 = vld [vmem:[#allocation3 + $0x68] ss:$12 sps:$4 sm:$0xff]   ;;  %v457_v16 = vld [vmem:[#allocation3 + $0x60] ss:$12 sps:$4 sm:$0xff]  }
  0x18   :  { %v458_v17 = vld [vmem:[#allocation3 + $0x7c] ss:$12 sps:$4 sm:$0xff]   ;;  %v460_v18 = vld [vmem:[#allocation3 + $0x80] ss:$12 sps:$4 sm:$0xff]   ;;  %v461_v19 = vld [vmem:[#allocation3 + $0x78] ss:$12 sps:$4 sm:$0xff]  }
  0x19   :  { %415 = vmatpush3.bf16.msra.mxu1 %v444_v6  ;;  %216 = vmatpush1.bf16.msra.mxu0 %v445_v7  ;;  %v462_v20 = vld [vmem:[#allocation3 + $0x94] ss:$12 sps:$4 sm:$0xff]   ;;  %v464_v21 = vld [vmem:[#allocation3 + $0x98] ss:$12 sps:$4 sm:$0xff]   ;;  %v465_v22 = vld [vmem:[#allocation3 + $0x90] ss:$12 sps:$4 sm:$0xff]  }
  0x1a   :  { %416 = vmatprep.subr.bf16.mxu1 %v498_v0  ;;  %217 = vmatprep.subr.bf16.mxu0 %v446_v8  ;;  %v466_v23 = vld [vmem:[#allocation3 + $0xac] ss:$12 sps:$4 sm:$0xff]   ;;  %v468_v24 = vld [vmem:[#allocation3 + $0xb0] ss:$12 sps:$4 sm:$0xff]   ;;  %v469_v25 = vld [vmem:[#allocation3 + $0xa8] ss:$12 sps:$4 sm:$0xff]  }
  0x1b   :  { %v321_v28 = vshrl.u32 %v320_v27, 7  ;;  %v318_v30 = vld [vmem:[%s553_s2] sm:$0x7] }
  0x1d   :  { %417 = vmatpush3.bf16.msra.mxu1 %v448_v9  ;;  %218 = vmatpush1.bf16.msra.mxu0 %v449_v10  ;;  %v330_v29 = vsub.s32 2, %v321_v28  ;;  %v322_v31 = vsub.s32 0, %v321_v28  ;;  %v326_v32 = vsub.s32 1, %v321_v28 }
  0x1e   :  { %418 = vmatprep.subr.bf16.mxu1 %v498_v0  ;;  %219 = vmatprep.subr.bf16.mxu0 %v450_v11 }
  0x1f   :  { %v331_v33 = vrot.slane %v318_v30, %v330_v29  ;;  %v323_v34 = vrot.slane %v318_v30, %v322_v31  ;;  %v327_v35 = vrot.slane %v318_v30, %v326_v32 }
  0x21   :  { %419 = vmatpush3.bf16.msra.mxu1 %v452_v12  ;;  %220 = vmatpush1.bf16.msra.mxu0 %v453_v13 }
  0x22   :  { %420 = vmatprep.subr.bf16.mxu1 %v498_v0  ;;  %221 = vmatprep.subr.bf16.mxu0 %v454_v14 }
  0x25   :  { %421 = vmatpush3.bf16.msra.mxu1 %v456_v15  ;;  %222 = vmatpush1.bf16.msra.mxu0 %v457_v16 }
  0x26   :  { %422 = vmatprep.subr.bf16.mxu1 %v498_v0  ;;  %223 = vmatprep.subr.bf16.mxu0 %v458_v17 }
  0x29   :  { %423 = vmatpush3.bf16.msra.mxu1 %v460_v18  ;;  %224 = vmatpush1.bf16.msra.mxu0 %v461_v19 }
  0x2a   :  { %424 = vmatprep.subr.bf16.mxu1 %v498_v0  ;;  %225 = vmatprep.subr.bf16.mxu0 %v462_v20 }
  0x2d   :  { %425 = vmatpush3.bf16.msra.mxu1 %v464_v21  ;;  %226 = vmatpush1.bf16.msra.mxu0 %v465_v22 }
  0x2e   :  { %426 = vmatprep.subr.bf16.mxu1 %v498_v0  ;;  %227 = vmatprep.subr.bf16.mxu0 %v466_v23 }
  0x31   :  { %427 = vmatpush3.bf16.msra.mxu1 %v468_v24  ;;  %228 = vmatpush1.bf16.msra.mxu0 %v469_v25 }
  0x34   :  { %429 = vmatmul.mubr.bf16.vlgmr.msra.gmra.mrb[0].mxu1 %v470_v26  ;;  %246 = vmatmul.mubr.bf16.vlgmr.msra.gmra.mrb[0].mxu0 %v470_v26 }
 0x107   :  { %v290_v36 = vpop.f32.mrb[0].mxu1  ;;  %v247_v38 = vpop.f32.mrb[0].mxu0 }
 0x108   :  { %v337_v37 = vadd.f32 %v331_v33, %v290_v36  ;;  %v430_v39 = vpop.f32.mrb[1].mxu1  ;;  %v335_v40 = vadd.f32 %v323_v34, %v247_v38  ;;  %v249_v41 = vpop.f32.mrb[1].mxu0 }
 0x109   :  { %v293_v42 = vpop.f32.mrb[2].mxu1  ;;  %v336_v44 = vadd.f32 %v327_v35, %v249_v41  ;;  %v251_v46 = vpop.f32.mrb[2].mxu0 }
 0x10a   :  { %v400_v43 = vpack.c.bf16 %v337_v37, %v337_v37  ;;  %v340_v45 = vadd.f32 %v331_v33, %v293_v42  ;;  %v431_v47 = vpop.f32.mrb[3].mxu1  ;;  %v338_v48 = vadd.f32 %v323_v34, %v251_v46  ;;  %v253_v49 = vpop.f32.mrb[3].mxu0 }
 0x10b   :  { %v399_v50 = vpack.c.bf16 %v336_v44, %v335_v40  ;;  %v339_v52 = vadd.f32 %v327_v35, %v253_v49 }
 0x10c   :  { %362 = vst [vmem:[%s554_s3 + $0x8] sm:$0xf] %v400_v43  ;;  %v402_v51 = vpack.c.bf16 %v340_v45, %v340_v45 }
 0x10d   :  { %361 = vst [vmem:[%s554_s3] sm:$0xff] %v399_v50  ;;  %v401_v53 = vpack.c.bf16 %v339_v52, %v338_v48 }
 0x10e   :  { %364 = vst [vmem:[%s554_s3 + $0x14] sm:$0xf] %v402_v51 }
 0x10f   :  { %363 = vst [vmem:[%s554_s3 + $0xc] sm:$0xff] %v401_v53 }
 0x110   :  { %369 = vsyncpa [#allocation4], 1 }

// kernel: transformer_forward.37
= control target key start
LH: loop header
LB: loop body
LE: loop exit
PB: predicated region body
PF: predicated region fallthrough
CT: control target
= control target key end

     0   :  { %s1170_s12 = smov 0   ;;  %s1172_s13 = smov 0   ;;  %s1351_s0 = inlined_call_operand.vmem [shape: bf16[8,8,32], index: 0, kind: input, shape index: {}]   ;;  %s1352_s1 = inlined_call_operand.vmem [shape: bf16[8,8,32], index: 1, kind: input, shape index: {}]   ;;  %s1353_s2 = inlined_call_operand.vmem [shape: bf16[8,8,32], index: 2, kind: input, shape index: {}]   ;;  %s1354_s3 = inlined_call_operand.vmem [shape: bf16[8,8,32], index: 3, kind: output, shape index: {}]  }
   0x1   :  { %s1174_s14 = smov 0  }
   0x2 LB: > { %s32_s15 = sadd.s32 1, %s1140_s13  ;;  %p985_p0 = scmp.ge.s32.totalorder %s1144_s14, 1  ;;  %s1144_s14 = sphi %s1174_s14, %s13_s14   ;;  %s1140_s13 = sphi %s1172_s13, %s1356_s13   ;;  %s1136_s12 = sphi %s1170_s12, %s1355_s12  }
   0x3   : > { %p34_p1 = scmp.ge.s32.totalorder %s32_s15, 2  ;;  %p196_p2 = scmp.lt.s32.totalorder %s1144_s14, 3 }
   0x5   : > { %s1358_s15 = smov (%p34_p1, %s32_s15), 0  ;;  %p197_p3 = pnand %p985_p0, %p196_p2 }
   0x6   : > { %s986_s16 = sshll.u32 (!%p197_p3), %s1136_s12, 2  ;;  %vm293_vm0 = vcmask (!%p197_p3), 261120   ;;  %v1146_v0 = vmov (!%p197_p3), 0.0   ;;  %vm1147_vm1 = vmmov (!%p197_p3), 0   ;;  %vm284_vm2 = vcmask (!%p197_p3), 7168  }
   0x7   : > { %200 = sbr.rel (%p197_p3) target bundleno = 835 (0x343), region = 32  ;;  %1020 = vmatprep.subr.bf16.mxu0 (!%p197_p3), %v1146_v0  ;;  %p243_p4 = scmp.lt.s32.totalorder (!%p197_p3), %s986_s16, 7  ;;  %294 = vst.msk [vmem:[#allocation4] sm:$0xff] (!%p197_p3), %vm293_vm0, %v1146_v0  ;;  %295 = vst.msk [vmem:[#allocation4 + $0x8] sm:$0xff] (!%p197_p3), %vm293_vm0, %v1146_v0  ;;  %1026 = vmatprep.subr.bf16.mxu1 (!%p197_p3), %v1146_v0  ;;  %v1148_v17 = vmov (!%p197_p3), -1e+30  }
   0x8   : > { %296 = vst.msk [vmem:[#allocation4 + $0x10] sm:$0xff] (!%p197_p3), %vm293_vm0, %v1146_v0  ;;  %297 = vst.msk [vmem:[#allocation4 + $0x18] sm:$0xff] (!%p197_p3), %vm293_vm0, %v1146_v0  ;;  %1022 = vmatprep.mubr.msk.bf16.mxu0 (!%p197_p3), %vm1147_vm1, %v1146_v0  ;;  %1028 = vmatprep.mubr.msk.bf16.mxu1 (!%p197_p3), %vm1147_vm1, %v1146_v0  ;;  %vm499_vm3 = vcmask (!%p197_p3), 64512   ;;  %v1149_v38 = vmov (!%p197_p3), 0   ;;  %vm628_vm4 = vcmask (!%p197_p3), 1043456   ;;  %vm865_vm5 = vcmask (!%p197_p3), 257024  }
   0x9   : > { %285 = vst.msk [vmem:[#allocation2] sm:$0xff] (!%p197_p3), %vm284_vm2, %v1148_v17  ;;  %286 = vst.msk [vmem:[#allocation2 + $0x8] sm:$0xff] (!%p197_p3), %vm284_vm2, %v1148_v17  ;;  %1096 = vset.pattern.permute.xlu0 (!%p197_p3), %v1149_v38  ;;  %1097 = vset.pattern.permute.xlu1 (!%p197_p3), %v1149_v38 }
   0xa   : > { %287 = vst.msk [vmem:[#allocation2 + $0x10] sm:$0xff] (!%p197_p3), %vm284_vm2, %v1148_v17  ;;  %288 = vst.msk [vmem:[#allocation2 + $0x18] sm:$0xff] (!%p197_p3), %vm284_vm2, %v1148_v17 }
   0xb   : > { %289 = vst.msk [vmem:[#allocation3] sm:$0xff] (!%p197_p3), %vm284_vm2, %v1146_v0  ;;  %290 = vst.msk [vmem:[#allocation3 + $0x8] sm:$0xff] (!%p197_p3), %vm284_vm2, %v1146_v0 }
   0xc   : > { %291 = vst.msk [vmem:[#allocation3 + $0x10] sm:$0xff] (!%p197_p3), %vm284_vm2, %v1146_v0  ;;  %292 = vst.msk [vmem:[#allocation3 + $0x18] sm:$0xff] (!%p197_p3), %vm284_vm2, %v1146_v0 }
   0xe   : > { %s1360_s16 = smov (!%p243_p4, %s986_s16), 7 }
   0xf   : > { %s1202_s17 = sshll.u32 %s1360_s16, 2 }
  0x10   : > { %s258_s20 = scalar_lea.vmem %s1352_s1, %s1202_s17  ;;  %s249_s23 = scalar_lea.vmem %s1351_s0, %s1202_s17  ;;  %v1260_v39 = vld [vmem:[#allocation2] sm:$0xff]  ;;  %v1265_v42 = vld [vmem:[#allocation2 + $0x8] sm:$0xff] }
  0x11   : > { %v306_v1 = vld [vmem:[%s258_s20] sm:$0xf]  ;;  %v307_v2 = vld [vmem:[%s258_s20 + $0x4] sm:$0xf]  ;;  %v308_v7 = vld [vmem:[%s258_s20 + $0x8] sm:$0xf]  ;;  %s267_s26 = scalar_lea.vmem %s1353_s2, %s1202_s17  ;;  %s276_s29 = scalar_lea.vmem %s1354_s3, %s1202_s17 }
  0x12   : > { %v315_v3 = vsel %vm293_vm0, %v306_v1, 0  ;;  %v361_v4 = vsel %vm293_vm0, %v307_v2, 0  ;;  %v298_v5 = vld [vmem:[%s249_s23] sm:$0xf]  ;;  %v299_v6 = vld [vmem:[%s249_s23 + $0x4] sm:$0xf] }
  0x13   : > { %1021 = vmatpush3.bf16.xpose.msra.mxu0 %v315_v3  ;;  %1027 = vmatpush3.bf16.xpose.msra.mxu1 %v361_v4  ;;  %v309_v8 = vld [vmem:[%s258_s20 + $0xc] sm:$0xf]  ;;  %v302_v9 = vmul.bf16 1043676725, %v298_v5  ;;  %v303_v10 = vmul.bf16 1043676725, %v299_v6 }
  0x14   : > { %1032 = vmatprep.subr.bf16.mxu0 %v1146_v0  ;;  %1038 = vmatprep.subr.bf16.mxu1 %v1146_v0  ;;  %v407_v11 = vsel %vm293_vm0, %v308_v7, 0  ;;  %v453_v12 = vsel %vm293_vm0, %v309_v8, 0  ;;  %v300_v13 = vld [vmem:[%s249_s23 + $0x8] sm:$0xf]  ;;  %v301_v14 = vld [vmem:[%s249_s23 + $0xc] sm:$0xf] }
  0x15   : > { %v304_v15 = vmul.bf16 1043676725, %v300_v13  ;;  %v305_v16 = vmul.bf16 1043676725, %v301_v14  ;;  %v1275_v46 = vld [vmem:[#allocation2 + $0x10] sm:$0xff]  ;;  %v1285_v50 = vld [vmem:[#allocation2 + $0x18] sm:$0xff] }
  0x16   : > { %v621_v55 = vld [vmem:[%s267_s26] sm:$0xf]  ;;  %v622_v57 = vld [vmem:[%s267_s26 + $0x4] sm:$0xf]  ;;  %v623_v59 = vld [vmem:[%s267_s26 + $0x8] sm:$0xf] }
  0x17   : > { %v630_v56 = vsel %vm628_vm4, %v621_v55, 0  ;;  %v676_v58 = vsel %vm628_vm4, %v622_v57, 0  ;;  %v722_v60 = vsel %vm628_vm4, %v623_v59, 0  ;;  %v624_v61 = vld [vmem:[%s267_s26 + $0xc] sm:$0xf]  ;;  %v562_v38 = vld [vmem:[#allocation3 + $0x10] sm:$0xff] }
  0x18   : > { %v768_v62 = vsel %vm628_vm4, %v624_v61, 0 }
  0x1a   : > { %1023 = vmatmul.mubr.msk.bf16.vlgmr.msra.gmra.mrb[0].mxu0 %vm293_vm0, %v302_v9  ;;  %1029 = vmatmul.mubr.msk.bf16.vlgmr.msra.gmra.mrb[0].mxu1 %vm293_vm0, %v303_v10 }
  0x1b   : > { %1033 = vmatpush3.bf16.xpose.msra.mxu0 %v407_v11  ;;  %1039 = vmatpush3.bf16.xpose.msra.mxu1 %v453_v12 }
  0x1c   : > { %1034 = vmatprep.mubr.msk.bf16.mxu0 %vm1147_vm1, %v1146_v0  ;;  %1040 = vmatprep.mubr.msk.bf16.mxu1 %vm1147_vm1, %v1146_v0 }
  0x1d   : > { %1044 = vmatprep.subr.bf16.mxu0 %v1146_v0  ;;  %1050 = vmatprep.subr.bf16.mxu1 %v1146_v0 }
  0x22   : > { %1035 = vmatmul.mubr.msk.bf16.vlgmr.msra.gmra.mrb[4].mxu0 %vm293_vm0, %v304_v15  ;;  %1041 = vmatmul.mubr.msk.bf16.vlgmr.msra.gmra.mrb[4].mxu1 %vm293_vm0, %v305_v16 }
  0x23   : > { %1046 = vmatprep.mubr.msk.bf16.mxu0 %vm1147_vm1, %v1146_v0  ;;  %1052 = vmatprep.mubr.msk.bf16.mxu1 %vm1147_vm1, %v1146_v0 }
  0x24   : > { %1045 = vmatpush3.bf16.msra.mxu0 %v630_v56  ;;  %1051 = vmatpush3.bf16.msra.mxu1 %v676_v58 }
  0x25   : > { %1056 = vmatprep.subr.bf16.mxu0 %v1146_v0  ;;  %1062 = vmatprep.subr.bf16.mxu1 %v1146_v0 }
  0xed   : > { %v1244_v18 = vpop.f32.mrb[0].mxu0  ;;  %v1246_v19 = vpop.f32.mrb[0].mxu1 }
  0xee   : > { %v1024_v20 = vpop.f32.mrb[1].mxu0  ;;  %v500_v21 = vsel %vm499_vm3, %v1244_v18, -inf  ;;  %v1030_v22 = vpop.f32.mrb[1].mxu1  ;;  %v503_v27 = vsel %vm499_vm3, %v1246_v19, -inf }
  0xef   : > { %501 = vmax.xlane.f32.xlu0 %v500_v21  ;;  %v354_v23 = vpop.f32.mrb[2].mxu0  ;;  %v400_v24 = vpop.f32.mrb[2].mxu1 }
  0xf0   : > { %v1025_v25 = vpop.f32.mrb[3].mxu0  ;;  %v1031_v26 = vpop.f32.mrb[3].mxu1 }
  0xf3   : > { %504 = vmax.xlane.f32.xlu0 %v503_v27 }
  0xf5   : > { %v1252_v28 = vpop.f32.mrb[4].mxu0  ;;  %v1254_v29 = vpop.f32.mrb[4].mxu1 }
  0xf6   : > { %v1036_v30 = vpop.f32.mrb[5].mxu0  ;;  %v506_v31 = vsel %vm499_vm3, %v1252_v28, -inf  ;;  %v1042_v32 = vpop.f32.mrb[5].mxu1  ;;  %v509_v37 = vsel %vm499_vm3, %v1254_v29, -inf }
  0xf7   : > { %507 = vmax.xlane.f32.xlu1 %v506_v31  ;;  %v446_v33 = vpop.f32.mrb[6].mxu0  ;;  %v492_v34 = vpop.f32.mrb[6].mxu1  ;;  %v560_v31 = vld [vmem:[#allocation3] sm:$0xff] }
  0xf8   : > { %v1037_v35 = vpop.f32.mrb[7].mxu0  ;;  %v1043_v36 = vpop.f32.mrb[7].mxu1  ;;  %v561_v34 = vld [vmem:[#allocation3 + $0x8] sm:$0xff] }
  0xfb   : > { %510 = vmax.xlane.f32.xlu1 %v509_v37 }
 0x17c   : > { %v502_v40 = vpop.xlane.xlu0 %501 }
 0x17d   : > { %v1263_v41 = vmax.f32 %v1260_v39, %v502_v40 }
 0x17f   : > { %v516_v43 = vsub.f32 %v1260_v39, %v1263_v41  ;;  %818 = vst.msk [vmem:[#allocation2] sm:$0xff] %vm284_vm2, %v1263_v41  ;;  %530 = vperm.xlu0 %1096, %v1263_v41  }
 0x180   : > { %v505_v44 = vpop.xlane.xlu0 %504 }
 0x181   : > { %v1273_v45 = vmax.f32 %v1265_v42, %v505_v44 }
 0x183   : > { %v517_v47 = vsub.f32 %v1265_v42, %v1273_v45  ;;  %819 = vst.msk [vmem:[#allocation2 + $0x8] sm:$0xff] %vm284_vm2, %v1273_v45  ;;  %535 = vperm.xlu1 %1097, %v1273_v45   ;;  %v563_v42 = vld [vmem:[#allocation3 + $0x18] sm:$0xff] }
 0x184   : > { %v508_v48 = vpop.xlane.xlu1 %507 }
 0x185   : > { %v1283_v49 = vmax.f32 %v1275_v46, %v508_v48  ;;  %v522_v22 = vmul.f32 1.442695, %v517_v47 }
 0x187   : > { %v518_v51 = vsub.f32 %v1275_v46, %v1283_v49  ;;  %820 = vst.msk [vmem:[#allocation2 + $0x10] sm:$0xff] %vm284_vm2, %v1283_v49  ;;  %540 = vperm.xlu1 %1097, %v1283_v49  }
 0x188   : > { %v511_v52 = vpop.xlane.xlu1 %510 }
 0x189   : > { %v515_v53 = vmax.f32 %v1285_v50, %v511_v52  ;;  %v524_v26 = vmul.f32 1.442695, %v518_v51  ;;  %v589_v51 = vld [vmem:[#allocation4] sm:$0xff] }
 0x18b   : > { %v519_v54 = vsub.f32 %v1285_v50, %v515_v53  ;;  %821 = vst.msk [vmem:[#allocation2 + $0x18] sm:$0xff] %vm284_vm2, %v515_v53  ;;  %545 = vperm.xlu1 %1097, %v515_v53  }
 0x18d   : > { %v526_v25 = vmul.f32 1.442695, %v519_v54  ;;  %v590_v54 = vld [vmem:[#allocation4 + $0x8] sm:$0xff] }
 0x1fe   : > { %v531_v63 = vpop.permute.xlu0 %530 }
 0x1ff   : > { %v548_v1 = vsub.f32 %v1244_v18, %v531_v63 }
 0x201   : > { %v552_v2 = vmul.f32 1.442695, %v548_v1 }
 0x202   : > { %v536_v3 = vpop.permute.xlu1 %535 }
 0x203   : > { %1098 = vpow2.f32 %v552_v2  ;;  %v549_v4 = vsub.f32 %v1246_v19, %v536_v3 }
 0x205   : > { %v554_v5 = vmul.f32 1.442695, %v549_v4 }
 0x206   : > { %v541_v6 = vpop.permute.xlu1 %540 }
 0x207   : > { %1100 = vpow2.f32 %v554_v5  ;;  %v550_v7 = vsub.f32 %v1252_v28, %v541_v6 }
 0x209   : > { %v556_v8 = vmul.f32 1.442695, %v550_v7  ;;  %v592_v7 = vld [vmem:[#allocation4 + $0x18] sm:$0xff] }
 0x20a   : > { %v546_v9 = vpop.permute.xlu1 %545 }
 0x20b   : > { %1102 = vpow2.f32 %v556_v8  ;;  %v551_v10 = vsub.f32 %v1254_v29, %v546_v9 }
 0x20d   : > { %v1099_v11 = vpop.eup %1098  ;;  %v558_v12 = vmul.f32 1.442695, %v551_v10 }
 0x20e   : > { %v568_v13 = vsel %vm499_vm3, %v1099_v11, 0.0  ;;  %v617_v14 = vpack.c.bf16 %v1099_v11, %v1099_v11 }
 0x20f   : > { %1104 = vpow2.f32 %v558_v12  ;;  %569 = vadd.xlane.f32.xlu1 %v568_v13 }
 0x210   : > { %1047 = vmatmul.mubr.msk.bf16.vlgmr.msra.gmra.mrb[8].mxu0 %vm499_vm3, %v617_v14  ;;  %1106 = vpow2.f32 %v522_v22 }
 0x211   : > { %v1101_v15 = vpop.eup %1100  ;;  %1057 = vmatpush3.bf16.msra.mxu0 %v722_v60  ;;  %1058 = vmatprep.mubr.msk.bf16.mxu0 %vm1147_vm1, %v1146_v0 }
 0x212   : > { %v571_v16 = vsel %vm499_vm3, %v1101_v15, 0.0  ;;  %v618_v17 = vpack.c.bf16 %v1101_v15, %v1101_v15 }
 0x213   : > { %572 = vadd.xlane.f32.xlu0 %v571_v16 }
 0x214   : > { %1053 = vmatmul.mubr.msk.bf16.vlgmr.msra.gmra.mrb[8].mxu1 %vm499_vm3, %v618_v17 }
 0x215   : > { %v1103_v18 = vpop.eup %1102  ;;  %1063 = vmatpush3.bf16.msra.mxu1 %v768_v62  ;;  %1064 = vmatprep.mubr.msk.bf16.mxu1 %vm1147_vm1, %v1146_v0  ;;  %v520_v0 = vmul.f32 1.442695, %v516_v43  ;;  %v591_v62 = vld [vmem:[#allocation4 + $0x10] sm:$0xff] }
 0x216   : > { %v574_v19 = vsel %vm499_vm3, %v1103_v18, 0.0  ;;  %v619_v20 = vpack.c.bf16 %v1103_v18, %v1103_v18 }
 0x217   : > { %575 = vadd.xlane.f32.xlu1 %v574_v19  ;;  %1108 = vpow2.f32 %v520_v0 }
 0x218   : > { %1059 = vmatmul.mubr.msk.bf16.vlgmr.msra.gmra.mrb[12].mxu0 %vm499_vm3, %v619_v20  ;;  %1110 = vpow2.f32 %v526_v25 }
 0x219   : > { %v1105_v21 = vpop.eup %1104  ;;  %1112 = vpow2.f32 %v524_v26 }
 0x21a   : > { %v577_v23 = vsel %vm499_vm3, %v1105_v21, 0.0  ;;  %v620_v24 = vpack.c.bf16 %v1105_v21, %v1105_v21  ;;  %v1107_v27 = vpop.eup %1106 }
 0x21b   : > { %578 = vadd.xlane.f32.xlu1 %v577_v23  ;;  %v565_v36 = vmul.f32 %v1107_v27, %v561_v34 }
 0x21c   : > { %1065 = vmatmul.mubr.msk.bf16.vlgmr.msra.gmra.mrb[12].mxu1 %vm499_vm3, %v620_v24 }
 0x221   : > { %v1109_v28 = vpop.eup %1108 }
 0x222   : > { %v1111_v29 = vpop.eup %1110  ;;  %v564_v32 = vmul.f32 %v1109_v28, %v560_v31 }
 0x223   : > { %v1113_v30 = vpop.eup %1112  ;;  %v567_v45 = vmul.f32 %v1111_v29, %v563_v42 }
 0x224   : > { %v566_v40 = vmul.f32 %v1113_v30, %v562_v38 }
 0x229   : > { %600 = vperm.xlu0 %1096, %v1107_v27  }
 0x22c   : > { %595 = vperm.xlu1 %1097, %v1109_v28  }
 0x22d   : > { %610 = vperm.xlu0 %1096, %v1111_v29  }
 0x230   : > { %605 = vperm.xlu1 %1097, %v1113_v30  }
 0x29c   : > { %v570_v33 = vpop.xlane.xlu1 %569 }
 0x29d   : > { %v580_v35 = vadd.f32 %v570_v33, %v564_v32 }
 0x29f   : > { %585 = vst.msk [vmem:[#allocation3] sm:$0xff] %vm284_vm2, %v580_v35 }
 0x2a0   : > { %v573_v37 = vpop.xlane.xlu0 %572 }
 0x2a1   : > { %v581_v39 = vadd.f32 %v573_v37, %v565_v36 }
 0x2a3   : > { %586 = vst.msk [vmem:[#allocation3 + $0x8] sm:$0xff] %vm284_vm2, %v581_v39 }
 0x2a4   : > { %v576_v41 = vpop.xlane.xlu1 %575 }
 0x2a5   : > { %v582_v43 = vadd.f32 %v576_v41, %v566_v40 }
 0x2a6   : > { %v829_v44 = vld [vmem:[#allocation3] sm:$0xff] }
 0x2a7   : > { %587 = vst.msk [vmem:[#allocation3 + $0x10] sm:$0xff] %vm284_vm2, %v582_v43  ;;  %835 = vperm.xlu1 %1097, %v829_v44  }
 0x2a8   : > { %v579_v46 = vpop.xlane.xlu1 %578  ;;  %v601_v55 = vpop.permute.xlu0 %600 }
 0x2a9   : > { %v583_v47 = vadd.f32 %v579_v46, %v567_v45  ;;  %v614_v60 = vmul.f32 %v601_v55, %v590_v54 }
 0x2aa   : > { %v830_v48 = vld [vmem:[#allocation3 + $0x8] sm:$0xff] }
 0x2ab   : > { %588 = vst.msk [vmem:[#allocation3 + $0x18] sm:$0xff] %vm284_vm2, %v583_v47  ;;  %840 = vperm.xlu1 %1097, %v830_v48  }
 0x2ac   : > { %v596_v52 = vpop.permute.xlu1 %595  ;;  %v611_v8 = vpop.permute.xlu0 %610 }
 0x2ad   : > { %v613_v53 = vmul.f32 %v596_v52, %v589_v51  ;;  %v616_v13 = vmul.f32 %v611_v8, %v592_v7 }
 0x2ae   : > { %v831_v49 = vld [vmem:[#allocation3 + $0x10] sm:$0xff] }
 0x2af   : > { %845 = vperm.xlu1 %1097, %v831_v49  }
 0x2b0   : > { %v606_v63 = vpop.permute.xlu1 %605 }
 0x2b1   : > { %v615_v5 = vmul.f32 %v606_v63, %v591_v62 }
 0x2b2   : > { %v832_v50 = vld [vmem:[#allocation3 + $0x18] sm:$0xff] }
 0x2b3   : > { %850 = vperm.xlu0 %1096, %v832_v50  }
 0x2e3   : > { %v666_v56 = vpop.f32.mrb[8].mxu0 }
 0x2e4   : > { %v810_v57 = vadd.f32 %v666_v56, %v613_v53  ;;  %v1048_v58 = vpop.f32.mrb[9].mxu0 }
 0x2e5   : > { %v669_v59 = vpop.f32.mrb[10].mxu0 }
 0x2e6   : > { %814 = vst.msk [vmem:[#allocation4] sm:$0xff] %vm293_vm0, %v810_v57  ;;  %v1049_v61 = vpop.f32.mrb[11].mxu0 }
 0x2e7   : > { %v712_v1 = vpop.f32.mrb[8].mxu1 }
 0x2e8   : > { %v811_v2 = vadd.f32 %v712_v1, %v614_v60  ;;  %v1054_v3 = vpop.f32.mrb[9].mxu1 }
 0x2e9   : > { %v715_v4 = vpop.f32.mrb[10].mxu1 }
 0x2ea   : > { %815 = vst.msk [vmem:[#allocation4 + $0x8] sm:$0xff] %vm293_vm0, %v811_v2  ;;  %v1055_v6 = vpop.f32.mrb[11].mxu1 }
 0x2eb   : > { %v758_v9 = vpop.f32.mrb[12].mxu0 }
 0x2ec   : > { %v812_v10 = vadd.f32 %v758_v9, %v615_v5  ;;  %v1060_v11 = vpop.f32.mrb[13].mxu0 }
 0x2ed   : > { %v761_v12 = vpop.f32.mrb[14].mxu0  ;;  %v825_v24 = vld [vmem:[#allocation4] sm:$0xff] }
 0x2ee   : > { %816 = vst.msk [vmem:[#allocation4 + $0x10] sm:$0xff] %vm293_vm0, %v812_v10  ;;  %v1061_v14 = vpop.f32.mrb[15].mxu0 }
 0x2ef   : > { %v804_v15 = vpop.f32.mrb[12].mxu1 }
 0x2f0   : > { %v813_v16 = vadd.f32 %v804_v15, %v616_v13  ;;  %v1066_v17 = vpop.f32.mrb[13].mxu1 }
 0x2f1   : > { %v807_v18 = vpop.f32.mrb[14].mxu1  ;;  %v826_v28 = vld [vmem:[#allocation4 + $0x8] sm:$0xff] }
 0x2f2   : > { %817 = vst.msk [vmem:[#allocation4 + $0x18] sm:$0xff] %vm293_vm0, %v813_v16  ;;  %v1067_v19 = vpop.f32.mrb[15].mxu1 }
 0x2f5   : > { %v827_v32 = vld [vmem:[#allocation4 + $0x10] sm:$0xff] }
 0x2f9   : > { %v828_v36 = vld [vmem:[#allocation4 + $0x18] sm:$0xff] }
 0x326   : > { %v836_v20 = vpop.permute.xlu1 %835 }
 0x327   : > { %1114 = vrcp.f32 %v836_v20 }
 0x32a   : > { %v841_v21 = vpop.permute.xlu1 %840 }
 0x32b   : > { %1116 = vrcp.f32 %v841_v21 }
 0x32e   : > { %v846_v22 = vpop.permute.xlu1 %845 }
 0x32f   : > { %1118 = vrcp.f32 %v846_v22 }
 0x331   : > { %v1115_v23 = vpop.eup %1114 }
 0x332   : > { %v854_v0 = vmul.f32 %v1115_v23, %v825_v24  ;;  %v851_v25 = vpop.permute.xlu0 %850 }
 0x333   : > { %1120 = vrcp.f32 %v851_v25 }
 0x334   : > { %v861_v26 = vpack.c.bf16 %v854_v0, %v854_v0 }
 0x335   : > { %v1117_v27 = vpop.eup %1116 }
 0x336   : > { %866 = vst.msk [vmem:[%s276_s29] sm:$0xf] %vm865_vm5, %v861_v26  ;;  %v856_v29 = vmul.f32 %v1117_v27, %v826_v28 }
 0x338   : > { %v862_v30 = vpack.c.bf16 %v856_v29, %v856_v29 }
 0x339   : > { %v1119_v31 = vpop.eup %1118 }
 0x33a   : > { %867 = vst.msk [vmem:[%s276_s29 + $0x4] sm:$0xf] %vm865_vm5, %v862_v30  ;;  %v858_v33 = vmul.f32 %v1119_v31, %v827_v32 }
 0x33c   : > { %v863_v34 = vpack.c.bf16 %v858_v33, %v858_v33 }
 0x33d   : > { %v1121_v35 = vpop.eup %1120 }
 0x33e   : > { %868 = vst.msk [vmem:[%s276_s29 + $0x8] sm:$0xf] %vm865_vm5, %v863_v34  ;;  %v860_v37 = vmul.f32 %v1121_v35, %v828_v36 }
 0x340   : > { %v864_v38 = vpack.c.bf16 %v860_v37, %v860_v37 }
 0x342   : > { %869 = vst.msk [vmem:[%s276_s29 + $0xc] sm:$0xf] %vm865_vm5, %v864_v38 }
 0x343 PF: > { %s13_s14 = sadd.s32 1, %s1144_s14   ;;  %s1355_s12 = smov %s1140_s13 }
 0x344   : > { %p10_p5 = scmp.ge.s32.totalorder %s13_s14, 4   ;;  %s1356_s13 = smov %s1358_s15 }
 0x346   :  { %12 = sbr.rel (!%p10_p5) target bundleno = 2 (0x2), region = 76 }

// kernel: transformer_forward.40
= control target key start
LH: loop header
LB: loop body
LE: loop exit
PB: predicated region body
PF: predicated region fallthrough
CT: control target
= control target key end

     0   :  { %8 = vsyncpa [#allocation4], 0  ;;  %s408_s0 = inlined_call_operand.vmem [shape: bf16[16,128], index: 0, kind: input, shape index: {}]   ;;  %s409_s1 = inlined_call_operand.hbm [shape: bf16[128,256], index: 1, kind: input, shape index: {}]   ;;  %s410_s2 = inlined_call_operand.hbm [shape: f32[1,256], index: 2, kind: input, shape index: {}]   ;;  %s411_s3 = inlined_call_operand.vmem [shape: bf16[16,256], index: 3, kind: output, shape index: {}]  }
   0x1   :  { %9 = vsyncpa [#allocation6], 0  ;;  %s350_s12 = smov [#allocation3]   ;;  %s302_s16 = scalar_lea.hbm %s409_s1, 2048 }
   0x2   :  { %s17_s13 = sshll.u32 %s350_s12, 4  ;;  %p303_p0 = scmp.ne.s32.totalorder %s409_s1, %s302_s16  ;;  %s18_s13 = int_to_ptr.vmem [resolvable:$true] %s17_s13 }
   0x3   :  { %p306_p1 = scmp.lt.u32.totalorder %s302_s16, %s409_s1 }
   0x5   :  { %p308_p2 = pnand %p306_p1, %p303_p0 }
   0x7   :  { %311 = shalt.err (!%p308_p2)
}
   0x8   :  { %s312_s21 = scalar_lea.vmem %s18_s13, 2048  ;;  %p317_p4 = scmp.lt.s32.totalorder %s18_s13, %s18_s13 }
   0x9   :  { %p313_p3 = scmp.ne.s32.totalorder %s18_s13, %s312_s21  ;;  %p318_p5 = scmp.lt.s32.totalorder %s312_s21, %s312_s21 }
   0xb   :  { %p319_p6 = por %p318_p5, %p317_p4 }
   0xd   :  { %p320_p7 = pnand %p319_p6, %p313_p3 }
   0xf   :  { %323 = shalt.err (!%p320_p7)
}
  0x10   :  { %s351_s22 = smov 128   ;;  %s352_s23 = smov 8  }
  0x11   :  { %23 = dma.hbm_to_vmem [thread:$0]  %s409_s1, 2048, %s18_s13, [#allocation4], %s351_s22, %s351_s22, %s352_s23  }
  0x12   :  { %s353_s26 = smov [#allocation5]   ;;  %s324_s30 = scalar_lea.hbm %s410_s2, 32 }
  0x13   :  { %s30_s27 = sshll.u32 %s353_s26, 4  ;;  %p325_p8 = scmp.ne.s32.totalorder %s410_s2, %s324_s30  ;;  %s31_s27 = int_to_ptr.vmem [resolvable:$true] %s30_s27 }
  0x14   :  { %p328_p9 = scmp.lt.u32.totalorder %s324_s30, %s410_s2 }
  0x16   :  { %p330_p10 = pnand %p328_p9, %p325_p8 }
  0x18   :  { %333 = shalt.err (!%p330_p10)
}
  0x19   :  { %s334_s8 = scalar_lea.vmem %s31_s27, 32  ;;  %p339_p12 = scmp.lt.s32.totalorder %s31_s27, %s31_s27 }
  0x1a   :  { %p335_p11 = scmp.ne.s32.totalorder %s31_s27, %s334_s8  ;;  %p340_p13 = scmp.lt.s32.totalorder %s334_s8, %s334_s8 }
  0x1c   :  { %p341_p0 = por %p340_p13, %p339_p12 }
  0x1e   :  { %p342_p1 = pnand %p341_p0, %p335_p11 }
  0x20   :  { %345 = shalt.err (!%p342_p1)
}
  0x21   :  { %33 = dma.hbm_to_vmem [thread:$0]  %s410_s2, 32, %s31_s27, [#allocation6]  }
  0x22   :  { %346 = dma.done.wait [#allocation4], 2048  }
  0x23   :  { %347 = vsyncadd [#allocation4], 4294965248 }
  0x24   :  { %348 = dma.done.wait [#allocation6], 32  }
  0x25   :  { %349 = vsyncadd [#allocation6], 4294967264  ;;  %v354_v0 = vmov 0   ;;  %v277_v1 = vld [vmem:[#allocation3 + $0x4] ss:$8 sps:$4 sm:$0xff]   ;;  %v217_v18 = vlaneseq }
  0x26   :  { %189 = vmatprep.mubr.bf16.mxu0 %v354_v0  ;;  %v279_v2 = vld [vmem:[#allocation3] ss:$8 sps:$4 sm:$0xff]   ;;  %157 = vmatprep.subr.bf16.mxu0 %v277_v1  ;;  %v280_v3 = vld [vmem:[#allocation3 + $0x14] ss:$8 sps:$4 sm:$0xff]   ;;  %v282_v4 = vld [vmem:[#allocation3 + $0x10] ss:$8 sps:$4 sm:$0xff]  }
  0x27   :  { %158 = vmatpush1.bf16.msra.mxu0 %v279_v2  ;;  %v283_v5 = vld [vmem:[#allocation3 + $0x24] ss:$8 sps:$4 sm:$0xff]   ;;  %v285_v6 = vld [vmem:[#allocation3 + $0x20] ss:$8 sps:$4 sm:$0xff]   ;;  %v286_v7 = vld [vmem:[#allocation3 + $0x34] ss:$8 sps:$4 sm:$0xff]  }
  0x28   :  { %159 = vmatprep.subr.bf16.mxu0 %v280_v3  ;;  %v288_v8 = vld [vmem:[#allocation3 + $0x30] ss:$8 sps:$4 sm:$0xff]   ;;  %v289_v9 = vld [vmem:[#allocation3 + $0x44] ss:$8 sps:$4 sm:$0xff]   ;;  %v291_v10 = vld [vmem:[#allocation3 + $0x40] ss:$8 sps:$4 sm:$0xff]  }
  0x29   :  { %v292_v11 = vld [vmem:[#allocation3 + $0x54] ss:$8 sps:$4 sm:$0xff]   ;;  %v294_v12 = vld [vmem:[#allocation3 + $0x50] ss:$8 sps:$4 sm:$0xff]   ;;  %v295_v13 = vld [vmem:[#allocation3 + $0x64] ss:$8 sps:$4 sm:$0xff]  }
  0x2a   :  { %v297_v14 = vld [vmem:[#allocation3 + $0x60] ss:$8 sps:$4 sm:$0xff]   ;;  %v298_v15 = vld [vmem:[#allocation3 + $0x74] ss:$8 sps:$4 sm:$0xff]   ;;  %v300_v16 = vld [vmem:[#allocation3 + $0x70] ss:$8 sps:$4 sm:$0xff]  }
  0x2b   :  { %160 = vmatpush1.bf16.msra.mxu0 %v282_v4  ;;  %v301_v17 = vld [vmem:[%s408_s0] sm:$0xff]   ;;  %v218_v19 = vshrl.u32 %v217_v18, 7 }
  0x2c   :  { %161 = vmatprep.subr.bf16.mxu0 %v283_v5  ;;  %v215_v21 = vld [vmem:[#allocation5] sm:$0x3] }
  0x2d   :  { %v219_v20 = vsub.s32 0, %v218_v19  ;;  %v223_v22 = vsub.s32 1, %v218_v19 }
  0x2f   :  { %162 = vmatpush1.bf16.msra.mxu0 %v285_v6  ;;  %v220_v23 = vrot.slane %v215_v21, %v219_v20  ;;  %v224_v24 = vrot.slane %v215_v21, %v223_v22 }
  0x30   :  { %163 = vmatprep.subr.bf16.mxu0 %v286_v7 }
  0x33   :  { %164 = vmatpush1.bf16.msra.mxu0 %v288_v8 }
  0x34   :  { %165 = vmatprep.subr.bf16.mxu0 %v289_v9 }
  0x37   :  { %166 = vmatpush1.bf16.msra.mxu0 %v291_v10 }
  0x38   :  { %167 = vmatprep.subr.bf16.mxu0 %v292_v11 }
  0x3b   :  { %168 = vmatpush1.bf16.msra.mxu0 %v294_v12 }
  0x3c   :  { %169 = vmatprep.subr.bf16.mxu0 %v295_v13 }
  0x3f   :  { %170 = vmatpush1.bf16.msra.mxu0 %v297_v14 }
  0x40   :  { %171 = vmatprep.subr.bf16.mxu0 %v298_v15 }
  0x43   :  { %172 = vmatpush1.bf16.msra.mxu0 %v300_v16 }
  0x46   :  { %190 = vmatmul.mubr.bf16.vlgmr.msra.gmra.mrb[0].mxu0 %v301_v17 }
 0x119   :  { %v191_v25 = vpop.f32.mrb[0].mxu0 }
 0x11a   :  { %v227_v26 = vadd.f32 %v220_v23, %v191_v25  ;;  %v193_v27 = vpop.f32.mrb[1].mxu0 }
 0x11b   :  { %v228_v28 = vadd.f32 %v224_v24, %v193_v27  ;;  %v195_v29 = vpop.f32.mrb[2].mxu0 }
 0x11c   :  { %v229_v30 = vadd.f32 %v220_v23, %v195_v29  ;;  %v197_v31 = vpop.f32.mrb[3].mxu0 }
 0x11d   :  { %v270_v32 = vpack.c.bf16 %v228_v28, %v227_v26  ;;  %v230_v33 = vadd.f32 %v224_v24, %v197_v31 }
 0x11f   :  { %243 = vst [vmem:[%s411_s3] sm:$0xff] %v270_v32  ;;  %v271_v34 = vpack.c.bf16 %v230_v33, %v229_v30 }
 0x121   :  { %244 = vst [vmem:[%s411_s3 + $0x8] sm:$0xff] %v271_v34 }
 0x122   :  { %249 = vsyncpa [#allocation4], 1 }
 0x123   :  { %250 = vsyncpa [#allocation6], 1 }

// kernel: transformer_forward.35
= control target key start
LH: loop header
LB: loop body
LE: loop exit
PB: predicated region body
PF: predicated region fallthrough
CT: control target
= control target key end

     0   :  { %8 = vsyncpa [#allocation3], 0  ;;  %s220_s0 = inlined_call_operand.vmem [shape: bf16[16,128], index: 0, kind: input, shape index: {}]   ;;  %s221_s1 = inlined_call_operand.hbm [shape: f32[1,128], index: 1, kind: input, shape index: {}]   ;;  %s222_s2 = inlined_call_operand.hbm [shape: f32[1,128], index: 2, kind: input, shape index: {}]   ;;  %s223_s3 = inlined_call_operand.vmem [shape: bf16[16,128], index: 3, kind: output, shape index: {}]  }
   0x1   :  { %9 = vsyncpa [#allocation5], 0  ;;  %s168_s12 = smov [#allocation2]   ;;  %s169_s14 = smov [#allocation4]  }
   0x2   :  { %s18_s13 = sshll.u32 %s168_s12, 4  ;;  %s28_s15 = sshll.u32 %s169_s14, 4  ;;  %s19_s13 = int_to_ptr.vmem [resolvable:$true] %s18_s13  ;;  %s29_s15 = int_to_ptr.vmem [resolvable:$true] %s28_s15 }
   0x3   :  { %s120_s18 = scalar_lea.hbm %s221_s1, 16 }
   0x4   :  { %p121_p0 = scmp.ne.s32.totalorder %s221_s1, %s120_s18  ;;  %p124_p1 = scmp.lt.u32.totalorder %s120_s18, %s221_s1 }
   0x6   :  { %p126_p2 = pnand %p124_p1, %p121_p0 }
   0x8   :  { %129 = shalt.err (!%p126_p2)
}
   0x9   :  { %s130_s23 = scalar_lea.vmem %s19_s13, 16  ;;  %s134_s24 = scalar_lea.vmem %s19_s13, 32 }
   0xa   :  { %p131_p3 = scmp.ne.s32.totalorder %s19_s13, %s130_s23  ;;  %p135_p4 = scmp.lt.s32.totalorder %s19_s13, %s19_s13 }
   0xb   :  { %p136_p5 = scmp.lt.s32.totalorder %s134_s24, %s130_s23 }
   0xd   :  { %p137_p6 = por %p136_p5, %p135_p4 }
   0xf   :  { %p138_p7 = pnand %p137_p6, %p131_p3 }
  0x11   :  { %141 = shalt.err (!%p138_p7)
}
  0x12   :  { %21 = dma.hbm_to_vmem [thread:$0]  %s221_s1, 16, %s19_s13, [#allocation3]  }
  0x13   :  { %s142_s29 = scalar_lea.hbm %s222_s2, 16 }
  0x14   :  { %p143_p8 = scmp.ne.s32.totalorder %s222_s2, %s142_s29  ;;  %p146_p9 = scmp.lt.u32.totalorder %s142_s29, %s222_s2 }
  0x16   :  { %p148_p10 = pnand %p146_p9, %p143_p8 }
  0x18   :  { %151 = shalt.err (!%p148_p10)
}
  0x19   :  { %s152_s7 = scalar_lea.vmem %s29_s15, 16  ;;  %s156_s8 = scalar_lea.vmem %s29_s15, 32 }
  0x1a   :  { %p153_p11 = scmp.ne.s32.totalorder %s29_s15, %s152_s7  ;;  %p157_p12 = scmp.lt.s32.totalorder %s29_s15, %s29_s15 }
  0x1b   :  { %p158_p13 = scmp.lt.s32.totalorder %s156_s8, %s152_s7 }
  0x1d   :  { %p159_p0 = por %p158_p13, %p157_p12 }
  0x1f   :  { %p160_p1 = pnand %p159_p0, %p153_p11 }
  0x21   :  { %163 = shalt.err (!%p160_p1)
}
  0x22   :  { %31 = dma.hbm_to_vmem [thread:$0]  %s222_s2, 16, %s29_s15, [#allocation5]  }
  0x23   :  { %164 = dma.done.wait [#allocation3], 16  }
  0x24   :  { %165 = vsyncadd [#allocation3], 4294967280 }
  0x25   :  { %166 = dma.done.wait [#allocation5], 16  }
  0x26   :  { %167 = vsyncadd [#allocation5], 4294967280  ;;  %v106_v0 = vld [vmem:[%s220_s0] sm:$0xff]  }
  0x27   :  { %v107_v1 = vunpack.c.l.bf16 %v106_v0  ;;  %v108_v2 = vunpack.c.h.bf16 %v106_v0  ;;  %v99_v19 = vld [vmem:[#allocation2] ss:$0 sm:$0xff]  ;;  %v100_v23 = vld [vmem:[#allocation4] ss:$0 sm:$0xff] }
  0x29   :  { %42 = vadd.xlane.f32.xlu0 %v107_v1 }
  0x2d   :  { %44 = vadd.xlane.f32.xlu0 %v108_v2 }
  0xb6   :  { %v43_v3 = vpop.xlane.xlu0 %42 }
  0xb7   :  { %v47_v4 = vmul.f32 0.0078125, %v43_v3 }
  0xb9   :  { %v49_v5 = vsub.f32 %v107_v1, %v47_v4 }
  0xba   :  { %v45_v6 = vpop.xlane.xlu0 %44 }
  0xbb   :  { %v48_v7 = vmul.f32 0.0078125, %v45_v6  ;;  %v51_v8 = vmul.f32 %v49_v5, %v49_v5 }
  0xbd   :  { %v50_v9 = vsub.f32 %v108_v2, %v48_v7  ;;  %53 = vadd.xlane.f32.xlu1 %v51_v8 }
  0xbf   :  { %v52_v10 = vmul.f32 %v50_v9, %v50_v9 }
  0xc1   :  { %55 = vadd.xlane.f32.xlu1 %v52_v10 }
 0x14a   :  { %v54_v11 = vpop.xlane.xlu1 %53 }
 0x14b   :  { %v57_v12 = vmul.f32 0.0078125, %v54_v11 }
 0x14d   :  { %v59_v13 = vadd.f32 1e-05, %v57_v12 }
 0x14e   :  { %v56_v14 = vpop.xlane.xlu1 %55 }
 0x14f   :  { %116 = vrsqrt.f32 %v59_v13  ;;  %v58_v15 = vmul.f32 0.0078125, %v56_v14 }
 0x151   :  { %v60_v16 = vadd.f32 1e-05, %v58_v15 }
 0x153   :  { %118 = vrsqrt.f32 %v60_v16 }
 0x159   :  { %v117_v17 = vpop.eup %116 }
 0x15a   :  { %v63_v18 = vmul.f32 %v117_v17, %v49_v5 }
 0x15c   :  { %v72_v21 = vmul.f32 %v99_v19, %v63_v18 }
 0x15d   :  { %v119_v20 = vpop.eup %118 }
 0x15e   :  { %v64_v22 = vmul.f32 %v119_v20, %v50_v9  ;;  %v81_v25 = vadd.f32 %v100_v23, %v72_v21 }
 0x160   :  { %v73_v24 = vmul.f32 %v99_v19, %v64_v22 }
 0x162   :  { %v82_v26 = vadd.f32 %v100_v23, %v73_v24 }
 0x164   :  { %v112_v27 = vpack.c.bf16 %v82_v26, %v81_v25 }
 0x166   :  { %113 = vst [vmem:[%s223_s3] sm:$0xff] %v112_v27  }
 0x167   :  { %97 = vsyncpa [#allocation3], 1 }
 0x168   :  { %98 = vsyncpa [#allocation5], 1 }

// kernel: transformer_forward.30
= control target key start
LH: loop header
LB: loop body
LE: loop exit
PB: predicated region body
PF: predicated region fallthrough
CT: control target
= control target key end

     0   :  { %12 = vsyncpa [#allocation4], 0  ;;  %s917_s0 = inlined_call_operand.vmem [shape: bf16[16,128], index: 0, kind: input, shape index: {}]   ;;  %s918_s1 = inlined_call_operand.hbm [shape: bf16[128,256], index: 1, kind: input, shape index: {}]   ;;  %s919_s2 = inlined_call_operand.hbm [shape: f32[1,256], index: 2, kind: input, shape index: {}]   ;;  %s920_s3 = inlined_call_operand.hbm [shape: bf16[256,128], index: 3, kind: input, shape index: {}]   ;;  %s921_s4 = inlined_call_operand.hbm [shape: f32[1,128], index: 4, kind: input, shape index: {}]   ;;  %s922_s5 = inlined_call_operand.hbm [shape: f32[1,128], index: 5, kind: input, shape index: {}]   ;;  %s923_s6 = inlined_call_operand.hbm [shape: f32[1,128], index: 6, kind: input, shape index: {}]   ;;  %s924_s7 = inlined_call_operand.vmem [shape: bf16[16,128], index: 7, kind: output, shape index: {}]  }
   0x1   :  { %13 = vsyncpa [#allocation6], 0 }
   0x2   :  { %14 = vsyncpa [#allocation9], 0 }
   0x3   :  { %15 = vsyncpa [#allocation12], 0  ;;  %s788_s24 = smov [#allocation5]   ;;  %s789_s26 = smov [#allocation8]  }
   0x4   :  { %s36_s25 = sshll.u32 %s788_s24, 4  ;;  %s58_s27 = sshll.u32 %s789_s26, 4  ;;  %s37_s25 = int_to_ptr.vmem [resolvable:$true] %s36_s25  ;;  %s59_s27 = int_to_ptr.vmem [resolvable:$true] %s58_s27 }
   0x5   :  { %s648_s30 = scalar_lea.hbm %s919_s2, 32 }
   0x6   :  { %p649_p0 = scmp.ne.s32.totalorder %s919_s2, %s648_s30  ;;  %p652_p1 = scmp.lt.u32.totalorder %s648_s30, %s919_s2 }
   0x8   :  { %p654_p2 = pnand %p652_p1, %p649_p0 }
   0xa   :  { %657 = shalt.err (!%p654_p2)
}
   0xb   :  { %s658_s12 = scalar_lea.vmem %s37_s25, 32  ;;  %p663_p4 = scmp.lt.s32.totalorder %s37_s25, %s37_s25 }
   0xc   :  { %p659_p3 = scmp.ne.s32.totalorder %s37_s25, %s658_s12  ;;  %p664_p5 = scmp.lt.s32.totalorder %s658_s12, %s658_s12 }
   0xe   :  { %p665_p6 = por %p664_p5, %p663_p4 }
  0x10   :  { %p666_p7 = pnand %p665_p6, %p659_p3 }
  0x12   :  { %669 = shalt.err (!%p666_p7)
}
  0x13   :  { %39 = dma.hbm_to_vmem [thread:$0]  %s919_s2, 32, %s37_s25, [#allocation6]  }
  0x14   :  { %s670_s17 = scalar_lea.hbm %s921_s4, 16 }
  0x15   :  { %p671_p8 = scmp.ne.s32.totalorder %s921_s4, %s670_s17  ;;  %p674_p9 = scmp.lt.u32.totalorder %s670_s17, %s921_s4 }
  0x17   :  { %p676_p10 = pnand %p674_p9, %p671_p8 }
  0x19   :  { %679 = shalt.err (!%p676_p10)
}
  0x1a   :  { %s680_s22 = scalar_lea.vmem %s59_s27, 16  ;;  %s684_s23 = scalar_lea.vmem %s59_s27, 32 }
  0x1b   :  { %p681_p11 = scmp.ne.s32.totalorder %s59_s27, %s680_s22  ;;  %p685_p12 = scmp.lt.s32.totalorder %s59_s27, %s59_s27 }
  0x1c   :  { %p686_p13 = scmp.lt.s32.totalorder %s684_s23, %s680_s22 }
  0x1e   :  { %p687_p0 = por %p686_p13, %p685_p12 }
  0x20   :  { %p688_p1 = pnand %p687_p0, %p681_p11 }
  0x22   :  { %691 = shalt.err (!%p688_p1)
}
  0x23   :  { %61 = dma.hbm_to_vmem [thread:$0]  %s921_s4, 16, %s59_s27, [#allocation9]  }
  0x24   :  { %s790_s25 = smov [#allocation3]   ;;  %s692_s30 = scalar_lea.hbm %s918_s1, 2048 }
  0x25   :  { %s23_s26 = sshll.u32 %s790_s25, 4  ;;  %p693_p2 = scmp.ne.s32.totalorder %s918_s1, %s692_s30  ;;  %s24_s26 = int_to_ptr.vmem [resolvable:$true] %s23_s26 }
  0x26   :  { %p696_p3 = scmp.lt.u32.totalorder %s692_s30, %s918_s1 }
  0x28   :  { %p698_p4 = pnand %p696_p3, %p693_p2 }
  0x2a   :  { %701 = shalt.err (!%p698_p4)
}
  0x2b   :  { %s702_s12 = scalar_lea.vmem %s24_s26, 2048  ;;  %p707_p6 = scmp.lt.s32.totalorder %s24_s26, %s24_s26 }
  0x2c   :  { %p703_p5 = scmp.ne.s32.totalorder %s24_s26, %s702_s12  ;;  %p708_p7 = scmp.lt.s32.totalorder %s702_s12, %s702_s12 }
  0x2e   :  { %p709_p8 = por %p708_p7, %p707_p6 }
  0x30   :  { %p710_p9 = pnand %p709_p8, %p703_p5 }
  0x32   :  { %713 = shalt.err (!%p710_p9)
}
  0x33   :  { %s791_s4 = smov 128   ;;  %s792_s27 = smov 8  }
  0x34   :  { %29 = dma.hbm_to_vmem [thread:$0]  %s918_s1, 2048, %s24_s26, [#allocation4], %s791_s4, %s791_s4, %s792_s27  }
  0x35   :  { %s793_s15 = smov [#allocation7]   ;;  %s714_s19 = scalar_lea.hbm %s920_s3, 2048 }
  0x36   :  { %s45_s16 = sshll.u32 %s793_s15, 4  ;;  %p715_p10 = scmp.ne.s32.totalorder %s920_s3, %s714_s19  ;;  %s46_s16 = int_to_ptr.vmem [resolvable:$true] %s45_s16 }
  0x37   :  { %p718_p11 = scmp.lt.u32.totalorder %s714_s19, %s920_s3 }
  0x39   :  { %p720_p12 = pnand %p718_p11, %p715_p10 }
  0x3b   :  { %723 = shalt.err (!%p720_p12)
}
  0x3c   :  { %s724_s2 = scalar_lea.vmem %s46_s16, 2048  ;;  %p729_p0 = scmp.lt.s32.totalorder %s46_s16, %s46_s16 }
  0x3d   :  { %p725_p13 = scmp.ne.s32.totalorder %s46_s16, %s724_s2  ;;  %p730_p1 = scmp.lt.s32.totalorder %s724_s2, %s724_s2 }
  0x3f   :  { %p731_p2 = por %p730_p1, %p729_p0 }
  0x41   :  { %p732_p3 = pnand %p731_p2, %p725_p13 }
  0x43   :  { %735 = shalt.err (!%p732_p3)
}
  0x44   :  { %s794_s1 = smov 64   ;;  %s795_s24 = smov 4  }
  0x45   :  { %51 = dma.hbm_to_vmem [thread:$0]  %s920_s3, 2048, %s46_s16, [#allocation6], %s794_s1, %s794_s1, %s795_s24  }
  0x46   :  { %s796_s28 = smov [#allocation10]   ;;  %s797_s30 = smov [#allocation11]  }
  0x47   :  { %s68_s29 = sshll.u32 %s796_s28, 4  ;;  %s78_s8 = sshll.u32 %s797_s30, 4  ;;  %s69_s29 = int_to_ptr.vmem [resolvable:$true] %s68_s29  ;;  %s79_s8 = int_to_ptr.vmem [resolvable:$true] %s78_s8 }
  0x48   :  { %s736_s11 = scalar_lea.hbm %s922_s5, 16 }
  0x49   :  { %p737_p4 = scmp.ne.s32.totalorder %s922_s5, %s736_s11  ;;  %p740_p5 = scmp.lt.u32.totalorder %s736_s11, %s922_s5 }
  0x4b   :  { %p742_p6 = pnand %p740_p5, %p737_p4 }
  0x4d   :  { %745 = shalt.err (!%p742_p6)
}
  0x4e   :  { %s746_s3 = scalar_lea.vmem %s69_s29, 16  ;;  %s750_s14 = scalar_lea.vmem %s69_s29, 32 }
  0x4f   :  { %p747_p7 = scmp.ne.s32.totalorder %s69_s29, %s746_s3  ;;  %p751_p8 = scmp.lt.s32.totalorder %s69_s29, %s69_s29 }
  0x50   :  { %p752_p9 = scmp.lt.s32.totalorder %s750_s14, %s746_s3 }
  0x52   :  { %p753_p10 = por %p752_p9, %p751_p8 }
  0x54   :  { %p754_p11 = pnand %p753_p10, %p747_p7 }
  0x56   :  { %757 = shalt.err (!%p754_p11)
}
  0x57   :  { %71 = dma.hbm_to_vmem [thread:$0]  %s922_s5, 16, %s69_s29, [#allocation9]  }
  0x58   :  { %s758_s19 = scalar_lea.hbm %s923_s6, 16 }
  0x59   :  { %p759_p12 = scmp.ne.s32.totalorder %s923_s6, %s758_s19  ;;  %p762_p13 = scmp.lt.u32.totalorder %s758_s19, %s923_s6 }
  0x5b   :  { %p764_p0 = pnand %p762_p13, %p759_p12 }
  0x5d   :  { %767 = shalt.err (!%p764_p0)
}
  0x5e   :  { %s768_s2 = scalar_lea.vmem %s79_s8, 16  ;;  %s772_s1 = scalar_lea.vmem %s79_s8, 32 }
  0x5f   :  { %p769_p1 = scmp.ne.s32.totalorder %s79_s8, %s768_s2  ;;  %p773_p2 = scmp.lt.s32.totalorder %s79_s8, %s79_s8 }
  0x60   :  { %p774_p3 = scmp.lt.s32.totalorder %s772_s1, %s768_s2 }
  0x62   :  { %p775_p4 = por %p774_p3, %p773_p2 }
  0x64   :  { %p776_p5 = pnand %p775_p4, %p769_p1 }
  0x66   :  { %779 = shalt.err (!%p776_p5)
}
  0x67   :  { %81 = dma.hbm_to_vmem [thread:$0]  %s923_s6, 16, %s79_s8, [#allocation12]  }
  0x68   :  { %780 = dma.done.wait [#allocation4], 2048  }
  0x69   :  { %781 = vsyncadd [#allocation4], 4294965248 }
  0x6a   :  { %782 = dma.done.wait [#allocation6], 2080  }
  0x6b   :  { %783 = vsyncadd [#allocation6], 4294965216 }
  0x6c   :  { %784 = dma.done.wait [#allocation9], 32  }
  0x6d   :  { %785 = vsyncadd [#allocation9], 4294967264 }
  0x6e   :  { %786 = dma.done.wait [#allocation12], 16  }
  0x6f   :  { %787 = vsyncadd [#allocation12], 4294967280  ;;  %v798_v0 = vmov 0   ;;  %v602_v1 = vld [vmem:[#allocation3 + $0x4] ss:$8 sps:$4 sm:$0xff]   ;;  %v631_v15 = vld [vmem:[#allocation7 + $0x50] sm:$0xff]   ;;  %v127_v34 = vlaneseq }
  0x70   :  { %255 = vmatprep.mubr.bf16.mxu0 %v798_v0  ;;  %v604_v2 = vld [vmem:[#allocation3] ss:$8 sps:$4 sm:$0xff]   ;;  %223 = vmatprep.subr.bf16.mxu0 %v602_v1  ;;  %v605_v3 = vld [vmem:[#allocation3 + $0x14] ss:$8 sps:$4 sm:$0xff]   ;;  %v607_v4 = vld [vmem:[#allocation3 + $0x10] ss:$8 sps:$4 sm:$0xff]  }
  0x71   :  { %224 = vmatpush1.bf16.msra.mxu0 %v604_v2  ;;  %v608_v5 = vld [vmem:[#allocation3 + $0x24] ss:$8 sps:$4 sm:$0xff]   ;;  %v610_v6 = vld [vmem:[#allocation3 + $0x20] ss:$8 sps:$4 sm:$0xff]   ;;  %v611_v7 = vld [vmem:[#allocation3 + $0x34] ss:$8 sps:$4 sm:$0xff]  }
  0x72   :  { %225 = vmatprep.subr.bf16.mxu0 %v605_v3  ;;  %v613_v8 = vld [vmem:[#allocation3 + $0x30] ss:$8 sps:$4 sm:$0xff]   ;;  %v614_v9 = vld [vmem:[#allocation3 + $0x44] ss:$8 sps:$4 sm:$0xff]   ;;  %v616_v12 = vld [vmem:[#allocation3 + $0x40] ss:$8 sps:$4 sm:$0xff]  }
  0x73   :  { %v627_v10 = vld [vmem:[#allocation7 + $0x40] sm:$0xff]   ;;  %v629_v13 = vld [vmem:[#allocation7 + $0x48] sm:$0xff]   ;;  %v617_v16 = vld [vmem:[#allocation3 + $0x54] ss:$8 sps:$4 sm:$0xff]   ;;  %v128_v35 = vshrl.u32 %v127_v34, 7 }
  0x74   :  { %v628_v11 = vld [vmem:[#allocation7] sm:$0xff]   ;;  %569 = vmatprep.subr.bf16.mxu1 %v627_v10  ;;  %v630_v14 = vld [vmem:[#allocation7 + $0x8] sm:$0xff]   ;;  %v632_v18 = vld [vmem:[#allocation7 + $0x10] sm:$0xff]  }
  0x75   :  { %226 = vmatpush1.bf16.msra.mxu0 %v607_v4  ;;  %570 = vmatpush3.bf16.msra.mxu1 %v628_v11  ;;  %v619_v17 = vld [vmem:[#allocation3 + $0x50] ss:$8 sps:$4 sm:$0xff]   ;;  %v620_v20 = vld [vmem:[#allocation3 + $0x64] ss:$8 sps:$4 sm:$0xff]   ;;  %v622_v21 = vld [vmem:[#allocation3 + $0x60] ss:$8 sps:$4 sm:$0xff]  }
  0x76   :  { %227 = vmatprep.subr.bf16.mxu0 %v608_v5  ;;  %571 = vmatprep.subr.bf16.mxu1 %v629_v13  ;;  %v633_v19 = vld [vmem:[#allocation7 + $0x58] sm:$0xff]   ;;  %v635_v24 = vld [vmem:[#allocation7 + $0x60] sm:$0xff]   ;;  %v637_v28 = vld [vmem:[#allocation7 + $0x68] sm:$0xff]   ;;  %v129_v36 = vsub.s32 0, %v128_v35  ;;  %v133_v38 = vsub.s32 1, %v128_v35 }
  0x77   :  { %v634_v22 = vld [vmem:[#allocation7 + $0x18] sm:$0xff]   ;;  %v636_v25 = vld [vmem:[#allocation7 + $0x20] sm:$0xff]   ;;  %v638_v29 = vld [vmem:[#allocation7 + $0x28] sm:$0xff]  }
  0x78   :  { %v623_v23 = vld [vmem:[#allocation3 + $0x74] ss:$8 sps:$4 sm:$0xff]   ;;  %v625_v26 = vld [vmem:[#allocation3 + $0x70] ss:$8 sps:$4 sm:$0xff]   ;;  %v107_v27 = vld [vmem:[%s917_s0] sm:$0xff]  }
  0x79   :  { %228 = vmatpush1.bf16.msra.mxu0 %v610_v6  ;;  %572 = vmatpush3.bf16.msra.mxu1 %v630_v14  ;;  %v639_v30 = vld [vmem:[#allocation7 + $0x70] sm:$0xff]   ;;  %v641_v32 = vld [vmem:[#allocation7 + $0x78] sm:$0xff]   ;;  %v557_v57 = vld [vmem:[#allocation8] ss:$0 sm:$0xff]  ;;  %v461_v60 = vunpack.c.l.bf16 %v107_v27  ;;  %v462_v2 = vunpack.c.h.bf16 %v107_v27 }
  0x7a   :  { %229 = vmatprep.subr.bf16.mxu0 %v611_v7  ;;  %573 = vmatprep.subr.bf16.mxu1 %v631_v15  ;;  %v640_v31 = vld [vmem:[#allocation7 + $0x30] sm:$0xff]   ;;  %v642_v33 = vld [vmem:[#allocation7 + $0x38] sm:$0xff]  }
  0x7b   :  { %v125_v37 = vld [vmem:[#allocation5] sm:$0x3] }
  0x7c   :  { %v130_v39 = vrot.slane %v125_v37, %v129_v36  ;;  %v134_v40 = vrot.slane %v125_v37, %v133_v38 }
  0x7d   :  { %230 = vmatpush1.bf16.msra.mxu0 %v613_v8  ;;  %574 = vmatpush3.bf16.msra.mxu1 %v632_v18 }
  0x7e   :  { %231 = vmatprep.subr.bf16.mxu0 %v614_v9  ;;  %575 = vmatprep.subr.bf16.mxu1 %v633_v19 }
  0x81   :  { %232 = vmatpush1.bf16.msra.mxu0 %v616_v12  ;;  %576 = vmatpush3.bf16.msra.mxu1 %v634_v22 }
  0x82   :  { %233 = vmatprep.subr.bf16.mxu0 %v617_v16  ;;  %577 = vmatprep.subr.bf16.mxu1 %v635_v24  ;;  %v559_v24 = vld [vmem:[#allocation11] ss:$0 sm:$0xff] }
  0x85   :  { %234 = vmatpush1.bf16.msra.mxu0 %v619_v17  ;;  %578 = vmatpush3.bf16.msra.mxu1 %v636_v25 }
  0x86   :  { %235 = vmatprep.subr.bf16.mxu0 %v620_v20  ;;  %579 = vmatprep.subr.bf16.mxu1 %v637_v28  ;;  %v558_v20 = vld [vmem:[#allocation10] ss:$0 sm:$0xff] }
  0x89   :  { %236 = vmatpush1.bf16.msra.mxu0 %v622_v21  ;;  %580 = vmatpush3.bf16.msra.mxu1 %v638_v29 }
  0x8a   :  { %237 = vmatprep.subr.bf16.mxu0 %v623_v23  ;;  %581 = vmatprep.subr.bf16.mxu1 %v639_v30 }
  0x8d   :  { %238 = vmatpush1.bf16.msra.mxu0 %v625_v26  ;;  %582 = vmatpush3.bf16.msra.mxu1 %v640_v31 }
  0x8e   :  { %583 = vmatprep.subr.bf16.mxu1 %v641_v32 }
  0x90   :  { %256 = vmatmul.mubr.bf16.vlgmr.msra.gmra.mrb[0].mxu0 %v107_v27 }
  0x91   :  { %584 = vmatpush3.bf16.msra.mxu1 %v642_v33 }
 0x163   :  { %v257_v41 = vpop.f32.mrb[0].mxu0 }
 0x164   :  { %v258_v42 = vadd.f32 %v257_v41, %v130_v39  ;;  %v259_v43 = vpop.f32.mrb[1].mxu0 }
 0x165   :  { %v260_v44 = vadd.f32 %v259_v43, %v134_v40  ;;  %v261_v45 = vpop.f32.mrb[2].mxu0 }
 0x166   :  { %v262_v46 = vadd.f32 %v261_v45, %v130_v39  ;;  %v263_v47 = vpop.f32.mrb[3].mxu0  ;;  %v266_v49 = vmax.f32 %v258_v42, 0.0 }
 0x167   :  { %v264_v48 = vadd.f32 %v263_v47, %v134_v40  ;;  %v267_v51 = vmax.f32 %v260_v44, 0.0 }
 0x168   :  { %v268_v50 = vmax.f32 %v262_v46, 0.0 }
 0x169   :  { %v269_v52 = vmax.f32 %v264_v48, 0.0 }
 0x16a   :  { %v272_v53 = vpack.c.bf16 %v268_v50, %v266_v49 }
 0x16b   :  { %v273_v54 = vpack.c.bf16 %v269_v52, %v267_v51 }
 0x16d   :  { %434 = vmatprep.mubr.bf16.mxu1 %v273_v54 }
 0x16e   :  { %435 = vmatmul.mubr.bf16.vlgmr.msra.gmra.mrb[0].mxu1 %v272_v53 }
 0x241   :  { %v585_v55 = vpop.f32.mrb[0].mxu1 }
 0x242   :  { %v586_v56 = vpop.f32.mrb[1].mxu1 }
 0x243   :  { %v587_v58 = vadd.f32 %v586_v56, %v585_v55  ;;  %v588_v59 = vpop.f32.mrb[2].mxu1 }
 0x244   :  { %v589_v61 = vpop.f32.mrb[3].mxu1 }
 0x245   :  { %v459_v62 = vadd.f32 %v587_v58, %v557_v57  ;;  %v590_v63 = vadd.f32 %v589_v61, %v588_v59 }
 0x247   :  { %v460_v0 = vadd.f32 %v590_v63, %v557_v57  ;;  %v463_v1 = vadd.f32 %v461_v60, %v459_v62 }
 0x249   :  { %465 = vadd.xlane.f32.xlu0 %v463_v1  ;;  %v464_v3 = vadd.f32 %v462_v2, %v460_v0 }
 0x24d   :  { %467 = vadd.xlane.f32.xlu0 %v464_v3 }
 0x2d6   :  { %v466_v4 = vpop.xlane.xlu0 %465 }
 0x2d7   :  { %v470_v5 = vmul.f32 0.0078125, %v466_v4 }
 0x2d9   :  { %v472_v6 = vsub.f32 %v463_v1, %v470_v5 }
 0x2da   :  { %v468_v7 = vpop.xlane.xlu0 %467 }
 0x2db   :  { %v471_v8 = vmul.f32 0.0078125, %v468_v7  ;;  %v474_v9 = vmul.f32 %v472_v6, %v472_v6 }
 0x2dd   :  { %v473_v10 = vsub.f32 %v464_v3, %v471_v8  ;;  %476 = vadd.xlane.f32.xlu1 %v474_v9 }
 0x2df   :  { %v475_v11 = vmul.f32 %v473_v10, %v473_v10 }
 0x2e1   :  { %478 = vadd.xlane.f32.xlu1 %v475_v11 }
 0x36a   :  { %v477_v12 = vpop.xlane.xlu1 %476 }
 0x36b   :  { %v480_v13 = vmul.f32 0.0078125, %v477_v12 }
 0x36d   :  { %v482_v14 = vadd.f32 1e-05, %v480_v13 }
 0x36e   :  { %v479_v15 = vpop.xlane.xlu1 %478 }
 0x36f   :  { %644 = vrsqrt.f32 %v482_v14  ;;  %v481_v16 = vmul.f32 0.0078125, %v479_v15 }
 0x371   :  { %v483_v17 = vadd.f32 1e-05, %v481_v16 }
 0x373   :  { %646 = vrsqrt.f32 %v483_v17 }
 0x379   :  { %v645_v18 = vpop.eup %644 }
 0x37a   :  { %v486_v19 = vmul.f32 %v645_v18, %v472_v6 }
 0x37c   :  { %v495_v22 = vmul.f32 %v558_v20, %v486_v19 }
 0x37d   :  { %v647_v21 = vpop.eup %646 }
 0x37e   :  { %v487_v23 = vmul.f32 %v647_v21, %v473_v10  ;;  %v504_v26 = vadd.f32 %v559_v24, %v495_v22 }
 0x380   :  { %v496_v25 = vmul.f32 %v558_v20, %v487_v23 }
 0x382   :  { %v505_v27 = vadd.f32 %v559_v24, %v496_v25 }
 0x384   :  { %v567_v28 = vpack.c.bf16 %v505_v27, %v504_v26 }
 0x386   :  { %568 = vst [vmem:[%s924_s7] sm:$0xff] %v567_v28  }
 0x387   :  { %520 = vsyncpa [#allocation4], 1 }
 0x388   :  { %521 = vsyncpa [#allocation6], 1 }
 0x389   :  { %522 = vsyncpa [#allocation9], 1 }
 0x38a   :  { %523 = vsyncpa [#allocation12], 1 }

// kernel: transformer_forward.42
= control target key start
LH: loop header
LB: loop body
LE: loop exit
PB: predicated region body
PF: predicated region fallthrough
CT: control target
= control target key end

     0   :  { %v274_v0 = vmov 0.0   ;;  %vm275_vm0 = vmmov 0   ;;  %s353_s1 = inlined_call_operand.vmem [shape: bf16[128,128], index: 1, kind: input, shape index: {}]   ;;  %s354_s0 = inlined_call_operand.vmem [shape: bf16[16,128], index: 0, kind: input, shape index: {}]   ;;  %s355_s3 = inlined_call_operand.vmem [shape: bf16[16,128], index: 3, kind: input, shape index: {}]   ;;  %s356_s2 = inlined_call_operand.vmem [shape: f32[1,128], index: 2, kind: input, shape index: {}]   ;;  %s357_s4 = inlined_call_operand.vmem [shape: f32[1,128], index: 4, kind: input, shape index: {}]   ;;  %s358_s5 = inlined_call_operand.vmem [shape: f32[1,128], index: 5, kind: input, shape index: {}]   ;;  %s359_s6 = inlined_call_operand.vmem [shape: bf16[16,128], index: 6, kind: output, shape index: {}]  }
   0x1   :  { %239 = vmatprep.subr.bf16.mxu0 %v274_v0  ;;  %v261_v1 = vld [vmem:[%s353_s1] sm:$0xff]   ;;  %255 = vmatprep.mubr.msk.bf16.mxu0 %vm275_vm0, %v274_v0  ;;  %v262_v2 = vld [vmem:[%s353_s1 + $0x8] sm:$0xff]   ;;  %v263_v3 = vld [vmem:[%s353_s1 + $0x10] sm:$0xff]  }
   0x2   :  { %240 = vmatpush3.bf16.msra.mxu0 %v261_v1  ;;  %v264_v4 = vld [vmem:[%s353_s1 + $0x18] sm:$0xff]   ;;  %v265_v5 = vld [vmem:[%s353_s1 + $0x20] sm:$0xff]   ;;  %v266_v6 = vld [vmem:[%s353_s1 + $0x28] sm:$0xff]  }
   0x3   :  { %241 = vmatprep.subr.bf16.mxu0 %v274_v0  ;;  %v267_v7 = vld [vmem:[%s353_s1 + $0x30] sm:$0xff]   ;;  %v268_v8 = vld [vmem:[%s353_s1 + $0x38] sm:$0xff]   ;;  %v269_v9 = vld [vmem:[%s354_s0] sm:$0xff]  }
   0x4   :  { %v222_v10 = vld [vmem:[%s355_s3] sm:$0xff]  }
   0x5   :  { %v205_v11 = vld [vmem:[%s356_s2] ss:$0 sm:$0xff]  ;;  %v223_v12 = vunpack.c.l.bf16 %v222_v10  ;;  %v224_v20 = vunpack.c.h.bf16 %v222_v10 }
   0x6   :  { %242 = vmatpush3.bf16.msra.mxu0 %v262_v2  ;;  %v215_v38 = vld [vmem:[%s357_s4] ss:$0 sm:$0xff] }
   0x7   :  { %243 = vmatprep.subr.bf16.mxu0 %v274_v0  ;;  %v216_v42 = vld [vmem:[%s358_s5] ss:$0 sm:$0xff] }
   0xa   :  { %244 = vmatpush3.bf16.msra.mxu0 %v263_v3 }
   0xb   :  { %245 = vmatprep.subr.bf16.mxu0 %v274_v0 }
   0xe   :  { %246 = vmatpush3.bf16.msra.mxu0 %v264_v4 }
   0xf   :  { %247 = vmatprep.subr.bf16.mxu0 %v274_v0 }
  0x12   :  { %248 = vmatpush3.bf16.msra.mxu0 %v265_v5 }
  0x13   :  { %249 = vmatprep.subr.bf16.mxu0 %v274_v0 }
  0x16   :  { %250 = vmatpush3.bf16.msra.mxu0 %v266_v6 }
  0x17   :  { %251 = vmatprep.subr.bf16.mxu0 %v274_v0 }
  0x1a   :  { %252 = vmatpush3.bf16.msra.mxu0 %v267_v7 }
  0x1b   :  { %253 = vmatprep.subr.bf16.mxu0 %v274_v0 }
  0x1e   :  { %254 = vmatpush3.bf16.msra.mxu0 %v268_v8 }
  0x21   :  { %256 = vmatmul.mubr.bf16.vlgmr.msra.gmra.mrb[0].mxu0 %v269_v9 }
  0xf4   :  { %v137_v13 = vpop.f32.mrb[0].mxu0 }
  0xf5   :  { %v138_v14 = vadd.f32 %v205_v11, %v137_v13  ;;  %v257_v15 = vpop.f32.mrb[1].mxu0 }
  0xf6   :  { %v140_v16 = vpop.f32.mrb[2].mxu0 }
  0xf7   :  { %v141_v17 = vadd.f32 %v205_v11, %v140_v16  ;;  %v258_v18 = vpop.f32.mrb[3].mxu0  ;;  %v148_v19 = vadd.f32 %v223_v12, %v138_v14 }
  0xf9   :  { %150 = vadd.xlane.f32.xlu0 %v148_v19  ;;  %v149_v21 = vadd.f32 %v224_v20, %v141_v17 }
  0xfd   :  { %152 = vadd.xlane.f32.xlu0 %v149_v21 }
 0x186   :  { %v151_v22 = vpop.xlane.xlu0 %150 }
 0x187   :  { %v155_v23 = vmul.f32 0.0078125, %v151_v22 }
 0x189   :  { %v157_v24 = vsub.f32 %v148_v19, %v155_v23 }
 0x18a   :  { %v153_v25 = vpop.xlane.xlu0 %152 }
 0x18b   :  { %v156_v26 = vmul.f32 0.0078125, %v153_v25  ;;  %v159_v27 = vmul.f32 %v157_v24, %v157_v24 }
 0x18d   :  { %v158_v28 = vsub.f32 %v149_v21, %v156_v26  ;;  %161 = vadd.xlane.f32.xlu1 %v159_v27 }
 0x18f   :  { %v160_v29 = vmul.f32 %v158_v28, %v158_v28 }
 0x191   :  { %163 = vadd.xlane.f32.xlu1 %v160_v29 }
 0x21a   :  { %v162_v30 = vpop.xlane.xlu1 %161 }
 0x21b   :  { %v165_v31 = vmul.f32 0.0078125, %v162_v30 }
 0x21d   :  { %v167_v32 = vadd.f32 1e-05, %v165_v31 }
 0x21e   :  { %v164_v33 = vpop.xlane.xlu1 %163 }
 0x21f   :  { %270 = vrsqrt.f32 %v167_v32  ;;  %v166_v34 = vmul.f32 0.0078125, %v164_v33 }
 0x221   :  { %v168_v35 = vadd.f32 1e-05, %v166_v34 }
 0x223   :  { %272 = vrsqrt.f32 %v168_v35 }
 0x229   :  { %v271_v36 = vpop.eup %270 }
 0x22a   :  { %v171_v37 = vmul.f32 %v271_v36, %v157_v24 }
 0x22c   :  { %v180_v40 = vmul.f32 %v215_v38, %v171_v37 }
 0x22d   :  { %v273_v39 = vpop.eup %272 }
 0x22e   :  { %v172_v41 = vmul.f32 %v273_v39, %v158_v28  ;;  %v189_v44 = vadd.f32 %v216_v42, %v180_v40 }
 0x230   :  { %v181_v43 = vmul.f32 %v215_v38, %v172_v41 }
 0x232   :  { %v190_v45 = vadd.f32 %v216_v42, %v181_v43 }
 0x234   :  { %v228_v46 = vpack.c.bf16 %v190_v45, %v189_v44 }
 0x236   :  { %229 = vst [vmem:[%s359_s6] sm:$0xff] %v228_v46  }

// kernel: transformer_forward.44
= control target key start
LH: loop header
LB: loop body
LE: loop exit
PB: predicated region body
PF: predicated region fallthrough
CT: control target
= control target key end

     0   :  { %v453_v0 = vmov 0.0   ;;  %vm454_vm0 = vmmov 0   ;;  %v455_v3 = vmov 0   ;;  %v306_v27 = vlaneseq  ;;  %s566_s1 = inlined_call_operand.vmem [shape: bf16[128,384], index: 1, kind: input, shape index: {}]   ;;  %s567_s0 = inlined_call_operand.vmem [shape: bf16[16,128], index: 0, kind: input, shape index: {}]   ;;  %s568_s2 = inlined_call_operand.vmem [shape: f32[1,384], index: 2, kind: input, shape index: {}]   ;;  %s569_s3 = inlined_call_operand.vmem [shape: bf16[16,384], index: 3, kind: output, shape index: {}]  }
   0x1   :  { %397 = vmatprep.subr.bf16.mxu1 %v453_v0  ;;  %v420_v1 = vld [vmem:[%s566_s1 + $0x4] ss:$12 sps:$4 sm:$0xff]   ;;  %413 = vmatprep.mubr.msk.bf16.mxu1 %vm454_vm0, %v453_v0  ;;  %v422_v2 = vld [vmem:[%s566_s1 + $0x8] ss:$12 sps:$4 sm:$0xff]   ;;  %v423_v4 = vld [vmem:[%s566_s1] ss:$12 sps:$4 sm:$0xff]  }
   0x2   :  { %231 = vmatprep.mubr.bf16.mxu0 %v455_v3  ;;  %199 = vmatprep.subr.bf16.mxu0 %v420_v1  ;;  %v424_v5 = vld [vmem:[%s566_s1 + $0x1c] ss:$12 sps:$4 sm:$0xff]   ;;  %v426_v6 = vld [vmem:[%s566_s1 + $0x20] ss:$12 sps:$4 sm:$0xff]   ;;  %v427_v7 = vld [vmem:[%s566_s1 + $0x18] ss:$12 sps:$4 sm:$0xff]  }
   0x3   :  { %398 = vmatpush3.bf16.msra.mxu1 %v422_v2  ;;  %200 = vmatpush1.bf16.msra.mxu0 %v423_v4  ;;  %v428_v8 = vld [vmem:[%s566_s1 + $0x34] ss:$12 sps:$4 sm:$0xff]   ;;  %v430_v9 = vld [vmem:[%s566_s1 + $0x38] ss:$12 sps:$4 sm:$0xff]   ;;  %v431_v10 = vld [vmem:[%s566_s1 + $0x30] ss:$12 sps:$4 sm:$0xff]  }
   0x4   :  { %399 = vmatprep.subr.bf16.mxu1 %v453_v0  ;;  %201 = vmatprep.subr.bf16.mxu0 %v424_v5  ;;  %v432_v11 = vld [vmem:[%s566_s1 + $0x4c] ss:$12 sps:$4 sm:$0xff]   ;;  %v434_v12 = vld [vmem:[%s566_s1 + $0x50] ss:$12 sps:$4 sm:$0xff]   ;;  %v435_v13 = vld [vmem:[%s566_s1 + $0x48] ss:$12 sps:$4 sm:$0xff]  }
   0x5   :  { %v436_v14 = vld [vmem:[%s566_s1 + $0x64] ss:$12 sps:$4 sm:$0xff]   ;;  %v438_v15 = vld [vmem:[%s566_s1 + $0x68] ss:$12 sps:$4 sm:$0xff]   ;;  %v439_v16 = vld [vmem:[%s566_s1 + $0x60] ss:$12 sps:$4 sm:$0xff]  }
   0x6   :  { %v440_v17 = vld [vmem:[%s566_s1 + $0x7c] ss:$12 sps:$4 sm:$0xff]   ;;  %v442_v18 = vld [vmem:[%s566_s1 + $0x80] ss:$12 sps:$4 sm:$0xff]   ;;  %v443_v19 = vld [vmem:[%s566_s1 + $0x78] ss:$12 sps:$4 sm:$0xff]  }
   0x7   :  { %400 = vmatpush3.bf16.msra.mxu1 %v426_v6  ;;  %202 = vmatpush1.bf16.msra.mxu0 %v427_v7  ;;  %v444_v20 = vld [vmem:[%s566_s1 + $0x94] ss:$12 sps:$4 sm:$0xff]   ;;  %v446_v21 = vld [vmem:[%s566_s1 + $0x98] ss:$12 sps:$4 sm:$0xff]   ;;  %v447_v22 = vld [vmem:[%s566_s1 + $0x90] ss:$12 sps:$4 sm:$0xff]  }
   0x8   :  { %401 = vmatprep.subr.bf16.mxu1 %v453_v0  ;;  %203 = vmatprep.subr.bf16.mxu0 %v428_v8  ;;  %v448_v23 = vld [vmem:[%s566_s1 + $0xac] ss:$12 sps:$4 sm:$0xff]   ;;  %v450_v24 = vld [vmem:[%s566_s1 + $0xb0] ss:$12 sps:$4 sm:$0xff]   ;;  %v451_v25 = vld [vmem:[%s566_s1 + $0xa8] ss:$12 sps:$4 sm:$0xff]  }
   0x9   :  { %v452_v26 = vld [vmem:[%s567_s0] sm:$0xff]   ;;  %v307_v28 = vshrl.u32 %v306_v27, 7 }
   0xa   :  { %v304_v30 = vld [vmem:[%s568_s2] sm:$0x7] }
   0xb   :  { %402 = vmatpush3.bf16.msra.mxu1 %v430_v9  ;;  %204 = vmatpush1.bf16.msra.mxu0 %v431_v10  ;;  %v316_v29 = vsub.s32 2, %v307_v28  ;;  %v308_v31 = vsub.s32 0, %v307_v28  ;;  %v312_v32 = vsub.s32 1, %v307_v28 }
   0xc   :  { %403 = vmatprep.subr.bf16.mxu1 %v453_v0  ;;  %205 = vmatprep.subr.bf16.mxu0 %v432_v11 }
   0xd   :  { %v317_v33 = vrot.slane %v304_v30, %v316_v29  ;;  %v309_v34 = vrot.slane %v304_v30, %v308_v31  ;;  %v313_v35 = vrot.slane %v304_v30, %v312_v32 }
   0xf   :  { %404 = vmatpush3.bf16.msra.mxu1 %v434_v12  ;;  %206 = vmatpush1.bf16.msra.mxu0 %v435_v13 }
  0x10   :  { %405 = vmatprep.subr.bf16.mxu1 %v453_v0  ;;  %207 = vmatprep.subr.bf16.mxu0 %v436_v14 }
  0x13   :  { %406 = vmatpush3.bf16.msra.mxu1 %v438_v15  ;;  %208 = vmatpush1.bf16.msra.mxu0 %v439_v16 }
  0x14   :  { %407 = vmatprep.subr.bf16.mxu1 %v453_v0  ;;  %209 = vmatprep.subr.bf16.mxu0 %v440_v17 }
  0x17   :  { %408 = vmatpush3.bf16.msra.mxu1 %v442_v18  ;;  %210 = vmatpush1.bf16.msra.mxu0 %v443_v19 }
  0x18   :  { %409 = vmatprep.subr.bf16.mxu1 %v453_v0  ;;  %211 = vmatprep.subr.bf16.mxu0 %v444_v20 }
  0x1b   :  { %410 = vmatpush3.bf16.msra.mxu1 %v446_v21  ;;  %212 = vmatpush1.bf16.msra.mxu0 %v447_v22 }
  0x1c   :  { %411 = vmatprep.subr.bf16.mxu1 %v453_v0  ;;  %213 = vmatprep.subr.bf16.mxu0 %v448_v23 }
  0x1f   :  { %412 = vmatpush3.bf16.msra.mxu1 %v450_v24  ;;  %214 = vmatpush1.bf16.msra.mxu0 %v451_v25 }
  0x22   :  { %414 = vmatmul.mubr.bf16.vlgmr.msra.gmra.mrb[0].mxu1 %v452_v26  ;;  %232 = vmatmul.mubr.bf16.vlgmr.msra.gmra.mrb[0].mxu0 %v452_v26 }
  0xf5   :  { %v276_v36 = vpop.f32.mrb[0].mxu1  ;;  %v233_v38 = vpop.f32.mrb[0].mxu0 }
  0xf6   :  { %v323_v37 = vadd.f32 %v317_v33, %v276_v36  ;;  %v415_v39 = vpop.f32.mrb[1].mxu1  ;;  %v321_v40 = vadd.f32 %v309_v34, %v233_v38  ;;  %v235_v41 = vpop.f32.mrb[1].mxu0 }
  0xf7   :  { %v279_v42 = vpop.f32.mrb[2].mxu1  ;;  %v322_v44 = vadd.f32 %v313_v35, %v235_v41  ;;  %v237_v46 = vpop.f32.mrb[2].mxu0 }
  0xf8   :  { %v385_v43 = vpack.c.bf16 %v323_v37, %v323_v37  ;;  %v326_v45 = vadd.f32 %v317_v33, %v279_v42  ;;  %v416_v47 = vpop.f32.mrb[3].mxu1  ;;  %v324_v48 = vadd.f32 %v309_v34, %v237_v46  ;;  %v239_v49 = vpop.f32.mrb[3].mxu0 }
  0xf9   :  { %v384_v50 = vpack.c.bf16 %v322_v44, %v321_v40  ;;  %v325_v52 = vadd.f32 %v313_v35, %v239_v49 }
  0xfa   :  { %348 = vst [vmem:[%s569_s3 + $0x8] sm:$0xf] %v385_v43  ;;  %v387_v51 = vpack.c.bf16 %v326_v45, %v326_v45 }
  0xfb   :  { %347 = vst [vmem:[%s569_s3] sm:$0xff] %v384_v50  ;;  %v386_v53 = vpack.c.bf16 %v325_v52, %v324_v48 }
  0xfc   :  { %350 = vst [vmem:[%s569_s3 + $0x14] sm:$0xf] %v387_v51 }
  0xfd   :  { %349 = vst [vmem:[%s569_s3 + $0xc] sm:$0xff] %v386_v53 }

// kernel: transformer_forward.48
= control target key start
LH: loop header
LB: loop body
LE: loop exit
PB: predicated region body
PF: predicated region fallthrough
CT: control target
= control target key end

     0   :  { %v270_v1 = vmov 0   ;;  %v191_v18 = vlaneseq  ;;  %s351_s1 = inlined_call_operand.vmem [shape: bf16[128,256], index: 1, kind: input, shape index: {}]   ;;  %s352_s0 = inlined_call_operand.vmem [shape: bf16[16,128], index: 0, kind: input, shape index: {}]   ;;  %s353_s2 = inlined_call_operand.vmem [shape: f32[1,256], index: 2, kind: input, shape index: {}]   ;;  %s354_s3 = inlined_call_operand.vmem [shape: bf16[16,256], index: 3, kind: output, shape index: {}]  }
   0x1   :  { %v245_v0 = vld [vmem:[%s351_s1 + $0x4] ss:$8 sps:$4 sm:$0xff]   ;;  %163 = vmatprep.mubr.bf16.mxu0 %v270_v1  ;;  %v247_v2 = vld [vmem:[%s351_s1] ss:$8 sps:$4 sm:$0xff]   ;;  %v248_v3 = vld [vmem:[%s351_s1 + $0x14] ss:$8 sps:$4 sm:$0xff]  }
   0x2   :  { %131 = vmatprep.subr.bf16.mxu0 %v245_v0  ;;  %v250_v4 = vld [vmem:[%s351_s1 + $0x10] ss:$8 sps:$4 sm:$0xff]   ;;  %v251_v5 = vld [vmem:[%s351_s1 + $0x24] ss:$8 sps:$4 sm:$0xff]   ;;  %v253_v6 = vld [vmem:[%s351_s1 + $0x20] ss:$8 sps:$4 sm:$0xff]  }
   0x3   :  { %132 = vmatpush1.bf16.msra.mxu0 %v247_v2  ;;  %v254_v7 = vld [vmem:[%s351_s1 + $0x34] ss:$8 sps:$4 sm:$0xff]   ;;  %v256_v8 = vld [vmem:[%s351_s1 + $0x30] ss:$8 sps:$4 sm:$0xff]   ;;  %v257_v9 = vld [vmem:[%s351_s1 + $0x44] ss:$8 sps:$4 sm:$0xff]  }
   0x4   :  { %133 = vmatprep.subr.bf16.mxu0 %v248_v3  ;;  %v259_v10 = vld [vmem:[%s351_s1 + $0x40] ss:$8 sps:$4 sm:$0xff]   ;;  %v260_v11 = vld [vmem:[%s351_s1 + $0x54] ss:$8 sps:$4 sm:$0xff]   ;;  %v262_v12 = vld [vmem:[%s351_s1 + $0x50] ss:$8 sps:$4 sm:$0xff]  }
   0x5   :  { %v263_v13 = vld [vmem:[%s351_s1 + $0x64] ss:$8 sps:$4 sm:$0xff]   ;;  %v265_v14 = vld [vmem:[%s351_s1 + $0x60] ss:$8 sps:$4 sm:$0xff]   ;;  %v266_v15 = vld [vmem:[%s351_s1 + $0x74] ss:$8 sps:$4 sm:$0xff]  }
   0x6   :  { %v268_v16 = vld [vmem:[%s351_s1 + $0x70] ss:$8 sps:$4 sm:$0xff]   ;;  %v269_v17 = vld [vmem:[%s352_s0] sm:$0xff]   ;;  %v192_v19 = vshrl.u32 %v191_v18, 7 }
   0x7   :  { %134 = vmatpush1.bf16.msra.mxu0 %v250_v4  ;;  %v189_v21 = vld [vmem:[%s353_s2] sm:$0x3] }
   0x8   :  { %135 = vmatprep.subr.bf16.mxu0 %v251_v5  ;;  %v193_v20 = vsub.s32 0, %v192_v19  ;;  %v197_v22 = vsub.s32 1, %v192_v19 }
   0xa   :  { %v194_v23 = vrot.slane %v189_v21, %v193_v20  ;;  %v198_v24 = vrot.slane %v189_v21, %v197_v22 }
   0xb   :  { %136 = vmatpush1.bf16.msra.mxu0 %v253_v6 }
   0xc   :  { %137 = vmatprep.subr.bf16.mxu0 %v254_v7 }
   0xf   :  { %138 = vmatpush1.bf16.msra.mxu0 %v256_v8 }
  0x10   :  { %139 = vmatprep.subr.bf16.mxu0 %v257_v9 }
  0x13   :  { %140 = vmatpush1.bf16.msra.mxu0 %v259_v10 }
  0x14   :  { %141 = vmatprep.subr.bf16.mxu0 %v260_v11 }
  0x17   :  { %142 = vmatpush1.bf16.msra.mxu0 %v262_v12 }
  0x18   :  { %143 = vmatprep.subr.bf16.mxu0 %v263_v13 }
  0x1b   :  { %144 = vmatpush1.bf16.msra.mxu0 %v265_v14 }
  0x1c   :  { %145 = vmatprep.subr.bf16.mxu0 %v266_v15 }
  0x1f   :  { %146 = vmatpush1.bf16.msra.mxu0 %v268_v16 }
  0x22   :  { %164 = vmatmul.mubr.bf16.vlgmr.msra.gmra.mrb[0].mxu0 %v269_v17 }
  0xf5   :  { %v165_v25 = vpop.f32.mrb[0].mxu0 }
  0xf6   :  { %v201_v26 = vadd.f32 %v194_v23, %v165_v25  ;;  %v167_v27 = vpop.f32.mrb[1].mxu0 }
  0xf7   :  { %v202_v28 = vadd.f32 %v198_v24, %v167_v27  ;;  %v169_v29 = vpop.f32.mrb[2].mxu0 }
  0xf8   :  { %v203_v30 = vadd.f32 %v194_v23, %v169_v29  ;;  %v171_v31 = vpop.f32.mrb[3].mxu0 }
  0xf9   :  { %v242_v32 = vpack.c.bf16 %v202_v28, %v201_v26  ;;  %v204_v33 = vadd.f32 %v198_v24, %v171_v31 }
  0xfb   :  { %217 = vst [vmem:[%s354_s3] sm:$0xff] %v242_v32  ;;  %v243_v34 = vpack.c.bf16 %v204_v33, %v203_v30 }
  0xfd   :  { %218 = vst [vmem:[%s354_s3 + $0x8] sm:$0xff] %v243_v34 }

// kernel: transformer_forward.47
= control target key start
LH: loop header
LB: loop body
LE: loop exit
PB: predicated region body
PF: predicated region fallthrough
CT: control target
= control target key end

     0   :  { %v227_v0 = vmov 0.0   ;;  %vm228_vm0 = vmmov 0   ;;  %s282_s1 = inlined_call_operand.vmem [shape: bf16[128,128], index: 1, kind: input, shape index: {}]   ;;  %s283_s0 = inlined_call_operand.vmem [shape: bf16[16,128], index: 0, kind: input, shape index: {}]   ;;  %s284_s2 = inlined_call_operand.vmem [shape: f32[1,128], index: 2, kind: input, shape index: {}]   ;;  %s285_s3 = inlined_call_operand.vmem [shape: bf16[16,128], index: 3, kind: output, shape index: {}]  }
   0x1   :  { %196 = vmatprep.subr.bf16.mxu0 %v227_v0  ;;  %v218_v1 = vld [vmem:[%s282_s1] sm:$0xff]   ;;  %212 = vmatprep.mubr.msk.bf16.mxu0 %vm228_vm0, %v227_v0  ;;  %v219_v2 = vld [vmem:[%s282_s1 + $0x8] sm:$0xff]   ;;  %v220_v3 = vld [vmem:[%s282_s1 + $0x10] sm:$0xff]  }
   0x2   :  { %197 = vmatpush3.bf16.msra.mxu0 %v218_v1  ;;  %v221_v4 = vld [vmem:[%s282_s1 + $0x18] sm:$0xff]   ;;  %v222_v5 = vld [vmem:[%s282_s1 + $0x20] sm:$0xff]   ;;  %v223_v6 = vld [vmem:[%s282_s1 + $0x28] sm:$0xff]  }
   0x3   :  { %198 = vmatprep.subr.bf16.mxu0 %v227_v0  ;;  %v224_v7 = vld [vmem:[%s282_s1 + $0x30] sm:$0xff]   ;;  %v225_v8 = vld [vmem:[%s282_s1 + $0x38] sm:$0xff]   ;;  %v226_v9 = vld [vmem:[%s283_s0] sm:$0xff]  }
   0x4   :  { %v177_v11 = vld [vmem:[%s284_s2] ss:$0 sm:$0xff] }
   0x6   :  { %199 = vmatpush3.bf16.msra.mxu0 %v219_v2 }
   0x7   :  { %200 = vmatprep.subr.bf16.mxu0 %v227_v0 }
   0xa   :  { %201 = vmatpush3.bf16.msra.mxu0 %v220_v3 }
   0xb   :  { %202 = vmatprep.subr.bf16.mxu0 %v227_v0 }
   0xe   :  { %203 = vmatpush3.bf16.msra.mxu0 %v221_v4 }
   0xf   :  { %204 = vmatprep.subr.bf16.mxu0 %v227_v0 }
  0x12   :  { %205 = vmatpush3.bf16.msra.mxu0 %v222_v5 }
  0x13   :  { %206 = vmatprep.subr.bf16.mxu0 %v227_v0 }
  0x16   :  { %207 = vmatpush3.bf16.msra.mxu0 %v223_v6 }
  0x17   :  { %208 = vmatprep.subr.bf16.mxu0 %v227_v0 }
  0x1a   :  { %209 = vmatpush3.bf16.msra.mxu0 %v224_v7 }
  0x1b   :  { %210 = vmatprep.subr.bf16.mxu0 %v227_v0 }
  0x1e   :  { %211 = vmatpush3.bf16.msra.mxu0 %v225_v8 }
  0x21   :  { %213 = vmatmul.mubr.bf16.vlgmr.msra.gmra.mrb[0].mxu0 %v226_v9 }
  0xf4   :  { %v129_v10 = vpop.f32.mrb[0].mxu0 }
  0xf5   :  { %v214_v12 = vpop.f32.mrb[1].mxu0  ;;  %v152_v14 = vadd.f32 %v177_v11, %v129_v10 }
  0xf6   :  { %v132_v13 = vpop.f32.mrb[2].mxu0 }
  0xf7   :  { %v153_v15 = vadd.f32 %v177_v11, %v132_v13  ;;  %v215_v16 = vpop.f32.mrb[3].mxu0 }
  0xf9   :  { %v185_v17 = vpack.c.bf16 %v153_v15, %v152_v14 }
  0xfb   :  { %186 = vst [vmem:[%s285_s3] sm:$0xff] %v185_v17  }

// kernel: transformer_forward.43
= control target key start
LH: loop header
LB: loop body
LE: loop exit
PB: predicated region body
PF: predicated region fallthrough
CT: control target
= control target key end

     0   :  { %v560_v1 = vmov 0   ;;  %v53_v34 = vlaneseq  ;;  %s715_s1 = inlined_call_operand.vmem [shape: bf16[128,256], index: 1, kind: input, shape index: {}]   ;;  %s716_s3 = inlined_call_operand.vmem [shape: bf16[256,128], index: 3, kind: input, shape index: {}]   ;;  %s717_s0 = inlined_call_operand.vmem [shape: bf16[16,128], index: 0, kind: input, shape index: {}]   ;;  %s718_s2 = inlined_call_operand.vmem [shape: f32[1,256], index: 2, kind: input, shape index: {}]   ;;  %s719_s4 = inlined_call_operand.vmem [shape: f32[1,128], index: 4, kind: input, shape index: {}]   ;;  %s720_s5 = inlined_call_operand.vmem [shape: f32[1,128], index: 5, kind: input, shape index: {}]   ;;  %s721_s6 = inlined_call_operand.vmem [shape: f32[1,128], index: 6, kind: input, shape index: {}]   ;;  %s722_s7 = inlined_call_operand.vmem [shape: bf16[16,128], index: 7, kind: output, shape index: {}]  }
   0x1   :  { %v514_v0 = vld [vmem:[%s715_s1 + $0x4] ss:$8 sps:$4 sm:$0xff]   ;;  %181 = vmatprep.mubr.bf16.mxu0 %v560_v1  ;;  %v516_v2 = vld [vmem:[%s715_s1] ss:$8 sps:$4 sm:$0xff]   ;;  %v517_v3 = vld [vmem:[%s715_s1 + $0x14] ss:$8 sps:$4 sm:$0xff]  }
   0x2   :  { %149 = vmatprep.subr.bf16.mxu0 %v514_v0  ;;  %v519_v4 = vld [vmem:[%s715_s1 + $0x10] ss:$8 sps:$4 sm:$0xff]   ;;  %v520_v5 = vld [vmem:[%s715_s1 + $0x24] ss:$8 sps:$4 sm:$0xff]   ;;  %v522_v6 = vld [vmem:[%s715_s1 + $0x20] ss:$8 sps:$4 sm:$0xff]  }
   0x3   :  { %150 = vmatpush1.bf16.msra.mxu0 %v516_v2  ;;  %v523_v7 = vld [vmem:[%s715_s1 + $0x34] ss:$8 sps:$4 sm:$0xff]   ;;  %v525_v8 = vld [vmem:[%s715_s1 + $0x30] ss:$8 sps:$4 sm:$0xff]   ;;  %v526_v9 = vld [vmem:[%s715_s1 + $0x44] ss:$8 sps:$4 sm:$0xff]  }
   0x4   :  { %151 = vmatprep.subr.bf16.mxu0 %v517_v3  ;;  %v539_v10 = vld [vmem:[%s716_s3 + $0x40] sm:$0xff]   ;;  %v541_v13 = vld [vmem:[%s716_s3 + $0x48] sm:$0xff]   ;;  %v543_v15 = vld [vmem:[%s716_s3 + $0x50] sm:$0xff]   ;;  %v54_v35 = vshrl.u32 %v53_v34, 7 }
   0x5   :  { %v540_v11 = vld [vmem:[%s716_s3] sm:$0xff]   ;;  %491 = vmatprep.subr.bf16.mxu1 %v539_v10  ;;  %v542_v14 = vld [vmem:[%s716_s3 + $0x8] sm:$0xff]   ;;  %v529_v16 = vld [vmem:[%s715_s1 + $0x54] ss:$8 sps:$4 sm:$0xff]  }
   0x6   :  { %v528_v12 = vld [vmem:[%s715_s1 + $0x40] ss:$8 sps:$4 sm:$0xff]   ;;  %492 = vmatpush3.bf16.msra.mxu1 %v540_v11  ;;  %v531_v17 = vld [vmem:[%s715_s1 + $0x50] ss:$8 sps:$4 sm:$0xff]   ;;  %v532_v20 = vld [vmem:[%s715_s1 + $0x64] ss:$8 sps:$4 sm:$0xff]  }
   0x7   :  { %152 = vmatpush1.bf16.msra.mxu0 %v519_v4  ;;  %493 = vmatprep.subr.bf16.mxu1 %v541_v13  ;;  %v544_v18 = vld [vmem:[%s716_s3 + $0x10] sm:$0xff]   ;;  %v545_v19 = vld [vmem:[%s716_s3 + $0x58] sm:$0xff]   ;;  %v534_v21 = vld [vmem:[%s715_s1 + $0x60] ss:$8 sps:$4 sm:$0xff]   ;;  %v55_v36 = vsub.s32 0, %v54_v35  ;;  %v59_v38 = vsub.s32 1, %v54_v35 }
   0x8   :  { %153 = vmatprep.subr.bf16.mxu0 %v520_v5  ;;  %v546_v22 = vld [vmem:[%s716_s3 + $0x18] sm:$0xff]   ;;  %v547_v24 = vld [vmem:[%s716_s3 + $0x60] sm:$0xff]   ;;  %v549_v28 = vld [vmem:[%s716_s3 + $0x68] sm:$0xff]  }
   0x9   :  { %v535_v23 = vld [vmem:[%s715_s1 + $0x74] ss:$8 sps:$4 sm:$0xff]   ;;  %v548_v25 = vld [vmem:[%s716_s3 + $0x20] sm:$0xff]   ;;  %v537_v26 = vld [vmem:[%s715_s1 + $0x70] ss:$8 sps:$4 sm:$0xff]  }
   0xa   :  { %494 = vmatpush3.bf16.msra.mxu1 %v542_v14  ;;  %v33_v27 = vld [vmem:[%s717_s0] sm:$0xff]   ;;  %v550_v29 = vld [vmem:[%s716_s3 + $0x28] sm:$0xff]   ;;  %v551_v30 = vld [vmem:[%s716_s3 + $0x70] sm:$0xff]  }
   0xb   :  { %154 = vmatpush1.bf16.msra.mxu0 %v522_v6  ;;  %495 = vmatprep.subr.bf16.mxu1 %v543_v15  ;;  %v552_v31 = vld [vmem:[%s716_s3 + $0x30] sm:$0xff]   ;;  %v553_v32 = vld [vmem:[%s716_s3 + $0x78] sm:$0xff]   ;;  %v51_v37 = vld [vmem:[%s718_s2] sm:$0x3]  ;;  %v387_v60 = vunpack.c.l.bf16 %v33_v27  ;;  %v388_v2 = vunpack.c.h.bf16 %v33_v27 }
   0xc   :  { %155 = vmatprep.subr.bf16.mxu0 %v523_v7  ;;  %v554_v33 = vld [vmem:[%s716_s3 + $0x38] sm:$0xff]   ;;  %v56_v39 = vrot.slane %v51_v37, %v55_v36  ;;  %v60_v40 = vrot.slane %v51_v37, %v59_v38  ;;  %v479_v57 = vld [vmem:[%s719_s4] ss:$0 sm:$0xff] }
   0xe   :  { %496 = vmatpush3.bf16.msra.mxu1 %v544_v18 }
   0xf   :  { %156 = vmatpush1.bf16.msra.mxu0 %v525_v8  ;;  %497 = vmatprep.subr.bf16.mxu1 %v545_v19 }
  0x10   :  { %157 = vmatprep.subr.bf16.mxu0 %v526_v9 }
  0x12   :  { %498 = vmatpush3.bf16.msra.mxu1 %v546_v22 }
  0x13   :  { %158 = vmatpush1.bf16.msra.mxu0 %v528_v12  ;;  %499 = vmatprep.subr.bf16.mxu1 %v547_v24  ;;  %v481_v24 = vld [vmem:[%s721_s6] ss:$0 sm:$0xff] }
  0x14   :  { %159 = vmatprep.subr.bf16.mxu0 %v529_v16 }
  0x16   :  { %500 = vmatpush3.bf16.msra.mxu1 %v548_v25 }
  0x17   :  { %160 = vmatpush1.bf16.msra.mxu0 %v531_v17  ;;  %501 = vmatprep.subr.bf16.mxu1 %v549_v28 }
  0x18   :  { %161 = vmatprep.subr.bf16.mxu0 %v532_v20  ;;  %v480_v20 = vld [vmem:[%s720_s5] ss:$0 sm:$0xff] }
  0x1a   :  { %502 = vmatpush3.bf16.msra.mxu1 %v550_v29 }
  0x1b   :  { %162 = vmatpush1.bf16.msra.mxu0 %v534_v21  ;;  %503 = vmatprep.subr.bf16.mxu1 %v551_v30 }
  0x1c   :  { %163 = vmatprep.subr.bf16.mxu0 %v535_v23 }
  0x1e   :  { %504 = vmatpush3.bf16.msra.mxu1 %v552_v31 }
  0x1f   :  { %164 = vmatpush1.bf16.msra.mxu0 %v537_v26  ;;  %505 = vmatprep.subr.bf16.mxu1 %v553_v32 }
  0x22   :  { %182 = vmatmul.mubr.bf16.vlgmr.msra.gmra.mrb[0].mxu0 %v33_v27  ;;  %506 = vmatpush3.bf16.msra.mxu1 %v554_v33 }
  0xf5   :  { %v183_v41 = vpop.f32.mrb[0].mxu0 }
  0xf6   :  { %v184_v42 = vadd.f32 %v183_v41, %v56_v39  ;;  %v185_v43 = vpop.f32.mrb[1].mxu0 }
  0xf7   :  { %v186_v44 = vadd.f32 %v185_v43, %v60_v40  ;;  %v187_v45 = vpop.f32.mrb[2].mxu0 }
  0xf8   :  { %v188_v46 = vadd.f32 %v187_v45, %v56_v39  ;;  %v189_v47 = vpop.f32.mrb[3].mxu0  ;;  %v192_v49 = vmax.f32 %v184_v42, 0.0 }
  0xf9   :  { %v190_v48 = vadd.f32 %v189_v47, %v60_v40  ;;  %v193_v51 = vmax.f32 %v186_v44, 0.0 }
  0xfa   :  { %v194_v50 = vmax.f32 %v188_v46, 0.0 }
  0xfb   :  { %v195_v52 = vmax.f32 %v190_v48, 0.0 }
  0xfc   :  { %v198_v53 = vpack.c.bf16 %v194_v50, %v192_v49 }
  0xfd   :  { %v199_v54 = vpack.c.bf16 %v195_v52, %v193_v51 }
  0xff   :  { %360 = vmatprep.mubr.bf16.mxu1 %v199_v54 }
 0x100   :  { %361 = vmatmul.mubr.bf16.vlgmr.msra.gmra.mrb[0].mxu1 %v198_v53 }
 0x1d3   :  { %v507_v55 = vpop.f32.mrb[0].mxu1 }
 0x1d4   :  { %v508_v56 = vpop.f32.mrb[1].mxu1 }
 0x1d5   :  { %v509_v58 = vadd.f32 %v508_v56, %v507_v55  ;;  %v510_v59 = vpop.f32.mrb[2].mxu1 }
 0x1d6   :  { %v511_v61 = vpop.f32.mrb[3].mxu1 }
 0x1d7   :  { %v385_v62 = vadd.f32 %v509_v58, %v479_v57  ;;  %v512_v63 = vadd.f32 %v511_v61, %v510_v59 }
 0x1d9   :  { %v386_v0 = vadd.f32 %v512_v63, %v479_v57  ;;  %v389_v1 = vadd.f32 %v387_v60, %v385_v62 }
 0x1db   :  { %391 = vadd.xlane.f32.xlu0 %v389_v1  ;;  %v390_v3 = vadd.f32 %v388_v2, %v386_v0 }
 0x1df   :  { %393 = vadd.xlane.f32.xlu0 %v390_v3 }
 0x268   :  { %v392_v4 = vpop.xlane.xlu0 %391 }
 0x269   :  { %v396_v5 = vmul.f32 0.0078125, %v392_v4 }
 0x26b   :  { %v398_v6 = vsub.f32 %v389_v1, %v396_v5 }
 0x26c   :  { %v394_v7 = vpop.xlane.xlu0 %393 }
 0x26d   :  { %v397_v8 = vmul.f32 0.0078125, %v394_v7  ;;  %v400_v9 = vmul.f32 %v398_v6, %v398_v6 }
 0x26f   :  { %v399_v10 = vsub.f32 %v390_v3, %v397_v8  ;;  %402 = vadd.xlane.f32.xlu1 %v400_v9 }
 0x271   :  { %v401_v11 = vmul.f32 %v399_v10, %v399_v10 }
 0x273   :  { %404 = vadd.xlane.f32.xlu1 %v401_v11 }
 0x2fc   :  { %v403_v12 = vpop.xlane.xlu1 %402 }
 0x2fd   :  { %v406_v13 = vmul.f32 0.0078125, %v403_v12 }
 0x2ff   :  { %v408_v14 = vadd.f32 1e-05, %v406_v13 }
 0x300   :  { %v405_v15 = vpop.xlane.xlu1 %404 }
 0x301   :  { %556 = vrsqrt.f32 %v408_v14  ;;  %v407_v16 = vmul.f32 0.0078125, %v405_v15 }
 0x303   :  { %v409_v17 = vadd.f32 1e-05, %v407_v16 }
 0x305   :  { %558 = vrsqrt.f32 %v409_v17 }
 0x30b   :  { %v557_v18 = vpop.eup %556 }
 0x30c   :  { %v412_v19 = vmul.f32 %v557_v18, %v398_v6 }
 0x30e   :  { %v421_v22 = vmul.f32 %v480_v20, %v412_v19 }
 0x30f   :  { %v559_v21 = vpop.eup %558 }
 0x310   :  { %v413_v23 = vmul.f32 %v559_v21, %v399_v10  ;;  %v430_v26 = vadd.f32 %v481_v24, %v421_v22 }
 0x312   :  { %v422_v25 = vmul.f32 %v480_v20, %v413_v23 }
 0x314   :  { %v431_v27 = vadd.f32 %v481_v24, %v422_v25 }
 0x316   :  { %v489_v28 = vpack.c.bf16 %v431_v27, %v430_v26 }
 0x318   :  { %490 = vst [vmem:[%s722_s7] sm:$0xff] %v489_v28  }

// kernel: transformer_forward.52
= control target key start
LH: loop header
LB: loop body
LE: loop exit
PB: predicated region body
PF: predicated region fallthrough
CT: control target
= control target key end

     0   :  { %s124_s0 = inlined_call_operand.vmem [shape: bf16[16,128], index: 0, kind: input, shape index: {}]   ;;  %s125_s1 = inlined_call_operand.vmem [shape: f32[1,128], index: 1, kind: input, shape index: {}]   ;;  %s126_s2 = inlined_call_operand.vmem [shape: f32[1,128], index: 2, kind: input, shape index: {}]   ;;  %s127_s3 = inlined_call_operand.vmem [shape: bf16[16,128], index: 3, kind: output, shape index: {}]  }
   0x1   :  { %v80_v0 = vld [vmem:[%s124_s0] sm:$0xff]  }
   0x2   :  { %v81_v1 = vunpack.c.l.bf16 %v80_v0  ;;  %v82_v2 = vunpack.c.h.bf16 %v80_v0  ;;  %v73_v19 = vld [vmem:[%s125_s1] ss:$0 sm:$0xff] }
   0x3   :  { %v74_v23 = vld [vmem:[%s126_s2] ss:$0 sm:$0xff] }
   0x4   :  { %18 = vadd.xlane.f32.xlu0 %v81_v1 }
   0x8   :  { %20 = vadd.xlane.f32.xlu0 %v82_v2 }
  0x91   :  { %v19_v3 = vpop.xlane.xlu0 %18 }
  0x92   :  { %v23_v4 = vmul.f32 0.0078125, %v19_v3 }
  0x94   :  { %v25_v5 = vsub.f32 %v81_v1, %v23_v4 }
  0x95   :  { %v21_v6 = vpop.xlane.xlu0 %20 }
  0x96   :  { %v24_v7 = vmul.f32 0.0078125, %v21_v6  ;;  %v27_v8 = vmul.f32 %v25_v5, %v25_v5 }
  0x98   :  { %v26_v9 = vsub.f32 %v82_v2, %v24_v7  ;;  %29 = vadd.xlane.f32.xlu1 %v27_v8 }
  0x9a   :  { %v28_v10 = vmul.f32 %v26_v9, %v26_v9 }
  0x9c   :  { %31 = vadd.xlane.f32.xlu1 %v28_v10 }
 0x125   :  { %v30_v11 = vpop.xlane.xlu1 %29 }
 0x126   :  { %v33_v12 = vmul.f32 0.0078125, %v30_v11 }
 0x128   :  { %v35_v13 = vadd.f32 1e-05, %v33_v12 }
 0x129   :  { %v32_v14 = vpop.xlane.xlu1 %31 }
 0x12a   :  { %88 = vrsqrt.f32 %v35_v13  ;;  %v34_v15 = vmul.f32 0.0078125, %v32_v14 }
 0x12c   :  { %v36_v16 = vadd.f32 1e-05, %v34_v15 }
 0x12e   :  { %90 = vrsqrt.f32 %v36_v16 }
 0x134   :  { %v89_v17 = vpop.eup %88 }
 0x135   :  { %v39_v18 = vmul.f32 %v89_v17, %v25_v5 }
 0x137   :  { %v48_v21 = vmul.f32 %v73_v19, %v39_v18 }
 0x138   :  { %v91_v20 = vpop.eup %90 }
 0x139   :  { %v40_v22 = vmul.f32 %v91_v20, %v26_v9  ;;  %v57_v25 = vadd.f32 %v74_v23, %v48_v21 }
 0x13b   :  { %v49_v24 = vmul.f32 %v73_v19, %v40_v22 }
 0x13d   :  { %v58_v26 = vadd.f32 %v74_v23, %v49_v24 }
 0x13f   :  { %v86_v27 = vpack.c.bf16 %v58_v26, %v57_v25 }
 0x141   :  { %87 = vst [vmem:[%s127_s3] sm:$0xff] %v86_v27  }

// kernel: transformer_forward.53
= control target key start
LH: loop header
LB: loop body
LE: loop exit
PB: predicated region body
PF: predicated region fallthrough
CT: control target
= control target key end

     0   :  { %v210_v0 = vmov 0.0   ;;  %vm211_vm0 = vmmov 0   ;;  %s268_s1 = inlined_call_operand.vmem [shape: bf16[128,128], index: 1, kind: input, shape index: {}]   ;;  %s269_s0 = inlined_call_operand.vmem [shape: bf16[16,128], index: 0, kind: input, shape index: {}]   ;;  %s270_s2 = inlined_call_operand.vmem [shape: f32[1,128], index: 2, kind: input, shape index: {}]   ;;  %s271_s3 = inlined_call_operand.vmem [shape: f32[16,128], index: 3, kind: output, shape index: {}]  }
   0x1   :  { %179 = vmatprep.subr.bf16.mxu0 %v210_v0  ;;  %v201_v1 = vld [vmem:[%s268_s1] sm:$0xff]   ;;  %195 = vmatprep.mubr.msk.bf16.mxu0 %vm211_vm0, %v210_v0  ;;  %v202_v2 = vld [vmem:[%s268_s1 + $0x8] sm:$0xff]   ;;  %v203_v3 = vld [vmem:[%s268_s1 + $0x10] sm:$0xff]  }
   0x2   :  { %180 = vmatpush3.bf16.msra.mxu0 %v201_v1  ;;  %v204_v4 = vld [vmem:[%s268_s1 + $0x18] sm:$0xff]   ;;  %v205_v5 = vld [vmem:[%s268_s1 + $0x20] sm:$0xff]   ;;  %v206_v6 = vld [vmem:[%s268_s1 + $0x28] sm:$0xff]  }
   0x3   :  { %181 = vmatprep.subr.bf16.mxu0 %v210_v0  ;;  %v207_v7 = vld [vmem:[%s268_s1 + $0x30] sm:$0xff]   ;;  %v208_v8 = vld [vmem:[%s268_s1 + $0x38] sm:$0xff]   ;;  %v209_v9 = vld [vmem:[%s269_s0] sm:$0xff]  }
   0x4   :  { %v169_v10 = vld [vmem:[%s270_s2] ss:$0 sm:$0xff] }
   0x6   :  { %182 = vmatpush3.bf16.msra.mxu0 %v202_v2 }
   0x7   :  { %183 = vmatprep.subr.bf16.mxu0 %v210_v0 }
   0xa   :  { %184 = vmatpush3.bf16.msra.mxu0 %v203_v3 }
   0xb   :  { %185 = vmatprep.subr.bf16.mxu0 %v210_v0 }
   0xe   :  { %186 = vmatpush3.bf16.msra.mxu0 %v204_v4 }
   0xf   :  { %187 = vmatprep.subr.bf16.mxu0 %v210_v0 }
  0x12   :  { %188 = vmatpush3.bf16.msra.mxu0 %v205_v5 }
  0x13   :  { %189 = vmatprep.subr.bf16.mxu0 %v210_v0 }
  0x16   :  { %190 = vmatpush3.bf16.msra.mxu0 %v206_v6 }
  0x17   :  { %191 = vmatprep.subr.bf16.mxu0 %v210_v0 }
  0x1a   :  { %192 = vmatpush3.bf16.msra.mxu0 %v207_v7 }
  0x1b   :  { %193 = vmatprep.subr.bf16.mxu0 %v210_v0 }
  0x1e   :  { %194 = vmatpush3.bf16.msra.mxu0 %v208_v8 }
  0x21   :  { %196 = vmatmul.mubr.bf16.vlgmr.msra.gmra.mrb[0].mxu0 %v209_v9 }
  0xf4   :  { %v129_v11 = vpop.f32.mrb[0].mxu0 }
  0xf5   :  { %v152_v12 = vadd.f32 %v169_v10, %v129_v11  ;;  %v197_v13 = vpop.f32.mrb[1].mxu0 }
  0xf6   :  { %v132_v14 = vpop.f32.mrb[2].mxu0 }
  0xf7   :  { %154 = vst [vmem:[%s271_s3] sm:$0xff] %v152_v12  ;;  %v153_v15 = vadd.f32 %v169_v10, %v132_v14  ;;  %v198_v16 = vpop.f32.mrb[3].mxu0 }
  0xf9   :  { %155 = vst [vmem:[%s271_s3 + $0x8] sm:$0xff] %v153_v15 }

</bundles_post_ra>
